<compile_context>
chip_gen: v7x
topology: tpu7x:2x2x1
jax: 0.10.0
libtpu: 0.0.40
codegen_flags: <defaults>
</compile_context>

<pallas_src>
import math
from functools import partial

import jax
import jax.numpy as jnp
from jax.experimental import pallas as pl
from jax.experimental.pallas import tpu as pltpu

LANE = 128  # TPU lane width; num_labels is padded to this so stores are lane-dense.


# --------------------------------------------------------------------------
# Kernel 1: SearchLayer similarities (normalize queries, matmul with DB)
# --------------------------------------------------------------------------
def _search_kernel(q_ref, w_ref, sim_ref, *, eps):
    q = q_ref[...]                                              # (B, D) f32
    # rsqrt goes to the EUP slot (cheap); eps guards zero-norm queries (NaN otherwise).
    # In the streamed (multi-tile) path this tiny (B,D) normalization is recomputed per
    # tile, which is negligible next to the DB-tile DMA.
    inv = jax.lax.rsqrt(jnp.sum(q * q, axis=-1, keepdims=True) + eps)
    qn = (q * inv).astype(jnp.bfloat16)                         # bf16 MXU operand
    sim_ref[...] = jnp.dot(qn, w_ref[...], preferred_element_type=jnp.float32)


def search_similarities(queries, weight_t, *, tile_n=32768, eps=1e-12,
                        resident_bytes=8 * 1024 * 1024):
    """queries (B, D) f32, weight_t (D, N_db) bf16 -> similarities (B, N_db) f32."""
    B, D = queries.shape
    n_db = weight_t.shape[1]
    db_bytes = D * n_db * weight_t.dtype.itemsize
    # Whole DB resident when small (single grid step, no per-step overhead);
    # otherwise stream large (>= ~2 MiB) tiles so DMA dwarfs the ~0.35 us step cost.
    tn = n_db if db_bytes <= resident_bytes else min(tile_n, n_db)
    return pl.pallas_call(
        partial(_search_kernel, eps=eps),
        out_shape=jax.ShapeDtypeStruct((B, n_db), jnp.float32),
        grid_spec=pltpu.PrefetchScalarGridSpec(
            num_scalar_prefetch=0,
            grid=(pl.cdiv(n_db, tn),),
            in_specs=[pl.BlockSpec((B, D), lambda j: (0, 0)),    # queries stay resident
                      pl.BlockSpec((D, tn), lambda j: (0, j))],  # DB tile (double-buffered)
            out_specs=pl.BlockSpec((B, tn), lambda j: (0, j)),
        ),
        compiler_params=pltpu.CompilerParams(
            dimension_semantics=("parallel",)),   # streamed DB tiles shard across v7x cores
    )(queries, weight_t)


# --------------------------------------------------------------------------
# Kernel 2: fused MEA layers + classification head + retrieval blend
# --------------------------------------------------------------------------
def _mea_fused_kernel(h0_ref, wqkv_ref, bqkv_ref, wo_ref, bo_ref,
                      dw_ref, db_ref, ow_ref, ob_ref, ret_ref, out_ref,
                      *, num_layers, scale, batch_tile, k, seq_len, dim,
                      retrieval_ratio):
    n_tile = batch_tile * k
    rows = n_tile * seq_len

    h_f32 = h0_ref[0]                                # (rows, D) f32, flattened tokens
    h = h_f32.astype(jnp.bfloat16)                   # bf16 carry = MXU-native operand

    # All layer weights are VMEM-resident (L*4*D^2 is tiny), so the layer loop is a
    # static in-kernel unroll: no layer grid axis, no per-layer weight DMA, no scratch.
    for l in range(num_layers):
        # Fused QKV projection: one wide MXU dot with N = 3D (instead of three N=D
        # dots that each waste 3/4 of the 128-lane width). f32 accumulate + f32 bias.
        qkv = jnp.dot(h, wqkv_ref[l], preferred_element_type=jnp.float32) + bqkv_ref[l]
        q = qkv[:, 0 * dim:1 * dim].reshape(n_tile, seq_len, dim)
        kk = qkv[:, 1 * dim:2 * dim].reshape(n_tile, seq_len, dim)
        v = qkv[:, 2 * dim:3 * dim].reshape(n_tile, seq_len, dim)

        # Attention over S=3 tokens, unrolled onto VPU multiplies + lane reductions
        # (per-example 3x3 matmuls are <1% MXU-efficient; VPU/XLU slots are idle here).
        # Note: torch's A_x @ W_V(H_x) + A_r @ W_V(H_r) == A @ W_V(H) since W_V is
        # token-wise linear, so this is the standard single-head attention product.
        s_cols = []
        for t in range(seq_len):
            s_cols.append(jnp.sum(q * kk[:, t:t + 1, :], axis=-1, keepdims=True))
        scores = jnp.concatenate(s_cols, axis=-1) * scale           # (n_tile, S, S)
        scores = scores - jnp.max(scores, axis=-1, keepdims=True)
        p = jnp.exp(scores)
        a = p / jnp.sum(p, axis=-1, keepdims=True)                  # exact softmax (S=3)

        attn = a[:, :, 0:1] * v[:, 0:1, :]
        for t in range(1, seq_len):
            attn = attn + a[:, :, t:t + 1] * v[:, t:t + 1, :]        # (n_tile, S, D)

        # Output projection back in the flattened 2D layout; keep a f32 copy for the
        # head (last layer) and a bf16 carry for the next layer's matmuls.
        h_f32 = jnp.dot(attn.reshape(rows, dim).astype(jnp.bfloat16), wo_ref[l],
                        preferred_element_type=jnp.float32) + bo_ref[l]
        h = h_f32.astype(jnp.bfloat16)

    # ---- classification head on the CLS token + per-query mean over the k copies ----
    cls = h_f32.reshape(n_tile, seq_len, dim)[:, 0, :]               # (n_tile, D) f32
    x = jnp.tanh(jnp.dot(cls.astype(jnp.bfloat16), dw_ref[...],
                         preferred_element_type=jnp.float32) + db_ref[...])
    x = jnp.dot(x.astype(jnp.bfloat16), ow_ref[...],
                preferred_element_type=jnp.float32) + ob_ref[...]     # (n_tile, LANE)
    # group mean over the k retrieved copies = sublane-strided reduce (no gmat matmul)
    logits = jnp.mean(x.reshape(batch_tile, k, x.shape[-1]), axis=1)  # (batch_tile, LANE)
    out_ref[0] = logits * (1.0 - retrieval_ratio) + ret_ref[0] * retrieval_ratio


def mea_layers_and_head(h0, params, ret_padded, *, num_layers, scale, batch, k,
                        seq_len, dim, lp, retrieval_ratio, batch_tile):
    """h0 (B*k, S, D) f32, ret_padded (B, lp) f32 -> blended logits (B, lp) f32."""
    assert batch % batch_tile == 0
    nbt = batch // batch_tile
    n_tile = batch_tile * k
    rows = n_tile * seq_len

    # Flatten tokens outside the kernel (free reshapes) so the kernel sees a dense
    # 2D (rows, D) activation slab per batch tile.
    h0_t = h0.reshape(nbt, rows, dim)
    ret_t = ret_padded.reshape(nbt, batch_tile, lp)

    kernel = partial(_mea_fused_kernel, num_layers=num_layers, scale=scale,
                     batch_tile=batch_tile, k=k, seq_len=seq_len, dim=dim,
                     retrieval_ratio=retrieval_ratio)

    def full(shape):
        # whole-array resident block (constant index map); used for all weights
        return pl.BlockSpec(shape, lambda i, _s=shape: tuple(0 for _ in _s))

    out = pl.pallas_call(
        kernel,
        out_shape=jax.ShapeDtypeStruct((nbt, batch_tile, lp), jnp.float32),
        grid_spec=pltpu.PrefetchScalarGridSpec(
            num_scalar_prefetch=0,
            grid=(nbt,),                                   # batch tiles only; layers in-kernel
            in_specs=[
                pl.BlockSpec((1, rows, dim), lambda i: (i, 0, 0)),   # activations
                full(params['wqkv'].shape), full(params['bqkv'].shape),  # fused QKV
                full(params['wo'].shape), full(params['bo'].shape),     # W_O
                full(params['dense_w'].shape), full(params['dense_b'].shape),
                full(params['out_w'].shape), full(params['out_b'].shape),
                pl.BlockSpec((1, batch_tile, lp), lambda i: (i, 0, 0)),  # retrieval
            ],
            out_specs=pl.BlockSpec((1, batch_tile, lp), lambda i: (i, 0, 0)),
        ),
        # With larger configs (D >= 1024), switch back to streamed per-layer weight
        # BlockSpecs once L*4*D^2*2 bytes exceeds ~half the scoped VMEM, and set
        # vmem_limit_bytes per generation (v7x: 64 MiB physical, v5e/v6e: 128 MiB).
        compiler_params=pltpu.CompilerParams(
            dimension_semantics=("parallel",)),
    )(h0_t, params['wqkv'], params['bqkv'], params['wo'], params['bo'],
      params['dense_w'], params['dense_b'], params['out_w'], params['out_b'],
      ret_t)
    return out.reshape(batch, lp)


# --------------------------------------------------------------------------
# Parameter init (deterministic, synthetic — mirrors the torch module shapes)
# --------------------------------------------------------------------------
def init_params(key, n_db, embed_dim, num_layers, num_labels):
    keys = jax.random.split(key, 8)

    # database (what torch.load(database) would give): (n_db, embed_dim + 1)
    db_feats = jax.random.normal(keys[0], (n_db, embed_dim), jnp.float32)
    db_labels = jax.random.randint(keys[1], (n_db,), 0, num_labels).astype(jnp.float32)

    # SearchLayer.__init__
    rows = db_feats / jnp.linalg.norm(db_feats, axis=-1, keepdims=True)   # (n_db, D)
    search_rows = rows                                                    # f32 for gather
    search_weight = rows.T.astype(jnp.bfloat16)                           # (D, n_db)
    search_label = db_labels

    def lin(k_, din, dout, scale=0.05):
        k1, k2 = jax.random.split(k_)
        return (scale * jax.random.normal(k1, (din, dout), jnp.float32),
                scale * jax.random.normal(k2, (1, dout), jnp.float32))

    # Per-layer W_Q/W_K/W_V fused into one (D, 3D) matrix and one (1, 3D) bias so the
    # kernel does a single wide MXU dot per layer; W_O kept separate.
    wqkv, bqkv, wo, bo = [], [], [], []
    for lk in jax.random.split(keys[2], num_layers):
        kq, kk_, kv, ko = jax.random.split(lk, 4)
        wq_, bq_ = lin(kq, embed_dim, embed_dim)
        wk_, bk_ = lin(kk_, embed_dim, embed_dim)
        wv_, bv_ = lin(kv, embed_dim, embed_dim)
        wo_, bo_ = lin(ko, embed_dim, embed_dim)
        wqkv.append(jnp.concatenate([wq_, wk_, wv_], axis=1))   # (D, 3D)
        bqkv.append(jnp.concatenate([bq_, bk_, bv_], axis=1))   # (1, 3D)
        wo.append(wo_)
        bo.append(bo_)
    wqkv = jnp.stack(wqkv).astype(jnp.bfloat16)                 # (L, D, 3D)
    bqkv = jnp.stack(bqkv)                                      # (L, 1, 3D) f32
    wo = jnp.stack(wo).astype(jnp.bfloat16)                     # (L, D, D)
    bo = jnp.stack(bo)                                          # (L, 1, D) f32

    dense_w, dense_b = lin(keys[6], embed_dim, embed_dim)
    out_w, out_b = lin(keys[7], embed_dim, num_labels)

    # Lane-pad the tiny num_labels output dim to 128 (unmasked lane-dense stores);
    # the real logits are sliced back out in the wrapper.
    lp = ((num_labels + LANE - 1) // LANE) * LANE
    out_w_p = jnp.zeros((embed_dim, lp), jnp.float32).at[:, :num_labels].set(out_w)
    out_b_p = jnp.zeros((1, lp), jnp.float32).at[:, :num_labels].set(out_b)

    return dict(search_weight=search_weight, search_rows=search_rows,
                search_label=search_label,
                wqkv=wqkv, bqkv=bqkv, wo=wo, bo=bo,
                dense_w=dense_w.astype(jnp.bfloat16), dense_b=dense_b,
                out_w=out_w_p.astype(jnp.bfloat16), out_b=out_b_p)


# --------------------------------------------------------------------------
# Full MEATransformer forward
# --------------------------------------------------------------------------
def mea_transformer_forward(params, queries, *, embed_dim, num_heads, num_layers,
                            num_labels, k, retrieval_ratio, batch_tile=None):
    B, D = queries.shape
    assert D == embed_dim
    # torch F.one_hot(label, num_classes=embed_dim) requires labels < embed_dim.
    assert num_labels <= embed_dim
    if batch_tile is None:
        # nbt=1 (everything resident, one grid step) — best for v5e/v6e.
        # On v7x megacore, pass batch_tile=B//2 so nbt=2 matches the 2 TensorCores.
        batch_tile = B

    # ---- SearchLayer (Pallas) ----
    sims = search_similarities(queries, params['search_weight'])      # (B, n_db)
    top_scores, top_idx = jax.lax.top_k(sims, k)                      # (B, k)
    # TODO(synk): top-k + data-dependent row gather / one-hot assembly stay in plain JAX;
    # a streaming in-kernel top-k only pays off at n_db >= ~1M rows.
    top_labels = params['search_label'][top_idx]                      # (B, k) float
    top_seqs = params['search_rows'][top_idx.reshape(-1)]             # (B*k, D) f32

    # ---- build H_cxr = [CLS, H_x, H_r] ----
    H_r = top_seqs[:, None, :]                                        # (B*k, 1, D)
    H_x = jnp.repeat(queries, k, axis=0)[:, None, :]                  # (B*k, 1, D)
    cls = jax.nn.one_hot(top_labels.astype(jnp.int32), embed_dim,
                         dtype=jnp.float32)                           # (B, k, D)
    cls = cls.reshape(-1, 1, embed_dim) * top_scores.reshape(-1, 1, 1)
    H_cxr = jnp.concatenate([cls, H_x, H_r], axis=1)                  # (B*k, 3, D)

    # ---- retrieval logits (padded to the lane-dense width) ----
    one_hot_labels = jax.nn.one_hot(top_labels.astype(jnp.int32), num_labels,
                                    dtype=jnp.float32)                # (B, k, L)
    agg = one_hot_labels.sum(axis=1)
    retrieval_logits = agg / agg.sum(axis=-1, keepdims=True)          # (B, L)
    lp = params['out_w'].shape[1]
    ret_padded = jnp.zeros((B, lp), jnp.float32).at[:, :num_labels].set(retrieval_logits)

    # ---- fused MEA layers + classification head + blend (Pallas) ----
    d_k = embed_dim // num_heads
    logits_padded = mea_layers_and_head(
        H_cxr, params, ret_padded,
        num_layers=num_layers, scale=1.0 / math.sqrt(d_k),
        batch=B, k=k, seq_len=3, dim=embed_dim, lp=lp,
        retrieval_ratio=retrieval_ratio, batch_tile=batch_tile)
    return logits_padded[:, :num_labels]


if __name__ == "__main__":
    B, embed_dim, n_db = 2, 32, 2048
    num_heads, num_layers, num_labels, k = 4, 2, 12, 3
    retrieval_ratio = 0.5

    key = jax.random.PRNGKey(0)
    k_query, k_param = jax.random.split(key)
    queries = jax.random.normal(k_query, (B, embed_dim), jnp.float32)
    params = init_params(k_param, n_db, embed_dim, num_layers, num_labels)

    fwd = jax.jit(partial(
        mea_transformer_forward, embed_dim=embed_dim, num_heads=num_heads,
        num_layers=num_layers, num_labels=num_labels, k=k,
        retrieval_ratio=retrieval_ratio))

    logits = jax.block_until_ready(fwd(params, queries))

    assert logits.shape == (B, num_labels), logits.shape
    assert bool(jnp.all(jnp.isfinite(logits)))
    print("KERNEL_OK")
</pallas_src>

<mosaic_0001>
module attributes {stable_mosaic.version = 11 : i64} {
  func.func @_search_kernel(%arg0: i32, %arg1: memref<2x32xf32, #tpu.memory_space<vmem>>, %arg2: memref<32x2048xbf16, #tpu.memory_space<vmem>>, %arg3: memref<2x2048xf32, #tpu.memory_space<vmem>>) attributes {dimension_semantics = [#tpu.dimension_semantics<parallel>], iteration_bounds = array<i64: 1>, scalar_prefetch = 0 : i64, scratch_operands = 0 : i64, tpu.core_type = #tpu.core_type<tc>, window_params = [{pipeline_mode = #tpu.pipeline_mode<synchronous>, transform_indices = @transform_0, window_bounds = array<i64: 2, 32>}, {transform_indices = @transform_1, window_bounds = array<i64: 32, 2048>}, {transform_indices = @transform_2, window_bounds = array<i64: 2, 2048>}]} {
    %c0 = arith.constant 0 : index
    %c0_0 = arith.constant 0 : index
    %0 = vector.load %arg1[%c0, %c0_0] : memref<2x32xf32, #tpu.memory_space<vmem>>, vector<2x32xf32>
    %1 = arith.mulf %0, %0 : vector<2x32xf32>
    %cst = arith.constant dense<0.000000e+00> : vector<2xf32>
    %2 = vector.multi_reduction <add>, %1, %cst [1] : vector<2x32xf32> to vector<2xf32>
    %3 = vector.shape_cast %2 : vector<2xf32> to vector<2x1xf32>
    %cst_1 = arith.constant 9.99999996E-13 : f32
    %4 = vector.broadcast %cst_1 : f32 to vector<2x1xf32>
    %5 = arith.addf %3, %4 : vector<2x1xf32>
    %6 = math.rsqrt %5 : vector<2x1xf32>
    %7 = vector.broadcast %6 : vector<2x1xf32> to vector<2x32xf32>
    %8 = arith.mulf %0, %7 : vector<2x32xf32>
    %9 = arith.truncf %8 : vector<2x32xf32> to vector<2x32xbf16>
    %c0_2 = arith.constant 0 : index
    %c0_3 = arith.constant 0 : index
    %10 = vector.load %arg2[%c0_2, %c0_3] : memref<32x2048xbf16, #tpu.memory_space<vmem>>, vector<32x2048xbf16>
    %cst_4 = arith.constant dense<0.000000e+00> : vector<2x2048xf32>
    %11 = tpu.matmul %9, %10, %cst_4 {dimension_numbers = #tpu.dot_dimension_numbers<[1], [0], [0], [1], [0, 0, 1, 1], [], []>} : vector<2x32xbf16>, vector<32x2048xbf16>, vector<2x2048xf32> -> vector<2x2048xf32>
    %c0_5 = arith.constant 0 : index
    %c0_6 = arith.constant 0 : index
    %12 = vector.load %arg3[%c0_5, %c0_6] : memref<2x2048xf32, #tpu.memory_space<vmem>>, vector<2x2048xf32>
    tpu.vector_store %arg3[%c0_5, %c0_6], %11 {strides = array<i32>} : memref<2x2048xf32, #tpu.memory_space<vmem>>, vector<2x2048xf32>,
    return
  }
  func.func @transform_0(%arg0: i32) -> (i32, i32) {
    %c0_i32 = arith.constant 0 : i32
    %c0_i32_0 = arith.constant 0 : i32
    %c0_i32_1 = arith.constant 0 : i32
    return %c0_i32, %c0_i32_0 : i32, i32
  }
  func.func @transform_1(%arg0: i32) -> (i32, i32) {
    %c0_i32 = arith.constant 0 : i32
    %c0_i32_0 = arith.constant 0 : i32
    return %c0_i32, %arg0 : i32, i32
  }
  func.func @transform_2(%arg0: i32) -> (i32, i32) {
    %c0_i32 = arith.constant 0 : i32
    %c0_i32_0 = arith.constant 0 : i32
    return %c0_i32, %arg0 : i32, i32
  }
}

module attributes {stable_mosaic.version = 11 : i64} {
  func.func @_mea_fused_kernel(%arg0: i32, %arg1: memref<1x18x32xf32, #tpu.memory_space<vmem>>, %arg2: memref<2x32x96xbf16, #tpu.memory_space<vmem>>, %arg3: memref<2x1x96xf32, #tpu.memory_space<vmem>>, %arg4: memref<2x32x32xbf16, #tpu.memory_space<vmem>>, %arg5: memref<2x1x32xf32, #tpu.memory_space<vmem>>, %arg6: memref<32x32xbf16, #tpu.memory_space<vmem>>, %arg7: memref<1x32xf32, #tpu.memory_space<vmem>>, %arg8: memref<32x128xbf16, #tpu.memory_space<vmem>>, %arg9: memref<1x128xf32, #tpu.memory_space<vmem>>, %arg10: memref<1x2x128xf32, #tpu.memory_space<vmem>>, %arg11: memref<1x2x128xf32, #tpu.memory_space<vmem>>) attributes {dimension_semantics = [#tpu.dimension_semantics<parallel>], iteration_bounds = array<i64: 1>, scalar_prefetch = 0 : i64, scratch_operands = 0 : i64, tpu.core_type = #tpu.core_type<tc>, window_params = [{transform_indices = @transform_0, window_bounds = array<i64: 1, 18, 32>}, {pipeline_mode = #tpu.pipeline_mode<synchronous>, transform_indices = @transform_1, window_bounds = array<i64: 2, 32, 96>}, {pipeline_mode = #tpu.pipeline_mode<synchronous>, transform_indices = @transform_2, window_bounds = array<i64: 2, 1, 96>}, {pipeline_mode = #tpu.pipeline_mode<synchronous>, transform_indices = @transform_3, window_bounds = array<i64: 2, 32, 32>}, {pipeline_mode = #tpu.pipeline_mode<synchronous>, transform_indices = @transform_4, window_bounds = array<i64: 2, 1, 32>}, {pipeline_mode = #tpu.pipeline_mode<synchronous>, transform_indices = @transform_5, window_bounds = array<i64: 32, 32>}, {pipeline_mode = #tpu.pipeline_mode<synchronous>, transform_indices = @transform_6, window_bounds = array<i64: 1, 32>}, {pipeline_mode = #tpu.pipeline_mode<synchronous>, transform_indices = @transform_7, window_bounds = array<i64: 32, 128>}, {pipeline_mode = #tpu.pipeline_mode<synchronous>, transform_indices = @transform_8, window_bounds = array<i64: 1, 128>}, {transform_indices = @transform_9, window_bounds = array<i64: 1, 2, 128>}, {transform_indices = @transform_10, window_bounds = array<i64: 1, 2, 128>}]} {
    %c0 = arith.constant 0 : index
    %c0_0 = arith.constant 0 : index
    %c0_1 = arith.constant 0 : index
    %0 = vector.load %arg1[%c0, %c0_0, %c0_1] : memref<1x18x32xf32, #tpu.memory_space<vmem>>, vector<1x18x32xf32>
    %1 = vector.shape_cast %0 : vector<1x18x32xf32> to vector<18x32xf32>
    %2 = arith.truncf %1 : vector<18x32xf32> to vector<18x32xbf16>
    %c0_2 = arith.constant 0 : index
    %c0_3 = arith.constant 0 : index
    %c0_4 = arith.constant 0 : index
    %3 = vector.load %arg2[%c0_2, %c0_3, %c0_4] : memref<2x32x96xbf16, #tpu.memory_space<vmem>>, vector<1x32x96xbf16>
    %4 = vector.shape_cast %3 : vector<1x32x96xbf16> to vector<32x96xbf16>
    %cst = arith.constant dense<0.000000e+00> : vector<18x96xf32>
    %5 = tpu.matmul %2, %4, %cst {dimension_numbers = #tpu.dot_dimension_numbers<[1], [0], [0], [1], [0, 0, 1, 1], [], []>} : vector<18x32xbf16>, vector<32x96xbf16>, vector<18x96xf32> -> vector<18x96xf32>
    %c0_5 = arith.constant 0 : index
    %c0_6 = arith.constant 0 : index
    %c0_7 = arith.constant 0 : index
    %6 = vector.load %arg3[%c0_5, %c0_6, %c0_7] : memref<2x1x96xf32, #tpu.memory_space<vmem>>, vector<1x1x96xf32>
    %7 = vector.shape_cast %6 : vector<1x1x96xf32> to vector<1x96xf32>
    %8 = vector.broadcast %7 : vector<1x96xf32> to vector<18x96xf32>
    %9 = arith.addf %5, %8 : vector<18x96xf32>
    %10 = vector.extract_strided_slice %9 {offsets = [0, 0], sizes = [18, 32], strides = [1, 1]} : vector<18x96xf32> to vector<18x32xf32>
    %11 = vector.shape_cast %10 : vector<18x32xf32> to vector<6x3x32xf32>
    %12 = vector.extract_strided_slice %9 {offsets = [0, 32], sizes = [18, 32], strides = [1, 1]} : vector<18x96xf32> to vector<18x32xf32>
    %13 = vector.shape_cast %12 : vector<18x32xf32> to vector<6x3x32xf32>
    %14 = vector.extract_strided_slice %9 {offsets = [0, 64], sizes = [18, 32], strides = [1, 1]} : vector<18x96xf32> to vector<18x32xf32>
    %15 = vector.shape_cast %14 : vector<18x32xf32> to vector<6x3x32xf32>
    %16 = vector.extract_strided_slice %13 {offsets = [0, 0, 0], sizes = [6, 1, 32], strides = [1, 1, 1]} : vector<6x3x32xf32> to vector<6x1x32xf32>
    %17 = vector.broadcast %16 : vector<6x1x32xf32> to vector<6x3x32xf32>
    %18 = arith.mulf %11, %17 : vector<6x3x32xf32>
    %cst_8 = arith.constant dense<0.000000e+00> : vector<6x3xf32>
    %19 = vector.multi_reduction <add>, %18, %cst_8 [2] : vector<6x3x32xf32> to vector<6x3xf32>
    %20 = vector.shape_cast %19 : vector<6x3xf32> to vector<6x3x1xf32>
    %21 = vector.extract_strided_slice %13 {offsets = [0, 1, 0], sizes = [6, 1, 32], strides = [1, 1, 1]} : vector<6x3x32xf32> to vector<6x1x32xf32>
    %22 = vector.broadcast %21 : vector<6x1x32xf32> to vector<6x3x32xf32>
    %23 = arith.mulf %11, %22 : vector<6x3x32xf32>
    %cst_9 = arith.constant dense<0.000000e+00> : vector<6x3xf32>
    %24 = vector.multi_reduction <add>, %23, %cst_9 [2] : vector<6x3x32xf32> to vector<6x3xf32>
    %25 = vector.shape_cast %24 : vector<6x3xf32> to vector<6x3x1xf32>
    %26 = vector.extract_strided_slice %13 {offsets = [0, 2, 0], sizes = [6, 1, 32], strides = [1, 1, 1]} : vector<6x3x32xf32> to vector<6x1x32xf32>
    %27 = vector.broadcast %26 : vector<6x1x32xf32> to vector<6x3x32xf32>
    %28 = arith.mulf %11, %27 : vector<6x3x32xf32>
    %cst_10 = arith.constant dense<0.000000e+00> : vector<6x3xf32>
    %29 = vector.multi_reduction <add>, %28, %cst_10 [2] : vector<6x3x32xf32> to vector<6x3xf32>
    %30 = vector.shape_cast %29 : vector<6x3xf32> to vector<6x3x1xf32>
    %31 = tpu.concatenate %20, %25, %30 in 2 : vector<6x3x1xf32>, vector<6x3x1xf32>, vector<6x3x1xf32> -> vector<6x3x3xf32>
    %cst_11 = arith.constant 0.353553385 : f32
    %32 = vector.broadcast %cst_11 : f32 to vector<6x3x3xf32>
    %33 = arith.mulf %31, %32 : vector<6x3x3xf32>
    %cst_12 = arith.constant dense<0xFF800000> : vector<6x3xf32>
    %34 = vector.multi_reduction <maximumf>, %33, %cst_12 [2] : vector<6x3x3xf32> to vector<6x3xf32>
    %35 = vector.shape_cast %34 : vector<6x3xf32> to vector<6x3x1xf32>
    %36 = vector.broadcast %35 : vector<6x3x1xf32> to vector<6x3x3xf32>
    %37 = arith.subf %33, %36 : vector<6x3x3xf32>
    %38 = math.exp %37 : vector<6x3x3xf32>
    %cst_13 = arith.constant dense<0.000000e+00> : vector<6x3xf32>
    %39 = vector.multi_reduction <add>, %38, %cst_13 [2] : vector<6x3x3xf32> to vector<6x3xf32>
    %40 = vector.shape_cast %39 : vector<6x3xf32> to vector<6x3x1xf32>
    %41 = vector.broadcast %40 : vector<6x3x1xf32> to vector<6x3x3xf32>
    %42 = arith.divf %38, %41 : vector<6x3x3xf32>
    %43 = vector.extract_strided_slice %42 {offsets = [0, 0, 0], sizes = [6, 3, 1], strides = [1, 1, 1]} : vector<6x3x3xf32> to vector<6x3x1xf32>
    %44 = vector.extract_strided_slice %15 {offsets = [0, 0, 0], sizes = [6, 1, 32], strides = [1, 1, 1]} : vector<6x3x32xf32> to vector<6x1x32xf32>
    %45 = vector.broadcast %43 : vector<6x3x1xf32> to vector<6x3x32xf32>
    %46 = vector.broadcast %44 : vector<6x1x32xf32> to vector<6x3x32xf32>
    %47 = arith.mulf %45, %46 : vector<6x3x32xf32>
    %48 = vector.extract_strided_slice %42 {offsets = [0, 0, 1], sizes = [6, 3, 1], strides = [1, 1, 1]} : vector<6x3x3xf32> to vector<6x3x1xf32>
    %49 = vector.extract_strided_slice %15 {offsets = [0, 1, 0], sizes = [6, 1, 32], strides = [1, 1, 1]} : vector<6x3x32xf32> to vector<6x1x32xf32>
    %50 = vector.broadcast %48 : vector<6x3x1xf32> to vector<6x3x32xf32>
    %51 = vector.broadcast %49 : vector<6x1x32xf32> to vector<6x3x32xf32>
    %52 = arith.mulf %50, %51 : vector<6x3x32xf32>
    %53 = arith.addf %47, %52 : vector<6x3x32xf32>
    %54 = vector.extract_strided_slice %42 {offsets = [0, 0, 2], sizes = [6, 3, 1], strides = [1, 1, 1]} : vector<6x3x3xf32> to vector<6x3x1xf32>
    %55 = vector.extract_strided_slice %15 {offsets = [0, 2, 0], sizes = [6, 1, 32], strides = [1, 1, 1]} : vector<6x3x32xf32> to vector<6x1x32xf32>
    %56 = vector.broadcast %54 : vector<6x3x1xf32> to vector<6x3x32xf32>
    %57 = vector.broadcast %55 : vector<6x1x32xf32> to vector<6x3x32xf32>
    %58 = arith.mulf %56, %57 : vector<6x3x32xf32>
    %59 = arith.addf %53, %58 : vector<6x3x32xf32>
    %60 = vector.shape_cast %59 : vector<6x3x32xf32> to vector<18x32xf32>
    %61 = arith.truncf %60 : vector<18x32xf32> to vector<18x32xbf16>
    %c0_14 = arith.constant 0 : index
    %c0_15 = arith.constant 0 : index
    %c0_16 = arith.constant 0 : index
    %62 = vector.load %arg4[%c0_14, %c0_15, %c0_16] : memref<2x32x32xbf16, #tpu.memory_space<vmem>>, vector<1x32x32xbf16>
    %63 = vector.shape_cast %62 : vector<1x32x32xbf16> to vector<32x32xbf16>
    %cst_17 = arith.constant dense<0.000000e+00> : vector<18x32xf32>
    %64 = tpu.matmul %61, %63, %cst_17 {dimension_numbers = #tpu.dot_dimension_numbers<[1], [0], [0], [1], [0, 0, 1, 1], [], []>} : vector<18x32xbf16>, vector<32x32xbf16>, vector<18x32xf32> -> vector<18x32xf32>
    %c0_18 = arith.constant 0 : index
    %c0_19 = arith.constant 0 : index
    %c0_20 = arith.constant 0 : index
    %65 = vector.load %arg5[%c0_18, %c0_19, %c0_20] : memref<2x1x32xf32, #tpu.memory_space<vmem>>, vector<1x1x32xf32>
    %66 = vector.shape_cast %65 : vector<1x1x32xf32> to vector<1x32xf32>
    %67 = vector.broadcast %66 : vector<1x32xf32> to vector<18x32xf32>
    %68 = arith.addf %64, %67 : vector<18x32xf32>
    %69 = arith.truncf %68 : vector<18x32xf32> to vector<18x32xbf16>
    %c1 = arith.constant 1 : index
    %c0_21 = arith.constant 0 : index
    %c0_22 = arith.constant 0 : index
    %70 = vector.load %arg2[%c1, %c0_21, %c0_22] : memref<2x32x96xbf16, #tpu.memory_space<vmem>>, vector<1x32x96xbf16>
    %71 = vector.shape_cast %70 : vector<1x32x96xbf16> to vector<32x96xbf16>
    %cst_23 = arith.constant dense<0.000000e+00> : vector<18x96xf32>
    %72 = tpu.matmul %69, %71, %cst_23 {dimension_numbers = #tpu.dot_dimension_numbers<[1], [0], [0], [1], [0, 0, 1, 1], [], []>} : vector<18x32xbf16>, vector<32x96xbf16>, vector<18x96xf32> -> vector<18x96xf32>
    %c1_24 = arith.constant 1 : index
    %c0_25 = arith.constant 0 : index
    %c0_26 = arith.constant 0 : index
    %73 = vector.load %arg3[%c1_24, %c0_25, %c0_26] : memref<2x1x96xf32, #tpu.memory_space<vmem>>, vector<1x1x96xf32>
    %74 = vector.shape_cast %73 : vector<1x1x96xf32> to vector<1x96xf32>
    %75 = vector.broadcast %74 : vector<1x96xf32> to vector<18x96xf32>
    %76 = arith.addf %72, %75 : vector<18x96xf32>
    %77 = vector.extract_strided_slice %76 {offsets = [0, 0], sizes = [18, 32], strides = [1, 1]} : vector<18x96xf32> to vector<18x32xf32>
    %78 = vector.shape_cast %77 : vector<18x32xf32> to vector<6x3x32xf32>
    %79 = vector.extract_strided_slice %76 {offsets = [0, 32], sizes = [18, 32], strides = [1, 1]} : vector<18x96xf32> to vector<18x32xf32>
    %80 = vector.shape_cast %79 : vector<18x32xf32> to vector<6x3x32xf32>
    %81 = vector.extract_strided_slice %76 {offsets = [0, 64], sizes = [18, 32], strides = [1, 1]} : vector<18x96xf32> to vector<18x32xf32>
    %82 = vector.shape_cast %81 : vector<18x32xf32> to vector<6x3x32xf32>
    %83 = vector.extract_strided_slice %80 {offsets = [0, 0, 0], sizes = [6, 1, 32], strides = [1, 1, 1]} : vector<6x3x32xf32> to vector<6x1x32xf32>
    %84 = vector.broadcast %83 : vector<6x1x32xf32> to vector<6x3x32xf32>
    %85 = arith.mulf %78, %84 : vector<6x3x32xf32>
    %cst_27 = arith.constant dense<0.000000e+00> : vector<6x3xf32>
    %86 = vector.multi_reduction <add>, %85, %cst_27 [2] : vector<6x3x32xf32> to vector<6x3xf32>
    %87 = vector.shape_cast %86 : vector<6x3xf32> to vector<6x3x1xf32>
    %88 = vector.extract_strided_slice %80 {offsets = [0, 1, 0], sizes = [6, 1, 32], strides = [1, 1, 1]} : vector<6x3x32xf32> to vector<6x1x32xf32>
    %89 = vector.broadcast %88 : vector<6x1x32xf32> to vector<6x3x32xf32>
    %90 = arith.mulf %78, %89 : vector<6x3x32xf32>
    %cst_28 = arith.constant dense<0.000000e+00> : vector<6x3xf32>
    %91 = vector.multi_reduction <add>, %90, %cst_28 [2] : vector<6x3x32xf32> to vector<6x3xf32>
    %92 = vector.shape_cast %91 : vector<6x3xf32> to vector<6x3x1xf32>
    %93 = vector.extract_strided_slice %80 {offsets = [0, 2, 0], sizes = [6, 1, 32], strides = [1, 1, 1]} : vector<6x3x32xf32> to vector<6x1x32xf32>
    %94 = vector.broadcast %93 : vector<6x1x32xf32> to vector<6x3x32xf32>
    %95 = arith.mulf %78, %94 : vector<6x3x32xf32>
    %cst_29 = arith.constant dense<0.000000e+00> : vector<6x3xf32>
    %96 = vector.multi_reduction <add>, %95, %cst_29 [2] : vector<6x3x32xf32> to vector<6x3xf32>
    %97 = vector.shape_cast %96 : vector<6x3xf32> to vector<6x3x1xf32>
    %98 = tpu.concatenate %87, %92, %97 in 2 : vector<6x3x1xf32>, vector<6x3x1xf32>, vector<6x3x1xf32> -> vector<6x3x3xf32>
    %cst_30 = arith.constant 0.353553385 : f32
    %99 = vector.broadcast %cst_30 : f32 to vector<6x3x3xf32>
    %100 = arith.mulf %98, %99 : vector<6x3x3xf32>
    %cst_31 = arith.constant dense<0xFF800000> : vector<6x3xf32>
    %101 = vector.multi_reduction <maximumf>, %100, %cst_31 [2] : vector<6x3x3xf32> to vector<6x3xf32>
    %102 = vector.shape_cast %101 : vector<6x3xf32> to vector<6x3x1xf32>
    %103 = vector.broadcast %102 : vector<6x3x1xf32> to vector<6x3x3xf32>
    %104 = arith.subf %100, %103 : vector<6x3x3xf32>
    %105 = math.exp %104 : vector<6x3x3xf32>
    %cst_32 = arith.constant dense<0.000000e+00> : vector<6x3xf32>
    %106 = vector.multi_reduction <add>, %105, %cst_32 [2] : vector<6x3x3xf32> to vector<6x3xf32>
    %107 = vector.shape_cast %106 : vector<6x3xf32> to vector<6x3x1xf32>
    %108 = vector.broadcast %107 : vector<6x3x1xf32> to vector<6x3x3xf32>
    %109 = arith.divf %105, %108 : vector<6x3x3xf32>
    %110 = vector.extract_strided_slice %109 {offsets = [0, 0, 0], sizes = [6, 3, 1], strides = [1, 1, 1]} : vector<6x3x3xf32> to vector<6x3x1xf32>
    %111 = vector.extract_strided_slice %82 {offsets = [0, 0, 0], sizes = [6, 1, 32], strides = [1, 1, 1]} : vector<6x3x32xf32> to vector<6x1x32xf32>
    %112 = vector.broadcast %110 : vector<6x3x1xf32> to vector<6x3x32xf32>
    %113 = vector.broadcast %111 : vector<6x1x32xf32> to vector<6x3x32xf32>
    %114 = arith.mulf %112, %113 : vector<6x3x32xf32>
    %115 = vector.extract_strided_slice %109 {offsets = [0, 0, 1], sizes = [6, 3, 1], strides = [1, 1, 1]} : vector<6x3x3xf32> to vector<6x3x1xf32>
    %116 = vector.extract_strided_slice %82 {offsets = [0, 1, 0], sizes = [6, 1, 32], strides = [1, 1, 1]} : vector<6x3x32xf32> to vector<6x1x32xf32>
    %117 = vector.broadcast %115 : vector<6x3x1xf32> to vector<6x3x32xf32>
    %118 = vector.broadcast %116 : vector<6x1x32xf32> to vector<6x3x32xf32>
    %119 = arith.mulf %117, %118 : vector<6x3x32xf32>
    %120 = arith.addf %114, %119 : vector<6x3x32xf32>
    %121 = vector.extract_strided_slice %109 {offsets = [0, 0, 2], sizes = [6, 3, 1], strides = [1, 1, 1]} : vector<6x3x3xf32> to vector<6x3x1xf32>
    %122 = vector.extract_strided_slice %82 {offsets = [0, 2, 0], sizes = [6, 1, 32], strides = [1, 1, 1]} : vector<6x3x32xf32> to vector<6x1x32xf32>
    %123 = vector.broadcast %121 : vector<6x3x1xf32> to vector<6x3x32xf32>
    %124 = vector.broadcast %122 : vector<6x1x32xf32> to vector<6x3x32xf32>
    %125 = arith.mulf %123, %124 : vector<6x3x32xf32>
    %126 = arith.addf %120, %125 : vector<6x3x32xf32>
    %127 = vector.shape_cast %126 : vector<6x3x32xf32> to vector<18x32xf32>
    %128 = arith.truncf %127 : vector<18x32xf32> to vector<18x32xbf16>
    %c1_33 = arith.constant 1 : index
    %c0_34 = arith.constant 0 : index
    %c0_35 = arith.constant 0 : index
    %129 = vector.load %arg4[%c1_33, %c0_34, %c0_35] : memref<2x32x32xbf16, #tpu.memory_space<vmem>>, vector<1x32x32xbf16>
    %130 = vector.shape_cast %129 : vector<1x32x32xbf16> to vector<32x32xbf16>
    %cst_36 = arith.constant dense<0.000000e+00> : vector<18x32xf32>
    %131 = tpu.matmul %128, %130, %cst_36 {dimension_numbers = #tpu.dot_dimension_numbers<[1], [0], [0], [1], [0, 0, 1, 1], [], []>} : vector<18x32xbf16>, vector<32x32xbf16>, vector<18x32xf32> -> vector<18x32xf32>
    %c1_37 = arith.constant 1 : index
    %c0_38 = arith.constant 0 : index
    %c0_39 = arith.constant 0 : index
    %132 = vector.load %arg5[%c1_37, %c0_38, %c0_39] : memref<2x1x32xf32, #tpu.memory_space<vmem>>, vector<1x1x32xf32>
    %133 = vector.shape_cast %132 : vector<1x1x32xf32> to vector<1x32xf32>
    %134 = vector.broadcast %133 : vector<1x32xf32> to vector<18x32xf32>
    %135 = arith.addf %131, %134 : vector<18x32xf32>
    %136 = vector.shape_cast %135 : vector<18x32xf32> to vector<6x3x32xf32>
    %137 = vector.extract_strided_slice %136 {offsets = [0, 0, 0], sizes = [6, 1, 32], strides = [1, 1, 1]} : vector<6x3x32xf32> to vector<6x1x32xf32>
    %138 = vector.shape_cast %137 : vector<6x1x32xf32> to vector<6x32xf32>
    %139 = arith.truncf %138 : vector<6x32xf32> to vector<6x32xbf16>
    %c0_40 = arith.constant 0 : index
    %c0_41 = arith.constant 0 : index
    %140 = vector.load %arg6[%c0_40, %c0_41] : memref<32x32xbf16, #tpu.memory_space<vmem>>, vector<32x32xbf16>
    %cst_42 = arith.constant dense<0.000000e+00> : vector<6x32xf32>
    %141 = tpu.matmul %139, %140, %cst_42 {dimension_numbers = #tpu.dot_dimension_numbers<[1], [0], [0], [1], [0, 0, 1, 1], [], []>} : vector<6x32xbf16>, vector<32x32xbf16>, vector<6x32xf32> -> vector<6x32xf32>
    %c0_43 = arith.constant 0 : index
    %c0_44 = arith.constant 0 : index
    %142 = vector.load %arg7[%c0_43, %c0_44] : memref<1x32xf32, #tpu.memory_space<vmem>>, vector<1x32xf32>
    %143 = vector.broadcast %142 : vector<1x32xf32> to vector<6x32xf32>
    %144 = arith.addf %141, %143 : vector<6x32xf32>
    %145 = math.tanh %144 : vector<6x32xf32>
    %146 = arith.truncf %145 : vector<6x32xf32> to vector<6x32xbf16>
    %c0_45 = arith.constant 0 : index
    %c0_46 = arith.constant 0 : index
    %147 = vector.load %arg8[%c0_45, %c0_46] : memref<32x128xbf16, #tpu.memory_space<vmem>>, vector<32x128xbf16>
    %cst_47 = arith.constant dense<0.000000e+00> : vector<6x128xf32>
    %148 = tpu.matmul %146, %147, %cst_47 {dimension_numbers = #tpu.dot_dimension_numbers<[1], [0], [0], [1], [0, 0, 1, 1], [], []>} : vector<6x32xbf16>, vector<32x128xbf16>, vector<6x128xf32> -> vector<6x128xf32>
    %c0_48 = arith.constant 0 : index
    %c0_49 = arith.constant 0 : index
    %149 = vector.load %arg9[%c0_48, %c0_49] : memref<1x128xf32, #tpu.memory_space<vmem>>, vector<1x128xf32>
    %150 = vector.broadcast %149 : vector<1x128xf32> to vector<6x128xf32>
    %151 = arith.addf %148, %150 : vector<6x128xf32>
    %152 = vector.shape_cast %151 : vector<6x128xf32> to vector<2x3x128xf32>
    %cst_50 = arith.constant dense<0.000000e+00> : vector<2x128xf32>
    %153 = vector.multi_reduction <add>, %152, %cst_50 [1] : vector<2x3x128xf32> to vector<2x128xf32>
    %cst_51 = arith.constant 3.000000e+00 : f32
    %154 = vector.broadcast %cst_51 : f32 to vector<2x128xf32>
    %155 = arith.divf %153, %154 : vector<2x128xf32>
    %cst_52 = arith.constant 5.000000e-01 : f32
    %156 = vector.broadcast %cst_52 : f32 to vector<2x128xf32>
    %157 = arith.mulf %155, %156 : vector<2x128xf32>
    %c0_53 = arith.constant 0 : index
    %c0_54 = arith.constant 0 : index
    %c0_55 = arith.constant 0 : index
    %158 = vector.load %arg10[%c0_53, %c0_54, %c0_55] : memref<1x2x128xf32, #tpu.memory_space<vmem>>, vector<1x2x128xf32>
    %159 = vector.shape_cast %158 : vector<1x2x128xf32> to vector<2x128xf32>
    %cst_56 = arith.constant 5.000000e-01 : f32
    %160 = vector.broadcast %cst_56 : f32 to vector<2x128xf32>
    %161 = arith.mulf %159, %160 : vector<2x128xf32>
    %162 = arith.addf %157, %161 : vector<2x128xf32>
    %c0_57 = arith.constant 0 : index
    %c0_58 = arith.constant 0 : index
    %c0_59 = arith.constant 0 : index
    %163 = vector.load %arg11[%c0_57, %c0_58, %c0_59] : memref<1x2x128xf32, #tpu.memory_space<vmem>>, vector<1x2x128xf32>
    %164 = vector.shape_cast %163 : vector<1x2x128xf32> to vector<2x128xf32>
    %165 = vector.shape_cast %162 : vector<2x128xf32> to vector<1x2x128xf32>
    tpu.vector_store %arg11[%c0_57, %c0_58, %c0_59], %165 {strides = array<i32>} : memref<1x2x128xf32, #tpu.memory_space<vmem>>, vector<1x2x128xf32>,
    return
  }
  func.func @transform_0(%arg0: i32) -> (i32, i32, i32) {
    %c0_i32 = arith.constant 0 : i32
    %c0_i32_0 = arith.constant 0 : i32
    %c0_i32_1 = arith.constant 0 : i32
    return %arg0, %c0_i32, %c0_i32_0 : i32, i32, i32
  }
  func.func @transform_1(%arg0: i32) -> (i32, i32, i32) {
    %c0_i32 = arith.constant 0 : i32
    %c0_i32_0 = arith.constant 0 : i32
    %c0_i32_1 = arith.constant 0 : i32
    %c0_i32_2 = arith.constant 0 : i32
    return %c0_i32, %c0_i32_0, %c0_i32_1 : i32, i32, i32
  }
  func.func @transform_2(%arg0: i32) -> (i32, i32, i32) {
    %c0_i32 = arith.constant 0 : i32
    %c0_i32_0 = arith.constant 0 : i32
    %c0_i32_1 = arith.constant 0 : i32
    %c0_i32_2 = arith.constant 0 : i32
    return %c0_i32, %c0_i32_0, %c0_i32_1 : i32, i32, i32
  }
  func.func @transform_3(%arg0: i32) -> (i32, i32, i32) {
    %c0_i32 = arith.constant 0 : i32
    %c0_i32_0 = arith.constant 0 : i32
    %c0_i32_1 = arith.constant 0 : i32
    %c0_i32_2 = arith.constant 0 : i32
    return %c0_i32, %c0_i32_0, %c0_i32_1 : i32, i32, i32
  }
  func.func @transform_4(%arg0: i32) -> (i32, i32, i32) {
    %c0_i32 = arith.constant 0 : i32
    %c0_i32_0 = arith.constant 0 : i32
    %c0_i32_1 = arith.constant 0 : i32
    %c0_i32_2 = arith.constant 0 : i32
    return %c0_i32, %c0_i32_0, %c0_i32_1 : i32, i32, i32
  }
  func.func @transform_5(%arg0: i32) -> (i32, i32) {
    %c0_i32 = arith.constant 0 : i32
    %c0_i32_0 = arith.constant 0 : i32
    %c0_i32_1 = arith.constant 0 : i32
    return %c0_i32, %c0_i32_0 : i32, i32
  }
  func.func @transform_6(%arg0: i32) -> (i32, i32) {
    %c0_i32 = arith.constant 0 : i32
    %c0_i32_0 = arith.constant 0 : i32
    %c0_i32_1 = arith.constant 0 : i32
    return %c0_i32, %c0_i32_0 : i32, i32
  }
  func.func @transform_7(%arg0: i32) -> (i32, i32) {
    %c0_i32 = arith.constant 0 : i32
    %c0_i32_0 = arith.constant 0 : i32
    %c0_i32_1 = arith.constant 0 : i32
    return %c0_i32, %c0_i32_0 : i32, i32
  }
  func.func @transform_8(%arg0: i32) -> (i32, i32) {
    %c0_i32 = arith.constant 0 : i32
    %c0_i32_0 = arith.constant 0 : i32
    %c0_i32_1 = arith.constant 0 : i32
    return %c0_i32, %c0_i32_0 : i32, i32
  }
  func.func @transform_9(%arg0: i32) -> (i32, i32, i32) {
    %c0_i32 = arith.constant 0 : i32
    %c0_i32_0 = arith.constant 0 : i32
    %c0_i32_1 = arith.constant 0 : i32
    return %arg0, %c0_i32, %c0_i32_0 : i32, i32, i32
  }
  func.func @transform_10(%arg0: i32) -> (i32, i32, i32) {
    %c0_i32 = arith.constant 0 : i32
    %c0_i32_0 = arith.constant 0 : i32
    %c0_i32_1 = arith.constant 0 : i32
    return %arg0, %c0_i32, %c0_i32_0 : i32, i32, i32
  }
}

</mosaic_0001>

<bundles_post_ra>
// kernel: custom-call
= control target key start
LH: loop header
LB: loop body
LE: loop exit
PB: predicated region body
PF: predicated region fallthrough
CT: control target
= control target key end

     0   :  { %v1125_v0 = vmov 2147483648   ;;  %v1126_v1 = vmov 2147483647   ;;  %s1256_s0 = inlined_call_operand.vmem [shape: f32[2,2048], index: 0, kind: input, shape index: {}]   ;;  %s1257_s1 = inlined_call_operand.vmem [shape: f32[2,3], index: 1, kind: output, shape index: {0}]   ;;  %s1258_s2 = inlined_call_operand.vmem [shape: s32[2,3], index: 2, kind: output, shape index: {1}]  }
   0x1   :  { %6 = vst [vmem:[#allocation11] sm:$0xff] %v1125_v0  ;;  %7 = vst [vmem:[#allocation13] sm:$0xff] %v1126_v1 }
   0x2   :  { %v37_v2 = vlaneseq  ;;  %v24_v3 = vld [vmem:[%s1256_s0] sm:$0xff]  ;;  %v1127_v4 = vmov 2147483648   ;;  %v1128_v5 = vmov 2147483647   ;;  %v26_v6 = vld [vmem:[%s1256_s0 + $0x8] sm:$0xff]  ;;  %v28_v7 = vld [vmem:[%s1256_s0 + $0x10] sm:$0xff] }
   0x3   :  { %102 = vst [vmem:[#allocation12] sm:$0xff] %v1127_v4  ;;  %103 = vst [vmem:[#allocation14] sm:$0xff] %v1128_v5  ;;  %v30_v8 = vld [vmem:[%s1256_s0 + $0x18] sm:$0xff]  ;;  %vm47_vm0 = vcmp.lt.s32.totalorder %v24_v3, 0  ;;  %v48_v12 = vsub.s32 2147483647, %v24_v3 }
   0x4   :  { %v1162_v9 = vshrl.u32 %v37_v2, 7  ;;  %v38_v10 = vand.u32 127, %v37_v2  ;;  %v57_v13 = vsub.s32 2147483647, %v26_v6  ;;  %v66_v14 = vsub.s32 2147483647, %v28_v7 }
   0x5   :  { %v75_v15 = vsub.s32 2147483647, %v30_v8  ;;  %vm56_vm1 = vcmp.lt.s32.totalorder %v26_v6, 0  ;;  %vm65_vm2 = vcmp.lt.s32.totalorder %v28_v7, 0  ;;  %vm74_vm3 = vcmp.lt.s32.totalorder %v30_v8, 0  ;;  %s1166_s0 = smov 0  }
   0x6   :  { %v41_v11 = vshrl.u32 %v1162_v9, 1  ;;  %v49_v18 = vsel %vm47_vm0, %v48_v12, %v24_v3  ;;  %v58_v19 = vsel %vm56_vm1, %v57_v13, %v26_v6  ;;  %v67_v20 = vsel %vm65_vm2, %v66_v14, %v28_v7 }
   0x7   :  { %v76_v21 = vsel %vm74_vm3, %v75_v15, %v30_v8 }
   0x8   :  { %v43_v16 = vmul.u32 128, %v41_v11 }
   0xa   :  { %v44_v17 = vadd.s32 %v43_v16, %v38_v10 }
   0xc   :  { %vm51_vm4 = vcmp.lt.s32.totalorder %v44_v17, 2048  ;;  %v59_v22 = vadd.s32 512, %v44_v17  ;;  %v68_v23 = vadd.s32 1024, %v44_v17  ;;  %v77_v24 = vadd.s32 1536, %v44_v17  ;;  %91 = vst [vmem:[#allocation16] sm:$0xff] %v44_v17 }
   0xd   :  { %v52_v25 = vsel %vm51_vm4, %v49_v18, 2147483648 }
   0xe   :  { %53 = vst [vmem:[#allocation15] sm:$0xff] %v52_v25  ;;  %vm60_vm5 = vcmp.lt.s32.totalorder %v59_v22, 2048  ;;  %vm69_vm6 = vcmp.lt.s32.totalorder %v68_v23, 2048  ;;  %vm78_vm7 = vcmp.lt.s32.totalorder %v77_v24, 2048  ;;  %94 = vst [vmem:[#allocation16 + $0x8] sm:$0xff] %v59_v22 }
   0xf   :  { %97 = vst [vmem:[#allocation16 + $0x10] sm:$0xff] %v68_v23  ;;  %100 = vst [vmem:[#allocation16 + $0x18] sm:$0xff] %v77_v24  ;;  %v61_v26 = vsel %vm60_vm5, %v58_v19, 2147483648  ;;  %v70_v27 = vsel %vm69_vm6, %v67_v20, 2147483648  ;;  %v79_v28 = vsel %vm78_vm7, %v76_v21, 2147483648 }
  0x10   :  { %62 = vst [vmem:[#allocation15 + $0x8] sm:$0xff] %v61_v26  ;;  %71 = vst [vmem:[#allocation15 + $0x10] sm:$0xff] %v70_v27 }
  0x11   :  { %80 = vst [vmem:[#allocation15 + $0x18] sm:$0xff] %v79_v28 }
  0x12 LB: > { %s463_s17 = scalar_lea.vmem [#allocation12], %s1123_s0  ;;  %s465_s18 = scalar_lea.vmem [#allocation14], %s1123_s0  ;;  %s1123_s0 = sphi %s1166_s0, %s110_s0  }
  0x13   : > { %v112_v30 = vld [vmem:[#allocation16] sm:$0xff]  ;;  %s110_s0 = sadd.s32 1, %s1123_s0  }
  0x14   : > { %p107_p2 = scmp.ge.s32.totalorder %s110_s0, 3  }
  0x15   : > { %v111_v29 = vld [vmem:[#allocation15] sm:$0xff]  ;;  %v117_v32 = vld [vmem:[#allocation16 + $0x8] sm:$0xff] }
  0x16   : > { %vm121_vm10 = vcmp.lt.s32.totalorder %v117_v32, %v112_v30  ;;  %v130_v34 = vld [vmem:[#allocation16 + $0x10] sm:$0xff]  ;;  %v143_v38 = vld [vmem:[#allocation16 + $0x18] sm:$0xff] }
  0x17   : > { %v115_v31 = vld [vmem:[#allocation15 + $0x8] sm:$0xff]  ;;  %v128_v33 = vld [vmem:[#allocation15 + $0x10] sm:$0xff] }
  0x18   : > { %vm119_vm8 = vcmp.gt.s32.totalorder %v115_v31, %v111_v29  ;;  %vm120_vm9 = vcmp.eq.s32.totalorder %v115_v31, %v111_v29  ;;  %v141_v37 = vld [vmem:[#allocation15 + $0x18] sm:$0xff] }
  0x19   : > { %vm122_vm11 = vmand %vm120_vm9, %vm121_vm10 }
  0x1a   : > { %vm123_vm12 = vmor %vm119_vm8, %vm122_vm11 }
  0x1b   : > { %v124_v35 = vsel %vm123_vm12, %v115_v31, %v111_v29  ;;  %v125_v36 = vsel %vm123_vm12, %v117_v32, %v112_v30 }
  0x1c   : > { %vm132_vm13 = vcmp.gt.s32.totalorder %v128_v33, %v124_v35  ;;  %vm133_vm14 = vcmp.eq.s32.totalorder %v128_v33, %v124_v35  ;;  %vm134_vm15 = vcmp.lt.s32.totalorder %v130_v34, %v125_v36 }
  0x1d   : > { %vm135_vm0 = vmand %vm133_vm14, %vm134_vm15 }
  0x1e   : > { %vm136_vm1 = vmor %vm132_vm13, %vm135_vm0 }
  0x1f   : > { %v137_v39 = vsel %vm136_vm1, %v128_v33, %v124_v35  ;;  %v138_v40 = vsel %vm136_vm1, %v130_v34, %v125_v36 }
  0x20   : > { %vm145_vm2 = vcmp.gt.s32.totalorder %v141_v37, %v137_v39  ;;  %vm146_vm3 = vcmp.eq.s32.totalorder %v141_v37, %v137_v39  ;;  %vm147_vm4 = vcmp.lt.s32.totalorder %v143_v38, %v138_v40 }
  0x21   : > { %vm148_vm5 = vmand %vm146_vm3, %vm147_vm4 }
  0x22   : > { %vm149_vm6 = vmor %vm145_vm2, %vm148_vm5 }
  0x23   : > { %v150_v41 = vsel %vm149_vm6, %v141_v37, %v137_v39  ;;  %v151_v42 = vsel %vm149_vm6, %v143_v38, %v138_v40 }
  0x24   : > { %v153_v43 = vrot.slane %v150_v41, 2  ;;  %v154_v44 = vrot.slane %v151_v42, 2 }
  0x26   : > { %vm156_vm7 = vcmp.gt.s32.totalorder %v153_v43, %v150_v41  ;;  %vm157_vm8 = vcmp.eq.s32.totalorder %v153_v43, %v150_v41  ;;  %vm158_vm9 = vcmp.lt.s32.totalorder %v154_v44, %v151_v42 }
  0x27   : > { %vm159_vm10 = vmand %vm157_vm8, %vm158_vm9 }
  0x28   : > { %vm160_vm11 = vmor %vm156_vm7, %vm159_vm10 }
  0x29   : > { %v161_v45 = vsel %vm160_vm11, %v153_v43, %v150_v41  ;;  %v162_v46 = vsel %vm160_vm11, %v154_v44, %v151_v42 }
  0x2a   : > { %v164_v47 = vrot.slane %v161_v45, 2  ;;  %v165_v48 = vrot.slane %v162_v46, 2 }
  0x2c   : > { %vm167_vm12 = vcmp.gt.s32.totalorder %v164_v47, %v161_v45  ;;  %vm168_vm13 = vcmp.eq.s32.totalorder %v164_v47, %v161_v45  ;;  %vm169_vm14 = vcmp.lt.s32.totalorder %v165_v48, %v162_v46 }
  0x2d   : > { %vm170_vm15 = vmand %vm168_vm13, %vm169_vm14 }
  0x2e   : > { %vm171_vm0 = vmor %vm167_vm12, %vm170_vm15 }
  0x2f   : > { %v172_v49 = vsel %vm171_vm0, %v164_v47, %v161_v45  ;;  %v173_v50 = vsel %vm171_vm0, %v165_v48, %v162_v46 }
  0x30   : > { %v175_v51 = vrot.slane %v172_v49, 2  ;;  %v176_v52 = vrot.slane %v173_v50, 2 }
  0x32   : > { %vm178_vm1 = vcmp.gt.s32.totalorder %v175_v51, %v172_v49  ;;  %vm179_vm2 = vcmp.eq.s32.totalorder %v175_v51, %v172_v49  ;;  %vm180_vm3 = vcmp.lt.s32.totalorder %v176_v52, %v173_v50 }
  0x33   : > { %vm181_vm4 = vmand %vm179_vm2, %vm180_vm3 }
  0x34   : > { %vm182_vm5 = vmor %vm178_vm1, %vm181_vm4 }
  0x35   : > { %v184_v53 = vsel %vm182_vm5, %v176_v52, %v173_v50  ;;  %v183_v54 = vsel %vm182_vm5, %v175_v51, %v172_v49 }
  0x36   : > { %218 = vxpose.xlu1.b32.start [1/16] %v184_v53, 128  ;;  %186 = vxpose.xlu0.b32.start [1/16] %v183_v54, 128 }
  0x3a   : > { %219 = vxpose.xlu1.b32.cont [2/16] %v184_v53, 128  ;;  %187 = vxpose.xlu0.b32.cont [2/16] %v183_v54, 128 }
  0x3e   : > { %220 = vxpose.xlu1.b32.cont [3/16] %v184_v53, 128  ;;  %188 = vxpose.xlu0.b32.cont [3/16] %v183_v54, 128 }
  0x42   : > { %221 = vxpose.xlu1.b32.cont [4/16] %v184_v53, 128  ;;  %189 = vxpose.xlu0.b32.cont [4/16] %v183_v54, 128 }
  0x46   : > { %222 = vxpose.xlu1.b32.cont [5/16] %v184_v53, 128  ;;  %190 = vxpose.xlu0.b32.cont [5/16] %v183_v54, 128 }
  0x4a   : > { %223 = vxpose.xlu1.b32.cont [6/16] %v184_v53, 128  ;;  %191 = vxpose.xlu0.b32.cont [6/16] %v183_v54, 128 }
  0x4e   : > { %224 = vxpose.xlu1.b32.cont [7/16] %v184_v53, 128  ;;  %192 = vxpose.xlu0.b32.cont [7/16] %v183_v54, 128 }
  0x52   : > { %225 = vxpose.xlu1.b32.cont [8/16] %v184_v53, 128  ;;  %193 = vxpose.xlu0.b32.cont [8/16] %v183_v54, 128 }
  0x56   : > { %226 = vxpose.xlu1.b32.cont [9/16] %v184_v53, 128  ;;  %194 = vxpose.xlu0.b32.cont [9/16] %v183_v54, 128 }
  0x5a   : > { %227 = vxpose.xlu1.b32.cont [10/16] %v184_v53, 128  ;;  %195 = vxpose.xlu0.b32.cont [10/16] %v183_v54, 128 }
  0x5e   : > { %228 = vxpose.xlu1.b32.cont [11/16] %v184_v53, 128  ;;  %196 = vxpose.xlu0.b32.cont [11/16] %v183_v54, 128 }
  0x62   : > { %229 = vxpose.xlu1.b32.cont [12/16] %v184_v53, 128  ;;  %197 = vxpose.xlu0.b32.cont [12/16] %v183_v54, 128 }
  0x66   : > { %230 = vxpose.xlu1.b32.cont [13/16] %v184_v53, 128  ;;  %198 = vxpose.xlu0.b32.cont [13/16] %v183_v54, 128 }
  0x6a   : > { %231 = vxpose.xlu1.b32.cont [14/16] %v184_v53, 128  ;;  %199 = vxpose.xlu0.b32.cont [14/16] %v183_v54, 128 }
  0x6e   : > { %232 = vxpose.xlu1.b32.cont [15/16] %v184_v53, 128  ;;  %200 = vxpose.xlu0.b32.cont [15/16] %v183_v54, 128 }
  0x72   : > { %233 = vxpose.xlu1.b32.end [16/16] %v184_v53, 128  ;;  %201 = vxpose.xlu0.b32.end [16/16] %v183_v54, 128 }
  0xb6   : > { %v234_v55 = vpop.trf.xlu1  ;;  %v202_v56 = vpop.trf.xlu0 }
  0xba   : > { %v235_v57 = vpop.trf.xlu1  ;;  %v203_v58 = vpop.trf.xlu0 }
  0xbb   : > { %vm254_vm6 = vcmp.lt.s32.totalorder %v235_v57, %v234_v55  ;;  %vm252_vm7 = vcmp.gt.s32.totalorder %v203_v58, %v202_v56  ;;  %vm253_vm8 = vcmp.eq.s32.totalorder %v203_v58, %v202_v56 }
  0xbc   : > { %vm255_vm9 = vmand %vm253_vm8, %vm254_vm6 }
  0xbd   : > { %vm256_vm10 = vmor %vm252_vm7, %vm255_vm9 }
  0xbe   : > { %v257_v59 = vsel %vm256_vm10, %v203_v58, %v202_v56  ;;  %v236_v60 = vpop.trf.xlu1  ;;  %v258_v61 = vsel %vm256_vm10, %v235_v57, %v234_v55  ;;  %v204_v62 = vpop.trf.xlu0 }
  0xbf   : > { %vm263_vm11 = vcmp.lt.s32.totalorder %v236_v60, %v258_v61  ;;  %vm261_vm12 = vcmp.gt.s32.totalorder %v204_v62, %v257_v59  ;;  %vm262_vm13 = vcmp.eq.s32.totalorder %v204_v62, %v257_v59 }
  0xc0   : > { %vm264_vm14 = vmand %vm262_vm13, %vm263_vm11 }
  0xc1   : > { %vm265_vm15 = vmor %vm261_vm12, %vm264_vm14 }
  0xc2   : > { %v266_v63 = vsel %vm265_vm15, %v204_v62, %v257_v59  ;;  %v237_v0 = vpop.trf.xlu1  ;;  %v267_v1 = vsel %vm265_vm15, %v236_v60, %v258_v61  ;;  %v205_v3 = vpop.trf.xlu0 }
  0xc3   : > { %vm272_vm0 = vcmp.lt.s32.totalorder %v237_v0, %v267_v1  ;;  %vm270_vm1 = vcmp.gt.s32.totalorder %v205_v3, %v266_v63  ;;  %vm271_vm2 = vcmp.eq.s32.totalorder %v205_v3, %v266_v63 }
  0xc4   : > { %vm273_vm3 = vmand %vm271_vm2, %vm272_vm0 }
  0xc5   : > { %vm274_vm4 = vmor %vm270_vm1, %vm273_vm3 }
  0xc6   : > { %v275_v4 = vsel %vm274_vm4, %v205_v3, %v266_v63  ;;  %v238_v5 = vpop.trf.xlu1  ;;  %v276_v6 = vsel %vm274_vm4, %v237_v0, %v267_v1  ;;  %v206_v7 = vpop.trf.xlu0 }
  0xc7   : > { %vm281_vm5 = vcmp.lt.s32.totalorder %v238_v5, %v276_v6  ;;  %vm279_vm6 = vcmp.gt.s32.totalorder %v206_v7, %v275_v4  ;;  %vm280_vm7 = vcmp.eq.s32.totalorder %v206_v7, %v275_v4 }
  0xc8   : > { %vm282_vm8 = vmand %vm280_vm7, %vm281_vm5 }
  0xc9   : > { %vm283_vm9 = vmor %vm279_vm6, %vm282_vm8 }
  0xca   : > { %v284_v8 = vsel %vm283_vm9, %v206_v7, %v275_v4  ;;  %v239_v10 = vpop.trf.xlu1  ;;  %v285_v11 = vsel %vm283_vm9, %v238_v5, %v276_v6  ;;  %v207_v12 = vpop.trf.xlu0 }
  0xcb   : > { %vm290_vm10 = vcmp.lt.s32.totalorder %v239_v10, %v285_v11  ;;  %vm288_vm11 = vcmp.gt.s32.totalorder %v207_v12, %v284_v8  ;;  %vm289_vm12 = vcmp.eq.s32.totalorder %v207_v12, %v284_v8 }
  0xcc   : > { %vm291_vm13 = vmand %vm289_vm12, %vm290_vm10 }
  0xcd   : > { %vm292_vm14 = vmor %vm288_vm11, %vm291_vm13 }
  0xce   : > { %v293_v13 = vsel %vm292_vm14, %v207_v12, %v284_v8  ;;  %v240_v14 = vpop.trf.xlu1  ;;  %v294_v15 = vsel %vm292_vm14, %v239_v10, %v285_v11  ;;  %v208_v16 = vpop.trf.xlu0 }
  0xcf   : > { %vm299_vm15 = vcmp.lt.s32.totalorder %v240_v14, %v294_v15  ;;  %vm297_vm0 = vcmp.gt.s32.totalorder %v208_v16, %v293_v13  ;;  %vm298_vm1 = vcmp.eq.s32.totalorder %v208_v16, %v293_v13 }
  0xd0   : > { %vm300_vm2 = vmand %vm298_vm1, %vm299_vm15 }
  0xd1   : > { %vm301_vm3 = vmor %vm297_vm0, %vm300_vm2 }
  0xd2   : > { %v302_v17 = vsel %vm301_vm3, %v208_v16, %v293_v13  ;;  %v241_v18 = vpop.trf.xlu1  ;;  %v303_v19 = vsel %vm301_vm3, %v240_v14, %v294_v15  ;;  %v209_v20 = vpop.trf.xlu0 }
  0xd3   : > { %vm308_vm4 = vcmp.lt.s32.totalorder %v241_v18, %v303_v19  ;;  %vm306_vm5 = vcmp.gt.s32.totalorder %v209_v20, %v302_v17  ;;  %vm307_vm6 = vcmp.eq.s32.totalorder %v209_v20, %v302_v17 }
  0xd4   : > { %vm309_vm7 = vmand %vm307_vm6, %vm308_vm4 }
  0xd5   : > { %vm310_vm8 = vmor %vm306_vm5, %vm309_vm7 }
  0xd6   : > { %v311_v21 = vsel %vm310_vm8, %v209_v20, %v302_v17  ;;  %v242_v22 = vpop.trf.xlu1  ;;  %v312_v23 = vsel %vm310_vm8, %v241_v18, %v303_v19  ;;  %v210_v24 = vpop.trf.xlu0 }
  0xd7   : > { %vm317_vm9 = vcmp.lt.s32.totalorder %v242_v22, %v312_v23  ;;  %vm315_vm10 = vcmp.gt.s32.totalorder %v210_v24, %v311_v21  ;;  %vm316_vm11 = vcmp.eq.s32.totalorder %v210_v24, %v311_v21 }
  0xd8   : > { %vm318_vm12 = vmand %vm316_vm11, %vm317_vm9 }
  0xd9   : > { %vm319_vm13 = vmor %vm315_vm10, %vm318_vm12 }
  0xda   : > { %v320_v25 = vsel %vm319_vm13, %v210_v24, %v311_v21  ;;  %v243_v26 = vpop.trf.xlu1  ;;  %v321_v27 = vsel %vm319_vm13, %v242_v22, %v312_v23  ;;  %v211_v28 = vpop.trf.xlu0  ;;  %v1129_v24 = vmov 2147483648  }
  0xdb   : > { %vm326_vm14 = vcmp.lt.s32.totalorder %v243_v26, %v321_v27  ;;  %vm324_vm15 = vcmp.gt.s32.totalorder %v211_v28, %v320_v25  ;;  %vm325_vm0 = vcmp.eq.s32.totalorder %v211_v28, %v320_v25 }
  0xdc   : > { %vm327_vm1 = vmand %vm325_vm0, %vm326_vm14 }
  0xdd   : > { %vm328_vm2 = vmor %vm324_vm15, %vm327_vm1 }
  0xde   : > { %v329_v29 = vsel %vm328_vm2, %v211_v28, %v320_v25  ;;  %v244_v30 = vpop.trf.xlu1  ;;  %v330_v31 = vsel %vm328_vm2, %v243_v26, %v321_v27  ;;  %v212_v32 = vpop.trf.xlu0  ;;  %v1130_v25 = vmov 2147483647  }
  0xdf   : > { %vm335_vm3 = vcmp.lt.s32.totalorder %v244_v30, %v330_v31  ;;  %vm333_vm4 = vcmp.gt.s32.totalorder %v212_v32, %v329_v29  ;;  %vm334_vm5 = vcmp.eq.s32.totalorder %v212_v32, %v329_v29 }
  0xe0   : > { %vm336_vm6 = vmand %vm334_vm5, %vm335_vm3 }
  0xe1   : > { %vm337_vm7 = vmor %vm333_vm4, %vm336_vm6 }
  0xe2   : > { %v338_v33 = vsel %vm337_vm7, %v212_v32, %v329_v29  ;;  %v245_v34 = vpop.trf.xlu1  ;;  %v339_v35 = vsel %vm337_vm7, %v244_v30, %v330_v31  ;;  %v213_v36 = vpop.trf.xlu0  ;;  %v561_v30 = vld [vmem:[#allocation11] sm:$0xff] (%p107_p2)  ;;  %v562_v31 = vld [vmem:[#allocation13] sm:$0xff] (%p107_p2)  ;;  %v1131_v32 = vmov (%p107_p2), 839939668  }
  0xe3   : > { %vm344_vm8 = vcmp.lt.s32.totalorder %v245_v34, %v339_v35  ;;  %vm342_vm9 = vcmp.gt.s32.totalorder %v213_v36, %v338_v33  ;;  %vm343_vm10 = vcmp.eq.s32.totalorder %v213_v36, %v338_v33 }
  0xe4   : > { %vm345_vm11 = vmand %vm343_vm10, %vm344_vm8 }
  0xe5   : > { %vm346_vm12 = vmor %vm342_vm9, %vm345_vm11 }
  0xe6   : > { %v347_v37 = vsel %vm346_vm12, %v213_v36, %v338_v33  ;;  %v246_v38 = vpop.trf.xlu1  ;;  %v348_v39 = vsel %vm346_vm12, %v245_v34, %v339_v35  ;;  %v214_v40 = vpop.trf.xlu0  ;;  %v586_v33 = vunpack.c.l.s4 (%p107_p2), %v1131_v32  ;;  %v1132_v34 = vmov (%p107_p2), 1417023538  }
  0xe7   : > { %vm353_vm13 = vcmp.lt.s32.totalorder %v246_v38, %v348_v39  ;;  %vm351_vm14 = vcmp.gt.s32.totalorder %v214_v40, %v347_v37  ;;  %vm352_vm15 = vcmp.eq.s32.totalorder %v214_v40, %v347_v37  ;;  %v614_v35 = vunpack.c.l.s4 (%p107_p2), %v1132_v34 }
  0xe8   : > { %vm354_vm0 = vmand %vm352_vm15, %vm353_vm13  ;;  %v587_v36 = vunpack.c.0.s8 (%p107_p2), %v586_v33 }
  0xe9   : > { %vm355_vm1 = vmor %vm351_vm14, %vm354_vm0 }
  0xea   : > { %v356_v41 = vsel %vm355_vm1, %v214_v40, %v347_v37  ;;  %v247_v42 = vpop.trf.xlu1  ;;  %v357_v43 = vsel %vm355_vm1, %v246_v38, %v348_v39  ;;  %v215_v44 = vpop.trf.xlu0  ;;  %v607_v40 = vand.u32 (%p107_p2), 4, %v1162_v9 }
  0xeb   : > { %vm362_vm2 = vcmp.lt.s32.totalorder %v247_v42, %v357_v43  ;;  %vm360_vm3 = vcmp.gt.s32.totalorder %v215_v44, %v356_v41  ;;  %vm361_vm4 = vcmp.eq.s32.totalorder %v215_v44, %v356_v41 }
  0xec   : > { %vm363_vm5 = vmand %vm361_vm4, %vm362_vm2 }
  0xed   : > { %vm364_vm6 = vmor %vm360_vm3, %vm363_vm5 }
  0xee   : > { %v365_v45 = vsel %vm364_vm6, %v215_v44, %v356_v41  ;;  %v248_v46 = vpop.trf.xlu1  ;;  %v366_v47 = vsel %vm364_vm6, %v247_v42, %v357_v43  ;;  %v216_v48 = vpop.trf.xlu0  ;;  %v615_v42 = vunpack.c.0.s8 (%p107_p2), %v614_v35 }
  0xef   : > { %vm371_vm7 = vcmp.lt.s32.totalorder %v248_v46, %v366_v47  ;;  %vm369_vm8 = vcmp.gt.s32.totalorder %v216_v48, %v365_v45  ;;  %vm370_vm9 = vcmp.eq.s32.totalorder %v216_v48, %v365_v45 }
  0xf0   : > { %vm372_vm10 = vmand %vm370_vm9, %vm371_vm7 }
  0xf1   : > { %vm373_vm11 = vmor %vm369_vm8, %vm372_vm10 }
  0xf2   : > { %v374_v49 = vsel %vm373_vm11, %v216_v48, %v365_v45  ;;  %v249_v50 = vpop.trf.xlu1  ;;  %v375_v51 = vsel %vm373_vm11, %v248_v46, %v366_v47  ;;  %v217_v52 = vpop.trf.xlu0  ;;  %v1133_v48 = vmov (%p107_p2), 1732584193  }
  0xf3   : > { %vm380_vm12 = vcmp.lt.s32.totalorder %v249_v50, %v375_v51  ;;  %vm378_vm13 = vcmp.gt.s32.totalorder %v217_v52, %v374_v49  ;;  %vm379_vm14 = vcmp.eq.s32.totalorder %v217_v52, %v374_v49 }
  0xf4   : > { %vm381_vm15 = vmand %vm379_vm14, %vm380_vm12 }
  0xf5   : > { %vm382_vm0 = vmor %vm378_vm13, %vm381_vm15 }
  0xf6   : > { %v383_v53 = vsel %vm382_vm0, %v217_v52, %v374_v49  ;;  %v384_v54 = vsel %vm382_vm0, %v249_v50, %v375_v51  ;;  %v642_v49 = vunpack.c.l.s4 (%p107_p2), %v1133_v48  ;;  %v1191_v50 = vsub.s32 (%p107_p2), %v615_v42, %v1162_v9 }
  0xf7   : > { %v386_v55 = vrot.slane %v383_v53, 1  ;;  %v387_v56 = vrot.slane %v384_v54, 1  ;;  %v635_v51 = vand.u32 (%p107_p2), 2, %v1162_v9 }
  0xf9   : > { %vm389_vm1 = vcmp.gt.s32.totalorder %v386_v55, %v383_v53  ;;  %vm390_vm2 = vcmp.eq.s32.totalorder %v386_v55, %v383_v53  ;;  %vm391_vm3 = vcmp.lt.s32.totalorder %v387_v56, %v384_v54 }
  0xfa   : > { %vm392_vm4 = vmand %vm390_vm2, %vm391_vm3 }
  0xfb   : > { %vm393_vm5 = vmor %vm389_vm1, %vm392_vm4 }
  0xfc   : > { %v394_v57 = vsel %vm393_vm5, %v386_v55, %v383_v53  ;;  %v395_v58 = vsel %vm393_vm5, %v387_v56, %v384_v54  ;;  %v643_v54 = vunpack.c.0.s8 (%p107_p2), %v642_v49 }
  0xfd   : > { %v397_v59 = vrot.slane %v394_v57, 1  ;;  %v398_v60 = vrot.slane %v395_v58, 1 }
  0xff   : > { %vm400_vm6 = vcmp.gt.s32.totalorder %v397_v59, %v394_v57  ;;  %vm401_vm7 = vcmp.eq.s32.totalorder %v397_v59, %v394_v57  ;;  %vm402_vm8 = vcmp.lt.s32.totalorder %v398_v60, %v395_v58 }
 0x100   : > { %vm403_vm9 = vmand %vm401_vm7, %vm402_vm8 }
 0x101   : > { %vm404_vm10 = vmor %vm400_vm6, %vm403_vm9 }
 0x102   : > { %v405_v61 = vsel %vm404_vm10, %v397_v59, %v394_v57  ;;  %v406_v62 = vsel %vm404_vm10, %v398_v60, %v395_v58  ;;  %v1205_v59 = vsub.s32 (%p107_p2), %v643_v54, %v1162_v9 }
 0x103   : > { %v408_v63 = vrot.slane %v405_v61, 1  ;;  %v409_v0 = vrot.slane %v406_v62, 1 }
 0x105   : > { %vm413_vm11 = vcmp.lt.s32.totalorder %v409_v0, %v406_v62  ;;  %vm411_vm12 = vcmp.gt.s32.totalorder %v408_v63, %v405_v61  ;;  %vm412_vm13 = vcmp.eq.s32.totalorder %v408_v63, %v405_v61 }
 0x106   : > { %vm414_vm14 = vmand %vm412_vm13, %vm413_vm11 }
 0x107   : > { %vm415_vm15 = vmor %vm411_vm12, %vm414_vm14 }
 0x108   : > { %v416_v1 = vsel %vm415_vm15, %v408_v63, %v405_v61  ;;  %v417_v3 = vsel %vm415_vm15, %v409_v0, %v406_v62  ;;  %v663_v63 = vand.u32 (%p107_p2), 1, %v1162_v9 }
 0x109   : > { %v419_v4 = vrot.slane %v416_v1, 1  ;;  %v420_v5 = vrot.slane %v417_v3, 1 }
 0x10b   : > { %vm422_vm0 = vcmp.gt.s32.totalorder %v419_v4, %v416_v1  ;;  %vm423_vm1 = vcmp.eq.s32.totalorder %v419_v4, %v416_v1  ;;  %vm424_vm2 = vcmp.lt.s32.totalorder %v420_v5, %v417_v3 }
 0x10c   : > { %vm425_vm3 = vmand %vm423_vm1, %vm424_vm2 }
 0x10d   : > { %vm426_vm4 = vmor %vm422_vm0, %vm425_vm3 }
 0x10e   : > { %v427_v6 = vsel %vm426_vm4, %v419_v4, %v416_v1  ;;  %v428_v7 = vsel %vm426_vm4, %v420_v5, %v417_v3 }
 0x10f   : > { %v430_v8 = vrot.slane %v427_v6, 1  ;;  %v431_v10 = vrot.slane %v428_v7, 1 }
 0x111   : > { %vm433_vm5 = vcmp.gt.s32.totalorder %v430_v8, %v427_v6  ;;  %vm434_vm6 = vcmp.eq.s32.totalorder %v430_v8, %v427_v6  ;;  %vm435_vm7 = vcmp.lt.s32.totalorder %v431_v10, %v428_v7 }
 0x112   : > { %vm436_vm8 = vmand %vm434_vm6, %vm435_vm7 }
 0x113   : > { %vm437_vm9 = vmor %vm433_vm5, %vm436_vm8 }
 0x114   : > { %v438_v11 = vsel %vm437_vm9, %v430_v8, %v427_v6  ;;  %v439_v12 = vsel %vm437_vm9, %v431_v10, %v428_v7 }
 0x115   : > { %v441_v13 = vrot.slane %v438_v11, 1  ;;  %v442_v14 = vrot.slane %v439_v12, 1 }
 0x117   : > { %vm444_vm10 = vcmp.gt.s32.totalorder %v441_v13, %v438_v11  ;;  %vm445_vm11 = vcmp.eq.s32.totalorder %v441_v13, %v438_v11  ;;  %vm446_vm12 = vcmp.lt.s32.totalorder %v442_v14, %v439_v12 }
 0x118   : > { %vm447_vm13 = vmand %vm445_vm11, %vm446_vm12  ;;  %vm1185_vm11 = vcmp.ne.s32.totalorder (%p107_p2), %v607_v40, 0 }
 0x119   : > { %vm448_vm14 = vmor %vm444_vm10, %vm447_vm13 }
 0x11a   : > { %v449_v15 = vsel %vm448_vm14, %v441_v13, %v438_v11  ;;  %v450_v16 = vsel %vm448_vm14, %v442_v14, %v439_v12 }
 0x11b   : > { %v452_v17 = vrot.slane %v449_v15, 1  ;;  %v453_v18 = vrot.slane %v450_v16, 1 }
 0x11d   : > { %vm455_vm15 = vcmp.gt.s32.totalorder %v452_v17, %v449_v15  ;;  %vm456_vm0 = vcmp.eq.s32.totalorder %v452_v17, %v449_v15  ;;  %vm457_vm1 = vcmp.lt.s32.totalorder %v453_v18, %v450_v16 }
 0x11e   : > { %vm458_vm2 = vmand %vm456_vm0, %vm457_vm1 }
 0x11f   : > { %vm459_vm3 = vmor %vm455_vm15, %vm458_vm2 }
 0x120   : > { %v461_v19 = vsel %vm459_vm3, %v453_v18, %v450_v16  ;;  %v460_v20 = vsel %vm459_vm3, %v452_v17, %v449_v15 }
 0x121   : > { %468 = vxpose.xlu0.b32.start.end [1/1] (short) (narrow) %v461_v19, 8  ;;  %464 = vst [vmem:[%s463_s17] sm:$0x1] %v460_v20  ;;  %466 = vst [vmem:[%s465_s18] sm:$0x1] %v461_v19 }
 0x128   :  { %v549_v28 = vld [vmem:[#allocation12 + $0x7] ss:$-1 sm:$0xff] (%p107_p2)  ;;  %v555_v29 = vld [vmem:[#allocation14 + $0x7] ss:$-1 sm:$0xff] (%p107_p2) }
 0x129   :  { %vm567_vm6 = vcmp.gt.s32.totalorder (%p107_p2), %v561_v30, %v549_v28  ;;  %vm568_vm7 = vcmp.eq.s32.totalorder (%p107_p2), %v561_v30, %v549_v28  ;;  %vm569_vm8 = vcmp.lt.s32.totalorder (%p107_p2), %v562_v31, %v555_v29 }
 0x12a   :  { %vm570_vm9 = vmand (%p107_p2), %vm568_vm7, %vm569_vm8  ;;  %vm1198_vm7 = vcmp.ne.s32.totalorder (%p107_p2), %v635_v51, 0 }
 0x12b   :  { %vm571_vm10 = vmor (%p107_p2), %vm567_vm6, %vm570_vm9 }
 0x12c   :  { %v572_v37 = vsel (%p107_p2), %vm571_vm10, %v561_v30, %v549_v28  ;;  %v574_v38 = vsel (%p107_p2), %vm571_vm10, %v549_v28, %v561_v30  ;;  %v576_v39 = vsel (%p107_p2), %vm571_vm10, %v562_v31, %v555_v29  ;;  %v578_v41 = vsel (%p107_p2), %vm571_vm10, %v555_v29, %v562_v31 }
 0x1a1   : > { %v484_v21 = vpop.trf.xlu0 }
 0x1a2   : > { %v523_v22 = vrot.slane %v484_v21, 1  ;;  %1095 = vpush %v484_v21 }
 0x1a4   : > { %1097 = vpush %v523_v22 }
 0x1d3   : > { %s1096_s19 = spop %1095 }
 0x1d4   : > { %s501_s20 = sshrl.u32 %s1096_s19, 9  ;;  %s503_s21 = ssub.s32 0, %s1096_s19 }
 0x1d5   : > { %p502_p0 = scmp.lt.s32.totalorder %s1096_s19, 0  ;;  %s1087_s22 = smin.u32 %s1096_s19, %s503_s21 }
 0x1d6   : > { %s505_s23 = sand.u32 511, %s1087_s22   ;;  %s1089_s24 = sshll.u32 %s501_s20, 3 }
 0x1d7   : > { %s506_s25 = ssub.s32 0, %s505_s23  ;;  %s1098_s26 = spop %1097 }
 0x1d8   : > { %s1266_s25 = smov (!%p502_p0, %s506_s25), %s505_s23  ;;  %s527_s30 = ssub.s32 0, %s1098_s26 }
 0x1d9   : > { %s508_s27 = sshrl.u32 %s1266_s25, 7  ;;  %s510_s28 = sand.u32 127, %s1266_s25  }
 0x1da   : > { %s1088_s29 = sshll.u32 %s508_s27, 8  ;;  %s1091_s4 = smin.u32 %s1098_s26, %s527_s30 }
 0x1db   : > { %s511_s3 = sadd.s32 %s1088_s29, %s510_s28  ;;  %p526_p1 = scmp.lt.s32.totalorder %s1098_s26, 0 }
 0x1dc   : > { %v513_v23 = vstv %s511_s3  ;;  %s529_s5 = sand.u32 511, %s1091_s4   ;;  %s517_s7 = scalar_lea.vmem [#allocation15], %s1089_s24 }
 0x1dd   : > { %vm515_vm4 = vcmp.eq.s32.totalorder %v37_v2, %v513_v23  ;;  %s530_s6 = ssub.s32 0, %s529_s5  ;;  %s520_s8 = scalar_lea.vmem [#allocation16], %s1089_s24 }
 0x1de   : > { %518 = vst.msk [vmem:[%s517_s7] sm:$0xff] %vm515_vm4, %v1129_v24  ;;  %521 = vst.msk [vmem:[%s520_s8] sm:$0xff] %vm515_vm4, %v1130_v25  ;;  %s1268_s6 = smov (!%p526_p1, %s530_s6), %s529_s5  ;;  %s525_s9 = sshrl.u32 %s1098_s26, 9 }
 0x1df   : > { %s532_s10 = sshrl.u32 %s1268_s6, 7  ;;  %s534_s11 = sand.u32 127, %s1268_s6  }
 0x1e0   : > { %s1092_s12 = sshll.u32 %s532_s10, 8  ;;  %s1093_s14 = sshll.u32 %s525_s9, 3 }
 0x1e1   : > { %s535_s13 = sadd.s32 %s1092_s12, %s534_s11  ;;  %s541_s15 = scalar_lea.vmem [#allocation15], %s1093_s14 }
 0x1e2   : > { %v537_v26 = vstv %s535_s13  ;;  %s544_s16 = scalar_lea.vmem [#allocation16], %s1093_s14  ;;  %109 = sbr.rel (!%p107_p2) target bundleno = 18 (0x12), region = 140 }
 0x1e3   : > { %v538_v27 = vadd.s32 128, %v537_v26 }
 0x1e5   : > { %vm539_vm5 = vcmp.eq.s32.totalorder %v37_v2, %v538_v27  ;;  %v1180_v2 = vsub.s32 (%p107_p2), %v587_v36, %v1162_v9 }
 0x1e6   : > { %542 = vst.msk [vmem:[%s541_s15] sm:$0xff] %vm539_vm5, %v1129_v24  ;;  %545 = vst.msk [vmem:[%s544_s16] sm:$0xff] %vm539_vm5, %v1130_v25 }
 0x1e7   :  { %v591_v43 = vrot.slane (%p107_p2), %v572_v37, %v1180_v2  ;;  %v598_v44 = vrot.slane (%p107_p2), %v576_v39, %v1180_v2  ;;  %v772_v45 = vrot.slane (%p107_p2), %v574_v38, %v1180_v2  ;;  %v779_v47 = vrot.slane (%p107_p2), %v578_v41, %v1180_v2 }
 0x1e9   :  { %vm600_vm12 = vcmp.gt.s32.totalorder %v572_v37, %v591_v43  ;;  %vm601_vm13 = vcmp.eq.s32.totalorder %v572_v37, %v591_v43  ;;  %vm602_vm14 = vcmp.lt.s32.totalorder %v576_v39, %v598_v44  ;;  %vm782_vm0 = vcmp.eq.s32.totalorder %v574_v38, %v772_v45 }
 0x1ea   :  { %vm603_vm15 = vmand %vm601_vm13, %vm602_vm14  ;;  %vm783_vm1 = vcmp.lt.s32.totalorder %v578_v41, %v779_v47  ;;  %vm781_vm3 = vcmp.gt.s32.totalorder %v574_v38, %v772_v45 }
 0x1eb   :  { %vm604_vm2 = vmor %vm600_vm12, %vm603_vm15 }
 0x1ec   :  { %vm609_vm4 = vmxor %vm604_vm2, %vm1185_vm11 }
 0x1ed   :  { %v610_v52 = vsel %vm609_vm4, %v572_v37, %v591_v43  ;;  %v611_v53 = vsel %vm609_vm4, %v576_v39, %v598_v44  ;;  %vm784_vm5 = vmand %vm782_vm0, %vm783_vm1 }
 0x1ee   :  { %v619_v55 = vrot.slane %v610_v52, %v1191_v50  ;;  %v626_v56 = vrot.slane %v611_v53, %v1191_v50  ;;  %vm785_vm6 = vmor %vm781_vm3, %vm784_vm5 }
 0x1ef   :  { %vm790_vm8 = vmxor %vm785_vm6, %vm1185_vm11 }
 0x1f0   :  { %vm628_vm9 = vcmp.gt.s32.totalorder %v610_v52, %v619_v55  ;;  %vm629_vm10 = vcmp.eq.s32.totalorder %v610_v52, %v619_v55  ;;  %vm630_vm12 = vcmp.lt.s32.totalorder %v611_v53, %v626_v56  ;;  %v791_v58 = vsel %vm790_vm8, %v574_v38, %v772_v45 }
 0x1f1   :  { %vm631_vm13 = vmand %vm629_vm10, %vm630_vm12  ;;  %v792_v60 = vsel %vm790_vm8, %v578_v41, %v779_v47  ;;  %v800_v61 = vrot.slane %v791_v58, %v1191_v50 }
 0x1f2   :  { %vm632_vm14 = vmor %vm628_vm9, %vm631_vm13  ;;  %v807_v62 = vrot.slane %v792_v60, %v1191_v50  ;;  %vm1214_vm9 = vcmp.ne.s32.totalorder %v663_v63, 0 }
 0x1f3   :  { %vm637_vm15 = vmxor %vm632_vm14, %vm1198_vm7  ;;  %vm809_vm0 = vcmp.gt.s32.totalorder %v791_v58, %v800_v61  ;;  %vm810_vm1 = vcmp.eq.s32.totalorder %v791_v58, %v800_v61 }
 0x1f4   :  { %v638_v0 = vsel %vm637_vm15, %v610_v52, %v619_v55  ;;  %v639_v1 = vsel %vm637_vm15, %v611_v53, %v626_v56  ;;  %vm811_vm2 = vcmp.lt.s32.totalorder %v792_v60, %v807_v62 }
 0x1f5   :  { %v647_v3 = vrot.slane %v638_v0, %v1205_v59  ;;  %v654_v4 = vrot.slane %v639_v1, %v1205_v59  ;;  %vm812_vm3 = vmand %vm810_vm1, %vm811_vm2 }
 0x1f6   :  { %vm813_vm4 = vmor %vm809_vm0, %vm812_vm3 }
 0x1f7   :  { %vm656_vm5 = vcmp.gt.s32.totalorder %v638_v0, %v647_v3  ;;  %vm657_vm6 = vcmp.eq.s32.totalorder %v638_v0, %v647_v3  ;;  %vm658_vm8 = vcmp.lt.s32.totalorder %v639_v1, %v654_v4  ;;  %vm818_vm10 = vmxor %vm813_vm4, %vm1198_vm7 }
 0x1f8   :  { %vm659_vm12 = vmand %vm657_vm6, %vm658_vm8  ;;  %v819_v9 = vsel %vm818_vm10, %v791_v58, %v800_v61  ;;  %v820_v6 = vsel %vm818_vm10, %v792_v60, %v807_v62 }
 0x1f9   :  { %vm660_vm13 = vmor %vm656_vm5, %vm659_vm12  ;;  %v828_v7 = vrot.slane %v819_v9, %v1205_v59  ;;  %v835_v8 = vrot.slane %v820_v6, %v1205_v59 }
 0x1fa   :  { %vm665_vm14 = vmxor %vm660_vm13, %vm1214_vm9 }
 0x1fb   :  { %v666_v10 = vsel %vm665_vm14, %v638_v0, %v647_v3  ;;  %v667_v11 = vsel %vm665_vm14, %v639_v1, %v654_v4  ;;  %vm837_vm15 = vcmp.gt.s32.totalorder %v819_v9, %v828_v7  ;;  %vm838_vm0 = vcmp.eq.s32.totalorder %v819_v9, %v828_v7 }
 0x1fc   :  { %v681_v12 = vrot.slane %v666_v10, %v1180_v2  ;;  %v688_v13 = vrot.slane %v667_v11, %v1180_v2  ;;  %vm839_vm1 = vcmp.lt.s32.totalorder %v820_v6, %v835_v8 }
 0x1fd   :  { %vm840_vm2 = vmand %vm838_vm0, %vm839_vm1 }
 0x1fe   :  { %vm690_vm3 = vcmp.gt.s32.totalorder %v666_v10, %v681_v12  ;;  %vm691_vm4 = vcmp.eq.s32.totalorder %v666_v10, %v681_v12  ;;  %vm692_vm5 = vcmp.lt.s32.totalorder %v667_v11, %v688_v13  ;;  %vm841_vm6 = vmor %vm837_vm15, %vm840_vm2 }
 0x1ff   :  { %vm693_vm8 = vmand %vm691_vm4, %vm692_vm5 }
 0x200   :  { %vm694_vm10 = vmor %vm690_vm3, %vm693_vm8 }
 0x201   :  { %vm699_vm12 = vmxor %vm694_vm10, %vm1185_vm11 }
 0x202   :  { %v700_v14 = vsel %vm699_vm12, %v666_v10, %v681_v12  ;;  %v701_v15 = vsel %vm699_vm12, %v667_v11, %v688_v13  ;;  %vm846_vm13 = vmxor %vm841_vm6, %vm1214_vm9 }
 0x203   :  { %v709_v16 = vrot.slane %v700_v14, %v1191_v50  ;;  %v716_v17 = vrot.slane %v701_v15, %v1191_v50  ;;  %v847_v18 = vsel %vm846_vm13, %v819_v9, %v828_v7  ;;  %v848_v19 = vsel %vm846_vm13, %v820_v6, %v835_v8 }
 0x204   :  { %v862_v20 = vrot.slane %v847_v18, %v1180_v2  ;;  %v869_v21 = vrot.slane %v848_v19, %v1180_v2 }
 0x205   :  { %vm718_vm14 = vcmp.gt.s32.totalorder %v700_v14, %v709_v16  ;;  %vm719_vm15 = vcmp.eq.s32.totalorder %v700_v14, %v709_v16  ;;  %vm720_vm0 = vcmp.lt.s32.totalorder %v701_v15, %v716_v17 }
 0x206   :  { %vm721_vm1 = vmand %vm719_vm15, %vm720_vm0  ;;  %vm872_vm2 = vcmp.eq.s32.totalorder %v847_v18, %v862_v20  ;;  %vm873_vm3 = vcmp.lt.s32.totalorder %v848_v19, %v869_v21  ;;  %vm871_vm5 = vcmp.gt.s32.totalorder %v847_v18, %v862_v20 }
 0x207   :  { %vm722_vm4 = vmor %vm718_vm14, %vm721_vm1 }
 0x208   :  { %vm727_vm6 = vmxor %vm722_vm4, %vm1198_vm7 }
 0x209   :  { %v728_v22 = vsel %vm727_vm6, %v700_v14, %v709_v16  ;;  %v729_v23 = vsel %vm727_vm6, %v701_v15, %v716_v17  ;;  %vm874_vm8 = vmand %vm872_vm2, %vm873_vm3 }
 0x20a   :  { %v737_v24 = vrot.slane %v728_v22, %v1205_v59  ;;  %v744_v25 = vrot.slane %v729_v23, %v1205_v59  ;;  %vm875_vm10 = vmor %vm871_vm5, %vm874_vm8 }
 0x20b   :  { %vm880_vm12 = vmxor %vm875_vm10, %vm1185_vm11 }
 0x20c   :  { %vm746_vm13 = vcmp.gt.s32.totalorder %v728_v22, %v737_v24  ;;  %vm747_vm15 = vcmp.eq.s32.totalorder %v728_v22, %v737_v24  ;;  %vm748_vm0 = vcmp.lt.s32.totalorder %v729_v23, %v744_v25  ;;  %v881_v26 = vsel %vm880_vm12, %v847_v18, %v862_v20 }
 0x20d   :  { %vm749_vm14 = vmand %vm747_vm15, %vm748_vm0  ;;  %v882_v27 = vsel %vm880_vm12, %v848_v19, %v869_v21  ;;  %v890_v28 = vrot.slane %v881_v26, %v1191_v50 }
 0x20e   :  { %vm750_vm1 = vmor %vm746_vm13, %vm749_vm14  ;;  %v897_v29 = vrot.slane %v882_v27, %v1191_v50 }
 0x20f   :  { %vm755_vm2 = vmxor %vm750_vm1, %vm1214_vm9  ;;  %vm899_vm3 = vcmp.gt.s32.totalorder %v881_v26, %v890_v28  ;;  %vm900_vm4 = vcmp.eq.s32.totalorder %v881_v26, %v890_v28 }
 0x210   :  { %v756_v30 = vsel %vm755_vm2, %v728_v22, %v737_v24  ;;  %v757_v31 = vsel %vm755_vm2, %v729_v23, %v744_v25  ;;  %vm901_vm5 = vcmp.lt.s32.totalorder %v882_v27, %v897_v29 }
 0x211   :  { %759 = vst [vmem:[#allocation11] sm:$0xff] %v756_v30  ;;  %760 = vst [vmem:[#allocation13] sm:$0xff] %v757_v31 }
 0x212   :  { %vm902_vm11 = vmand %vm900_vm4, %vm901_vm5 }
 0x213   :  { %vm903_vm6 = vmor %vm899_vm3, %vm902_vm11 }
 0x214   :  { %vm908_vm8 = vmxor %vm903_vm6, %vm1198_vm7 }
 0x215   :  { %v909_v32 = vsel %vm908_vm8, %v881_v26, %v890_v28  ;;  %v910_v33 = vsel %vm908_vm8, %v882_v27, %v897_v29 }
 0x216   :  { %v918_v34 = vrot.slane %v909_v32, %v1205_v59  ;;  %v925_v35 = vrot.slane %v910_v33, %v1205_v59 }
 0x218   :  { %vm927_vm10 = vcmp.gt.s32.totalorder %v909_v32, %v918_v34  ;;  %vm928_vm12 = vcmp.eq.s32.totalorder %v909_v32, %v918_v34  ;;  %vm929_vm13 = vcmp.lt.s32.totalorder %v910_v33, %v925_v35  ;;  %v943_v38 = vld [vmem:[#allocation11] sm:$0xff]  ;;  %v967_v41 = vld [vmem:[#allocation13] sm:$0xff] }
 0x219   :  { %vm930_vm15 = vmand %vm928_vm12, %vm929_vm13  ;;  %vm944_vm7 = vcmp.lt.s32.totalorder %v943_v38, 0  ;;  %v945_v39 = vsub.s32 2147483647, %v943_v38 }
 0x21a   :  { %vm931_vm0 = vmor %vm927_vm10, %vm930_vm15 }
 0x21b   :  { %vm936_vm14 = vmxor %vm931_vm0, %vm1214_vm9  ;;  %v946_v40 = vsel %vm944_vm7, %v945_v39, %v943_v38 }
 0x21c   :  { %v937_v36 = vsel %vm936_vm14, %v909_v32, %v918_v34  ;;  %v938_v37 = vsel %vm936_vm14, %v910_v33, %v925_v35  ;;  %947 = vst [vmem:[#allocation11] sm:$0xff] %v946_v40  ;;  %949 = vxpose.xlu0.b32.start.end [1/1] (short) (narrow) %v946_v40, 8 }
 0x21d   :  { %940 = vst [vmem:[#allocation12] sm:$0xff] %v937_v36  ;;  %941 = vst [vmem:[#allocation14] sm:$0xff] %v938_v37 }
 0x220   :  { %968 = vxpose.xlu0.b32.start.end [1/1] (short) (narrow) %v967_v41, 8 }
 0x29c   :  { %v950_v2 = vpop.trf.xlu0 }
 0x29d   :  { %966 = vst [vmem:[#allocation7] sm:$0xff] %v950_v2 }
 0x2a0   :  { %v969_v42 = vpop.trf.xlu0 }
 0x2a1   :  { %985 = vst [vmem:[#allocation9] sm:$0xff] %v969_v42 }
 0x2a4   :  { %v989_v43 = vld [vmem:[#allocation7] sm:$0x3] }
 0x2a5   :  { %991 = vst [vmem:[#allocation8] sm:$0x3] %v989_v43 }
 0x2a8   :  { %v995_v44 = vld [vmem:[#allocation9] sm:$0x3] }
 0x2a9   :  { %997 = vst [vmem:[#allocation10] sm:$0x3] %v995_v44 }
 0x2ac   :  { %v1013_v45 = vld [vmem:[#allocation8] sm:$0x3] }
 0x2ad   :  { %1014 = vst [vmem:[%s1257_s1] sm:$0x3] %v1013_v45 }
 0x2b0   :  { %v1044_v46 = vld [vmem:[#allocation10] sm:$0x3] }
 0x2b1   :  { %1045 = vst [vmem:[%s1258_s2] sm:$0x3] %v1044_v46 }

// kernel: mea_transformer_forward.2
= control target key start
LH: loop header
LB: loop body
LE: loop exit
PB: predicated region body
PF: predicated region fallthrough
CT: control target
= control target key end

     0   :  { %7 = vsyncpa [#allocation3], 0  ;;  %s728_s9 = smov [#allocation2]   ;;  %s801_s0 = inlined_call_operand.vmem [shape: f32[2,32], index: 0, kind: input, shape index: {}]   ;;  %s802_s1 = inlined_call_operand.hbm [shape: bf16[32,2048], index: 1, kind: input, shape index: {}]   ;;  %s803_s2 = inlined_call_operand.vmem [shape: f32[2,2048], index: 2, kind: output, shape index: {}]  }
   0x1   :  { %s15_s10 = sshll.u32 %s728_s9, 4  ;;  %s704_s13 = scalar_lea.hbm %s802_s1, 4096  ;;  %s16_s10 = int_to_ptr.vmem [resolvable:$true] %s15_s10 }
   0x2   :  { %p705_p0 = scmp.ne.s32.totalorder %s802_s1, %s704_s13  ;;  %p708_p1 = scmp.lt.u32.totalorder %s704_s13, %s802_s1 }
   0x4   :  { %p710_p2 = pnand %p708_p1, %p705_p0 }
   0x6   :  { %713 = shalt.err (!%p710_p2)
}
   0x7   :  { %s714_s18 = scalar_lea.vmem %s16_s10, 4096  ;;  %p719_p4 = scmp.lt.s32.totalorder %s16_s10, %s16_s10 }
   0x8   :  { %p715_p3 = scmp.ne.s32.totalorder %s16_s10, %s714_s18  ;;  %p720_p5 = scmp.lt.s32.totalorder %s714_s18, %s714_s18 }
   0xa   :  { %p721_p6 = por %p720_p5, %p719_p4 }
   0xc   :  { %p722_p7 = pnand %p721_p6, %p715_p3 }
   0xe   :  { %725 = shalt.err (!%p722_p7)
}
   0xf   :  { %s729_s19 = smov 1024   ;;  %s730_s20 = smov 64  }
  0x10   :  { %21 = dma.hbm_to_vmem [thread:$0]  %s802_s1, 4096, %s16_s10, [#allocation3], %s729_s19, %s729_s19, %s730_s20  }
  0x11   :  { %726 = dma.done.wait [#allocation3], 4096  }
  0x12   :  { %727 = vsyncadd [#allocation3], 4294963200  ;;  %v26_v0 = vld [vmem:[%s801_s0] sm:$0x3]  ;;  %vm28_vm0 = vcmask 254976   ;;  %v37_v5 = vld [vmem:[#allocation2 + $0x8] sm:$0xff] }
  0x13   :  { %v27_v1 = vmul.f32 %v26_v0, %v26_v0  ;;  %v36_v3 = vld [vmem:[#allocation2] sm:$0xff]  ;;  %v45_v7 = vld [vmem:[#allocation2 + $0x48] sm:$0xff]  ;;  %v38_v19 = vld [vmem:[#allocation2 + $0x10] sm:$0xff]  ;;  %v731_v25 = vmov 0   ;;  %vm228_vm1 = vcmask 261120  }
  0x14   :  { %v44_v4 = vld [vmem:[#allocation2 + $0x40] sm:$0xff]  ;;  %v660_v8 = vcombine.high %v37_v5, %v45_v7  ;;  %v659_v10 = vcombine.low %v37_v5, %v45_v7  ;;  %v53_v13 = vld [vmem:[#allocation2 + $0x88] sm:$0xff]  ;;  %v46_v20 = vld [vmem:[#allocation2 + $0x50] sm:$0xff]  ;;  %264 = vmatprep.mubr.bf16.mxu0 %v731_v25  ;;  %305 = vmatprep.mubr.bf16.mxu1 %v731_v25 }
  0x15   :  { %v29_v2 = vsel %vm28_vm0, %v27_v1, 0.0  ;;  %v658_v6 = vcombine.high %v36_v3, %v44_v4  ;;  %v657_v9 = vcombine.low %v36_v3, %v44_v4  ;;  %v52_v11 = vld [vmem:[#allocation2 + $0x80] sm:$0xff]  ;;  %v61_v15 = vld [vmem:[#allocation2 + $0xc8] sm:$0xff]  ;;  %v39_v21 = vld [vmem:[#allocation2 + $0x18] sm:$0xff]  ;;  %v661_v22 = vcombine.low %v38_v19, %v46_v20 }
  0x16   :  { %30 = vadd.xlane.f32.xlu0 %v29_v2  ;;  %273 = vmatprep.subr.bf16.mxu1 %v660_v8  ;;  %v60_v12 = vld [vmem:[#allocation2 + $0xc0] sm:$0xff]  ;;  %v676_v16 = vcombine.high %v53_v13, %v61_v15  ;;  %v675_v18 = vcombine.low %v53_v13, %v61_v15  ;;  %v662_v23 = vcombine.high %v38_v19, %v46_v20  ;;  %v47_v24 = vld [vmem:[#allocation2 + $0x58] sm:$0xff]  ;;  %v54_v30 = vld [vmem:[#allocation2 + $0x90] sm:$0xff] }
  0x17   :  { %232 = vmatprep.subr.bf16.mxu0 %v658_v6  ;;  %274 = vmatpush1.bf16.msra.mxu1 %v659_v10  ;;  %v674_v14 = vcombine.high %v52_v11, %v60_v12  ;;  %v673_v17 = vcombine.low %v52_v11, %v60_v12  ;;  %v663_v26 = vcombine.low %v39_v21, %v47_v24  ;;  %v62_v32 = vld [vmem:[#allocation2 + $0xd0] sm:$0xff]  ;;  %v55_v33 = vld [vmem:[#allocation2 + $0x98] sm:$0xff]  ;;  %v40_v39 = vld [vmem:[#allocation2 + $0x20] sm:$0xff]  ;;  %v581_v11 = vlaneseq }
  0x18   :  { %233 = vmatpush1.bf16.msra.mxu0 %v657_v9  ;;  %275 = vmatprep.subr.bf16.mxu1 %v676_v16  ;;  %v664_v27 = vcombine.high %v39_v21, %v47_v24  ;;  %v63_v34 = vld [vmem:[#allocation2 + $0xd8] sm:$0xff]  ;;  %v678_v37 = vcombine.high %v54_v30, %v62_v32  ;;  %v48_v40 = vld [vmem:[#allocation2 + $0x60] sm:$0xff]  ;;  %v41_v41 = vld [vmem:[#allocation2 + $0x28] sm:$0xff]  ;;  %v677_v43 = vcombine.low %v54_v30, %v62_v32  ;;  %v732_v9 = vmov 1983009808  }
  0x19   :  { %234 = vmatprep.subr.bf16.mxu0 %v674_v14  ;;  %v680_v38 = vcombine.high %v55_v33, %v63_v34  ;;  %v49_v42 = vld [vmem:[#allocation2 + $0x68] sm:$0xff]  ;;  %v679_v44 = vcombine.low %v55_v33, %v63_v34  ;;  %v666_v45 = vcombine.high %v40_v39, %v48_v40  ;;  %v56_v47 = vld [vmem:[#allocation2 + $0xa0] sm:$0xff]  ;;  %v665_v51 = vcombine.low %v40_v39, %v48_v40  ;;  %v42_v55 = vld [vmem:[#allocation2 + $0x30] sm:$0xff] }
  0x1a   :  { %v668_v46 = vcombine.high %v41_v41, %v49_v42  ;;  %v64_v48 = vld [vmem:[#allocation2 + $0xe0] sm:$0xff]  ;;  %v57_v49 = vld [vmem:[#allocation2 + $0xa8] sm:$0xff]  ;;  %v667_v52 = vcombine.low %v41_v41, %v49_v42  ;;  %v50_v56 = vld [vmem:[#allocation2 + $0x70] sm:$0xff]  ;;  %v579_v10 = vunpack.c.l.s4 %v732_v9  ;;  %v582_v13 = vshrl.u32 %v581_v11, 7 }
  0x1b   :  { %276 = vmatpush1.bf16.msra.mxu1 %v675_v18  ;;  %v65_v50 = vld [vmem:[#allocation2 + $0xe8] sm:$0xff]  ;;  %v682_v53 = vcombine.high %v56_v47, %v64_v48  ;;  %v43_v57 = vld [vmem:[#allocation2 + $0x38] sm:$0xff]  ;;  %v681_v59 = vcombine.low %v56_v47, %v64_v48  ;;  %v670_v61 = vcombine.high %v42_v55, %v50_v56  ;;  %v58_v63 = vld [vmem:[#allocation2 + $0xb0] sm:$0xff]  ;;  %v669_v3 = vcombine.low %v42_v55, %v50_v56 }
  0x1c   :  { %235 = vmatpush1.bf16.msra.mxu0 %v673_v17  ;;  %355 = vmatprep.subr.bf16.mxu1 %v664_v27  ;;  %v684_v54 = vcombine.high %v57_v49, %v65_v50  ;;  %v51_v58 = vld [vmem:[#allocation2 + $0x78] sm:$0xff]  ;;  %v683_v60 = vcombine.low %v57_v49, %v65_v50  ;;  %v580_v12 = vunpack.c.0.s8 %v579_v10 }
  0x1d   :  { %314 = vmatprep.subr.bf16.mxu0 %v662_v23  ;;  %v672_v62 = vcombine.high %v43_v57, %v51_v58  ;;  %v59_v1 = vld [vmem:[#allocation2 + $0xb8] sm:$0xff]  ;;  %v671_v4 = vcombine.low %v43_v57, %v51_v58 }
  0x1e   :  { %v67_v2 = vld [vmem:[#allocation2 + $0xf8] sm:$0xff]  ;;  %v583_v16 = vsub.s32 %v580_v12, %v582_v13 }
  0x1f   :  { %v688_v6 = vcombine.high %v59_v1, %v67_v2  ;;  %v687_v8 = vcombine.low %v59_v1, %v67_v2 }
  0xa3   :  { %v31_v28 = vpop.xlane.xlu0 %30 }
  0xa4   :  { %v32_v29 = vadd.f32 1e-12, %v31_v28 }
  0xa6   :  { %702 = vrsqrt.f32 %v32_v29 }
  0xb0   :  { %v703_v31 = vpop.eup %702 }
  0xb1   :  { %v34_v35 = vmul.f32 %v703_v31, %v26_v0  ;;  %v66_v0 = vld [vmem:[#allocation2 + $0xf0] sm:$0xff] }
  0xb2   :  { %v686_v5 = vcombine.high %v58_v63, %v66_v0  ;;  %v685_v7 = vcombine.low %v58_v63, %v66_v0 }
  0xb3   :  { %v765_v36 = vpack.c.bf16 %v34_v35, %v34_v35 }
  0xb5   :  { %689 = vmatmul.mubr.msk.bf16.vlgmr.msra.gmra.mrb[0].mxu0 %vm228_vm1, %v765_v36  ;;  %690 = vmatmul.mubr.msk.bf16.vlgmr.msra.gmra.mrb[0].mxu1 %vm228_vm1, %v765_v36 }
  0xb6   :  { %315 = vmatpush1.bf16.msra.mxu0 %v661_v22  ;;  %356 = vmatpush1.bf16.msra.mxu1 %v663_v26 }
  0xb7   :  { %316 = vmatprep.subr.bf16.mxu0 %v678_v37  ;;  %357 = vmatprep.subr.bf16.mxu1 %v680_v38 }
  0xb8   :  { %346 = vmatprep.mubr.bf16.mxu0 %v731_v25  ;;  %387 = vmatprep.mubr.bf16.mxu1 %v731_v25 }
  0xba   :  { %317 = vmatpush1.bf16.msra.mxu0 %v677_v43  ;;  %358 = vmatpush1.bf16.msra.mxu1 %v679_v44 }
  0xbb   :  { %396 = vmatprep.subr.bf16.mxu0 %v666_v45  ;;  %437 = vmatprep.subr.bf16.mxu1 %v668_v46 }
  0xbd   :  { %691 = vmatmul.mubr.msk.bf16.vlgmr.msra.gmra.mrb[4].mxu0 %vm228_vm1, %v765_v36  ;;  %692 = vmatmul.mubr.msk.bf16.vlgmr.msra.gmra.mrb[4].mxu1 %vm228_vm1, %v765_v36 }
  0xbe   :  { %397 = vmatpush1.bf16.msra.mxu0 %v665_v51  ;;  %438 = vmatpush1.bf16.msra.mxu1 %v667_v52 }
  0xbf   :  { %398 = vmatprep.subr.bf16.mxu0 %v682_v53  ;;  %439 = vmatprep.subr.bf16.mxu1 %v684_v54 }
  0xc0   :  { %428 = vmatprep.mubr.bf16.mxu0 %v731_v25  ;;  %469 = vmatprep.mubr.bf16.mxu1 %v731_v25 }
  0xc2   :  { %399 = vmatpush1.bf16.msra.mxu0 %v681_v59  ;;  %440 = vmatpush1.bf16.msra.mxu1 %v683_v60 }
  0xc3   :  { %478 = vmatprep.subr.bf16.mxu0 %v670_v61  ;;  %519 = vmatprep.subr.bf16.mxu1 %v672_v62 }
  0xc5   :  { %693 = vmatmul.mubr.msk.bf16.vlgmr.msra.gmra.mrb[8].mxu0 %vm228_vm1, %v765_v36  ;;  %694 = vmatmul.mubr.msk.bf16.vlgmr.msra.gmra.mrb[8].mxu1 %vm228_vm1, %v765_v36 }
  0xc6   :  { %479 = vmatpush1.bf16.msra.mxu0 %v669_v3  ;;  %520 = vmatpush1.bf16.msra.mxu1 %v671_v4 }
  0xc7   :  { %480 = vmatprep.subr.bf16.mxu0 %v686_v5  ;;  %521 = vmatprep.subr.bf16.mxu1 %v688_v6 }
  0xc8   :  { %510 = vmatprep.mubr.bf16.mxu0 %v731_v25  ;;  %551 = vmatprep.mubr.bf16.mxu1 %v731_v25 }
  0xca   :  { %481 = vmatpush1.bf16.msra.mxu0 %v685_v7  ;;  %522 = vmatpush1.bf16.msra.mxu1 %v687_v8 }
  0xcd   :  { %695 = vmatmul.mubr.msk.bf16.vlgmr.msra.gmra.mrb[12].mxu0 %vm228_vm1, %v765_v36  ;;  %696 = vmatmul.mubr.msk.bf16.vlgmr.msra.gmra.mrb[12].mxu1 %vm228_vm1, %v765_v36 }
 0x188   :  { %v266_v14 = vpop.f32.mrb[0].mxu0  ;;  %v307_v15 = vpop.f32.mrb[0].mxu1 }
 0x189   :  { %v268_v17 = vpop.f32.mrb[1].mxu0  ;;  %v309_v18 = vpop.f32.mrb[1].mxu1 }
 0x18a   :  { %v576_v19 = vcombine.low %v266_v14, %v268_v17  ;;  %v577_v20 = vcombine.low %v307_v15, %v309_v18  ;;  %v270_v21 = vpop.f32.mrb[2].mxu0  ;;  %v311_v22 = vpop.f32.mrb[2].mxu1 }
 0x18b   :  { %v271_v23 = vpop.f32.mrb[3].mxu0  ;;  %v312_v24 = vpop.f32.mrb[3].mxu1 }
 0x18c   :  { %v584_v25 = vrot.slane %v576_v19, %v583_v16  ;;  %v591_v26 = vrot.slane %v577_v20, %v583_v16 }
 0x18e   :  { %v592_v27 = vcombine.low %v584_v25, %v591_v26 }
 0x190   :  { %648 = vst [vmem:[%s803_s2] sm:$0xff] %v592_v27  ;;  %v348_v28 = vpop.f32.mrb[4].mxu0  ;;  %v389_v29 = vpop.f32.mrb[4].mxu1 }
 0x191   :  { %v350_v30 = vpop.f32.mrb[5].mxu0  ;;  %v391_v31 = vpop.f32.mrb[5].mxu1 }
 0x192   :  { %v593_v32 = vcombine.low %v348_v28, %v350_v30  ;;  %v594_v33 = vcombine.low %v389_v29, %v391_v31  ;;  %v352_v34 = vpop.f32.mrb[6].mxu0  ;;  %v393_v35 = vpop.f32.mrb[6].mxu1 }
 0x193   :  { %v353_v36 = vpop.f32.mrb[7].mxu0  ;;  %v394_v37 = vpop.f32.mrb[7].mxu1 }
 0x194   :  { %v601_v38 = vrot.slane %v593_v32, %v583_v16  ;;  %v608_v39 = vrot.slane %v594_v33, %v583_v16 }
 0x196   :  { %v609_v40 = vcombine.low %v601_v38, %v608_v39 }
 0x198   :  { %649 = vst [vmem:[%s803_s2 + $0x8] sm:$0xff] %v609_v40  ;;  %v430_v41 = vpop.f32.mrb[8].mxu0  ;;  %v471_v42 = vpop.f32.mrb[8].mxu1 }
 0x199   :  { %v432_v43 = vpop.f32.mrb[9].mxu0  ;;  %v473_v44 = vpop.f32.mrb[9].mxu1 }
 0x19a   :  { %v610_v45 = vcombine.low %v430_v41, %v432_v43  ;;  %v611_v46 = vcombine.low %v471_v42, %v473_v44  ;;  %v434_v47 = vpop.f32.mrb[10].mxu0  ;;  %v475_v48 = vpop.f32.mrb[10].mxu1 }
 0x19b   :  { %v435_v49 = vpop.f32.mrb[11].mxu0  ;;  %v476_v50 = vpop.f32.mrb[11].mxu1 }
 0x19c   :  { %v618_v51 = vrot.slane %v610_v45, %v583_v16  ;;  %v625_v52 = vrot.slane %v611_v46, %v583_v16 }
 0x19e   :  { %v626_v53 = vcombine.low %v618_v51, %v625_v52 }
 0x1a0   :  { %650 = vst [vmem:[%s803_s2 + $0x10] sm:$0xff] %v626_v53  ;;  %v512_v54 = vpop.f32.mrb[12].mxu0  ;;  %v553_v55 = vpop.f32.mrb[12].mxu1 }
 0x1a1   :  { %v514_v56 = vpop.f32.mrb[13].mxu0  ;;  %v555_v57 = vpop.f32.mrb[13].mxu1 }
 0x1a2   :  { %v627_v58 = vcombine.low %v512_v54, %v514_v56  ;;  %v628_v59 = vcombine.low %v553_v55, %v555_v57  ;;  %v516_v60 = vpop.f32.mrb[14].mxu0  ;;  %v557_v61 = vpop.f32.mrb[14].mxu1 }
 0x1a3   :  { %v517_v62 = vpop.f32.mrb[15].mxu0  ;;  %v558_v63 = vpop.f32.mrb[15].mxu1 }
 0x1a4   :  { %v635_v0 = vrot.slane %v627_v58, %v583_v16  ;;  %v642_v1 = vrot.slane %v628_v59, %v583_v16 }
 0x1a6   :  { %v643_v2 = vcombine.low %v635_v0, %v642_v1 }
 0x1a8   :  { %651 = vst [vmem:[%s803_s2 + $0x18] sm:$0xff] %v643_v2 }
 0x1a9   :  { %656 = vsyncpa [#allocation3], 1 }

// kernel: mea_transformer_forward.3
= control target key start
LH: loop header
LB: loop body
LE: loop exit
PB: predicated region body
PF: predicated region fallthrough
CT: control target
= control target key end

     0   :  { %vm65_vm0 = vcmask 261120   ;;  %s6038_s0 = inlined_call_operand.vmem [shape: f32[1,18,32], index: 0, kind: input, shape index: {}]   ;;  %s6039_s1 = inlined_call_operand.vmem [shape: bf16[2,32,96], index: 1, kind: input, shape index: {}]   ;;  %s6040_s2 = inlined_call_operand.vmem [shape: f32[2,1,96], index: 2, kind: input, shape index: {}]   ;;  %s6041_s3 = inlined_call_operand.vmem [shape: bf16[2,32,32], index: 3, kind: input, shape index: {}]   ;;  %s6042_s4 = inlined_call_operand.vmem [shape: f32[2,1,32], index: 4, kind: input, shape index: {}]   ;;  %s6043_s5 = inlined_call_operand.vmem [shape: bf16[32,32], index: 5, kind: input, shape index: {}]   ;;  %s6044_s6 = inlined_call_operand.vmem [shape: f32[1,32], index: 6, kind: input, shape index: {}]   ;;  %s6045_s7 = inlined_call_operand.vmem [shape: bf16[32,128], index: 7, kind: input, shape index: {}]   ;;  %s6046_s8 = inlined_call_operand.vmem [shape: f32[1,128], index: 8, kind: input, shape index: {}]   ;;  %s6047_s9 = inlined_call_operand.vmem [shape: f32[1,2,128], index: 9, kind: input, shape index: {}]   ;;  %s6048_s10 = inlined_call_operand.hbm [shape: f32[1,2,128], index: 10, kind: output, shape index: {}]  }
   0x1   :  { %v4627_v0 = vld [vmem:[%s6039_s1] sm:$0xff]   ;;  %v4628_v1 = vld [vmem:[%s6039_s1 + $0x8] sm:$0xff]   ;;  %v39_v4 = vld [vmem:[%s6038_s0 + $0x10] sm:$0x3] }
   0x2   :  { %4540 = vmatprep.subr.bf16.mxu0 %v4627_v0  ;;  %v37_v2 = vld [vmem:[%s6038_s0] sm:$0xff]  ;;  %v38_v3 = vld [vmem:[%s6038_s0 + $0x8] sm:$0xff]  ;;  %v41_v6 = vpack.c.bf16 %v39_v4, %v39_v4 }
   0x3   :  { %4541 = vmatpush3.bf16.msra.mxu0 %v4627_v0  ;;  %v40_v5 = vpack.c.bf16 %v38_v3, %v37_v2 }
   0x4   :  { %4542 = vmatprep.subr.bf16.mxu0 %v4628_v1 }
   0x5   :  { %4544 = vmatprep.mubr.msk.bf16.mxu0 %vm65_vm0, %v40_v5 }
   0x7   :  { %4543 = vmatpush3.bf16.msra.mxu0 %v4628_v1 }
   0x8   :  { %15 = vsyncpa [#allocation3], 0  ;;  %v4713_v7 = vmov 1966171168   ;;  %v127_v9 = vlaneseq  ;;  %v4480_v12 = vld [vmem:[%s6040_s2] ss:$0 sm:$0xff] }
   0x9   :  { %v125_v8 = vunpack.c.l.s4 %v4713_v7  ;;  %s4714_s0 = smov 96   ;;  %vm657_vm1 = vcmask 256000   ;;  %vm1504_vm2 = vcmask 7168   ;;  %vm1511_vm3 = vcmask 15360   ;;  %s4718_s29 = smov 64  }
   0xa   :  { %4545 = vmatmul.mubr.msk.bf16.vlgmr.msra.gmra.mrb[0].mxu0 %vm65_vm0, %v41_v6  ;;  %v128_v11 = vshrl.u32 %v127_v9, 7  ;;  %vm1524_vm4 = vcmask 18432   ;;  %vm4720_vm5 = vmmov 0   ;;  %vm4198_vm6 = vcmask 1041409  }
   0xb   :  { %v126_v10 = vunpack.c.0.s8 %v125_v8  ;;  %vm4201_vm7 = vcmask 1042434   ;;  %vm4204_vm8 = vcmask 1043459   ;;  %vm4207_vm9 = vcmask 1044484  }
   0xc   :  { %v4800_v21 = vsub.s32 0, %v128_v11  ;;  %vm4210_vm10 = vcmask 1045509   ;;  %vm4432_vm11 = vcmask 1042432  }
   0xd   :  { %v4797_v13 = vsub.s32 %v126_v10, %v128_v11 }
   0xe   :  { %6073 = vst [vmem:[#allocation5_spill] sm:$0xff] %v4800_v21 }
  0xdd   :  { %v4546_v14 = vpop.f32.mrb[0].mxu0 }
  0xde   :  { %v115_v15 = vadd.f32 %v4546_v14, %v4480_v12  ;;  %v106_v16 = vpop.f32.mrb[1].mxu0 }
  0xdf   :  { %v107_v17 = vadd.f32 %v4480_v12, %v106_v16  ;;  %v4547_v18 = vpop.f32.mrb[2].mxu0 }
  0xe0   :  { %v227_v19 = vrot.slane %v115_v15, %v4797_v13  ;;  %v109_v20 = vpop.f32.mrb[3].mxu0 }
  0xe1   :  { %v130_v22 = vrot.slane %v107_v17, %v4797_v13  ;;  %v123_v25 = vcombine.high %v107_v17, %v107_v17  ;;  %v110_v38 = vadd.f32 %v4480_v12, %v109_v20 }
  0xe2   :  { %v228_v23 = vcombine.high %v227_v19, %v227_v19  ;;  %v4804_v24 = vrot.slane %v227_v19, %v4797_v13 }
  0xe3   :  { %v138_v26 = vcombine.high %v130_v22, %v130_v22  ;;  %v4807_v27 = vrot.slane %v130_v22, %v4797_v13  ;;  %v4820_v31 = vrot.slane %v123_v25, %v4797_v13  ;;  %v179_v47 = vrot.slane %v110_v38, %v4797_v13 }
  0xe4   :  { %v4810_v28 = vrot.slane %v228_v23, %v4797_v13  ;;  %v4814_v29 = vrot.slane %v4804_v24, %v4800_v21  ;;  %v172_v5 = vcombine.high %v110_v38, %v110_v38 }
  0xe5   :  { %v4817_v30 = vrot.slane %v138_v26, %v4797_v13  ;;  %v4826_v33 = vrot.slane %v4807_v27, %v4800_v21  ;;  %v4847_v41 = vrot.slane %v4820_v31, %v4797_v13  ;;  %v4878_v52 = vcombine.high %v4807_v27, %v4807_v27 }
  0xe6   :  { %6074 = vst [vmem:[#allocation6_spill] sm:$0xff] %v4814_v29  ;;  %v821_v32 = vrot.slane %v4814_v29, %v4797_v13  ;;  %v4830_v34 = vrot.slane %v4810_v28, %v4800_v21  ;;  %v4884_v54 = vrot.slane %v179_v47, %v4797_v13  ;;  %v187_v6 = vcombine.high %v179_v47, %v179_v47 }
  0xe7   :  { %v291_v37 = vrot.slane %v4826_v33, %v4797_v13  ;;  %v4843_v40 = vcombine.high %v4817_v30, %v4817_v30  ;;  %v4854_v43 = vrot.slane %v4817_v30, %v4800_v21  ;;  %v4874_v51 = vrot.slane %v4847_v41, %v4800_v21 }
  0xe8   :  { %6075 = vst [vmem:[#allocation7_spill] sm:$0xff] %v4830_v34  ;;  %v4833_v35 = vrot.slane %v821_v32, %v4797_v13  ;;  %v822_v36 = vcombine.high %v821_v32, %v821_v32  ;;  %v4839_v39 = vrot.slane %v4830_v34, %v4797_v13  ;;  %v4894_v58 = vrot.slane %v4878_v52, %v4800_v21 }
  0xe9   :  { %v4858_v44 = vrot.slane %v4843_v40, %v4800_v21  ;;  %v299_v45 = vrot.slane %v291_v37, %v4797_v13  ;;  %v292_v46 = vcombine.high %v291_v37, %v291_v37  ;;  %v706_v50 = vrot.slane %v4854_v43, %v4797_v13 }
  0xea   :  { %868 = vrot.lane.b32.xlu0 %v4833_v35, %s4714_s0  ;;  %v836_v42 = vrot.slane %v822_v36, %v4797_v13  ;;  %v4865_v48 = vrot.slane %v4839_v39, %v4797_v13  ;;  %v729_v57 = vrot.slane %v4874_v51, %v4797_v13  ;;  %v1120_v62 = vrot.slane %v4894_v58, %v4797_v13 }
  0xeb   :  { %v314_v49 = vrot.slane %v4858_v44, %v4797_v13  ;;  %v306_v53 = vrot.slane %v292_v46, %v4797_v13  ;;  %v707_v56 = vcombine.high %v706_v50, %v706_v50  ;;  %v714_v59 = vrot.slane %v706_v50, %v4797_v13 }
  0xec   :  { %870 = vrot.lane.b32.xlu1 %v836_v42, %s4714_s0  ;;  %v730_v61 = vcombine.high %v729_v57, %v729_v57  ;;  %v4905_v63 = vrot.slane %v4884_v54, %v4800_v21  ;;  %v4909_v0 = vrot.slane %v729_v57, %v4797_v13  ;;  %v1121_v2 = vcombine.high %v1120_v62, %v1120_v62 }
  0xed   :  { %v4888_v55 = vrot.slane %v314_v49, %v4797_v13  ;;  %v721_v60 = vrot.slane %v707_v56, %v4797_v13  ;;  %v4918_v4 = vrot.slane %v1120_v62, %v4797_v13  ;;  %v4925_v9 = vcombine.high %v4847_v41, %v4847_v41 }
  0xee   :  { %423 = vrot.lane.b32.xlu0 %v299_v45, %s4714_s0  ;;  %6076 = vst [vmem:[#allocation8_spill] sm:$0xff] %v4905_v63  ;;  %v744_v1 = vrot.slane %v730_v61, %v4797_v13  ;;  %v1166_v3 = vrot.slane %v4905_v63, %v4797_v13  ;;  %v1135_v7 = vrot.slane %v1121_v2, %v4797_v13 }
  0xef   :  { %v186_v11 = vrot.slane %v172_v5, %v4797_v13  ;;  %v4933_v12 = vrot.slane %v187_v6, %v4797_v13  ;;  %v4940_v15 = vrot.slane %v4925_v9, %v4800_v21  ;;  %v307_v16 = vcombine.high %v299_v45, %v299_v45 }
  0xf0   :  { %1282 = vrot.lane.b32.xlu1 %v4865_v48, %s4714_s0  ;;  %v1167_v8 = vcombine.high %v1166_v3, %v1166_v3  ;;  %v4929_v10 = vrot.slane %v1166_v3, %v4797_v13  ;;  %v1236_v17 = vcombine.high %v4839_v39, %v4839_v39  ;;  %v315_v18 = vcombine.high %v314_v49, %v314_v49 }
  0xf1   :  { %6077 = vst [vmem:[#allocation9_spill] sm:$0xff] %v4940_v15  ;;  %v4946_v19 = vrot.slane %v186_v11, %v4797_v13  ;;  %v722_v20 = vcombine.high %v714_v59, %v714_v59  ;;  %v337_v22 = vrot.slane %v4940_v15, %v4797_v13  ;;  %v4953_v23 = vrot.slane %v4933_v12, %v4800_v21 }
  0xf2   :  { %425 = vrot.lane.b32.xlu0 %v306_v53, %s4714_s0  ;;  %v1181_v14 = vrot.slane %v1167_v8, %v4797_v13  ;;  %v1250_v25 = vrot.slane %v1236_v17, %v4797_v13  ;;  %v139_v26 = vcombine.high %v4820_v31, %v4820_v31  ;;  %v329_v32 = vrot.slane %v315_v18, %v4797_v13 }
  0xf3   :  { %v338_v36 = vcombine.high %v337_v22, %v337_v22  ;;  %v360_v37 = vrot.slane %v4953_v23, %v4797_v13  ;;  %v4965_v38 = vrot.slane %v4946_v19, %v4800_v21  ;;  %v4969_v39 = vcombine.high %v4884_v54, %v4884_v54 }
  0xf4   :  { %429 = vrot.lane.b32.xlu1 %v4888_v55, %s4714_s0  ;;  %v4973_v31 = vrot.slane %v337_v22, %v4797_v13  ;;  %v4976_v42 = vrot.slane %v139_v26, %v4797_v13  ;;  %v1182_v26 = vcombine.high %v4929_v10, %v4929_v10 }
  0xf5   :  { %6078 = vst [vmem:[#allocation10_spill] sm:$0xff] %v4965_v38  ;;  %v352_v45 = vrot.slane %v338_v36, %v4797_v13  ;;  %v361_v46 = vcombine.high %v360_v37, %v360_v37  ;;  %v383_v47 = vrot.slane %v4965_v38, %v4797_v13  ;;  %v4985_v49 = vrot.slane %v4969_v39, %v4800_v21 }
  0xf6   :  { %838 = vrot.lane.b32.xlu0 %v714_v59, %s4714_s0  ;;  %v368_v50 = vrot.slane %v360_v37, %v4797_v13  ;;  %v4995_v59 = vrot.slane %v4976_v42, %v4800_v21 }
  0xf7   :  { %v375_v53 = vrot.slane %v361_v46, %v4797_v13  ;;  %v384_v56 = vcombine.high %v383_v47, %v383_v47  ;;  %v775_v57 = vrot.slane %v4985_v49, %v4797_v13 }
  0xf8   :  { %840 = vrot.lane.b32.xlu1 %v721_v60, %s4714_s0  ;;  %v4999_v60 = vrot.slane %v383_v47, %v4797_v13 }
  0xf9   :  { %v398_v61 = vrot.slane %v384_v56, %v4797_v13  ;;  %v776_v62 = vcombine.high %v775_v57, %v775_v57  ;;  %v5008_v2 = vrot.slane %v775_v57, %v4797_v13 }
  0xfa   :  { %844 = vrot.lane.b32.xlu0 %v4909_v0, %s4714_s0 }
  0xfb   :  { %v790_v3 = vrot.slane %v776_v62, %v4797_v13 }
  0xfc   :  { %846 = vrot.lane.b32.xlu1 %v744_v1, %s4714_s0  ;;  %v1143_v1 = vrot.slane %v4995_v59, %v4797_v13 }
  0xfe   :  { %1252 = vrot.lane.b32.xlu0 %v4918_v4, %s4714_s0  ;;  %v1144_v5 = vcombine.high %v1143_v1, %v1143_v1  ;;  %v1151_v6 = vrot.slane %v1143_v1, %v4797_v13 }
 0x100   :  { %1254 = vrot.lane.b32.xlu1 %v1135_v7, %s4714_s0  ;;  %v188_v7 = vcombine.high %v186_v11, %v186_v11  ;;  %v1158_v8 = vrot.slane %v1144_v5, %v4797_v13  ;;  %v330_v11 = vcombine.high %v4888_v55, %v4888_v55  ;;  %v5046_v55 = vcombine.high %v4933_v12, %v4933_v12 }
 0x102   :  { %1264 = vrot.lane.b32.xlu0 %v4929_v10, %s4714_s0  ;;  %v5025_v17 = vrot.slane %v188_v7, %v4797_v13  ;;  %v5056_v37 = vrot.slane %v5046_v55, %v4800_v21 }
 0x104   :  { %1266 = vrot.lane.b32.xlu1 %v1181_v14, %s4714_s0  ;;  %v5019_v14 = vcombine.high %v4976_v42, %v4976_v42  ;;  %v5080_v1 = vcombine.high %v5025_v17, %v5025_v17 }
 0x106   :  { %427 = vrot.lane.b32.xlu0 %v307_v16, %s4714_s0  ;;  %v745_v16 = vcombine.high %v4909_v0, %v4909_v0  ;;  %v5032_v18 = vrot.slane %v5019_v14, %v4800_v21  ;;  %v376_v0 = vcombine.high %v368_v50, %v368_v50  ;;  %v5088_v7 = vrot.slane %v5080_v1, %v4800_v21 }
 0x108   :  { %842 = vrot.lane.b32.xlu1 %v722_v20, %s4714_s0  ;;  %v1136_v20 = vcombine.high %v4918_v4, %v4918_v4  ;;  %v752_v22 = vrot.slane %v5032_v18, %v4797_v13  ;;  %v1159_v4 = vcombine.high %v1151_v6, %v1151_v6  ;;  %6081 = vst [vmem:[#allocation13_spill] sm:$0xff] %v5088_v7 }
 0x10a   :  { %1284 = vrot.lane.b32.xlu0 %v1250_v25, %s4714_s0  ;;  %v5042_v25 = vrot.slane %v5025_v17, %v4800_v21  ;;  %v760_v46 = vrot.slane %v752_v22, %v4797_v13 }
 0x10c   :  { %431 = vrot.lane.b32.xlu1 %v329_v32, %s4714_s0  ;;  %6079 = vst [vmem:[#allocation11_spill] sm:$0xff] %v5042_v25  ;;  %v753_v32 = vcombine.high %v752_v22, %v752_v22  ;;  %v798_v36 = vrot.slane %v5042_v25, %v4797_v13  ;;  %v399_v22 = vcombine.high %v4999_v60, %v4999_v60 }
 0x10e   :  { %435 = vrot.lane.b32.xlu0 %v4973_v31, %s4714_s0  ;;  %v767_v10 = vrot.slane %v753_v32, %v4797_v13  ;;  %v799_v47 = vcombine.high %v798_v36, %v798_v36  ;;  %v806_v56 = vrot.slane %v798_v36, %v4797_v13 }
 0x110   :  { %437 = vrot.lane.b32.xlu1 %v352_v45, %s4714_s0  ;;  %v5060_v45 = vcombine.high %v4946_v19, %v4946_v19  ;;  %v813_v57 = vrot.slane %v799_v47, %v4797_v13  ;;  %v1251_v47 = vcombine.high %v4865_v48, %v4865_v48 }
 0x112   :  { %441 = vrot.lane.b32.xlu0 %v368_v50, %s4714_s0  ;;  %v1189_v50 = vrot.slane %v5056_v37, %v4797_v13 }
 0x114   :  { %443 = vrot.lane.b32.xlu1 %v375_v53, %s4714_s0  ;;  %v5070_v53 = vrot.slane %v5060_v45, %v4800_v21 }
 0x116   :  { %447 = vrot.lane.b32.xlu0 %v4999_v60, %s4714_s0  ;;  %6080 = vst [vmem:[#allocation12_spill] sm:$0xff] %v5070_v53  ;;  %v1212_v62 = vrot.slane %v5070_v53, %v4797_v13 }
 0x118   :  { %449 = vrot.lane.b32.xlu1 %v398_v61, %s4714_s0  ;;  %v1190_v61 = vcombine.high %v1189_v50, %v1189_v50 }
 0x11a   :  { %856 = vrot.lane.b32.xlu0 %v5008_v2, %s4714_s0  ;;  %v1204_v5 = vrot.slane %v1190_v61, %v4797_v13 }
 0x11c   :  { %858 = vrot.lane.b32.xlu1 %v790_v3, %s4714_s0  ;;  %v1197_v3 = vrot.slane %v1189_v50, %v4797_v13 }
 0x11e   :  { %1258 = vrot.lane.b32.xlu0 %v1151_v6, %s4714_s0  ;;  %v1213_v6 = vcombine.high %v1212_v62, %v1212_v62 }
 0x120   :  { %1260 = vrot.lane.b32.xlu1 %v1158_v8, %s4714_s0  ;;  %v1220_v8 = vrot.slane %v1212_v62, %v4797_v13 }
 0x122   :  { %848 = vrot.lane.b32.xlu0 %v745_v16, %s4714_s0  ;;  %v1227_v16 = vrot.slane %v1213_v6, %v4797_v13  ;;  %v1228_v32 = vcombine.high %v1220_v8, %v1220_v8 }
 0x124   :  { %433 = vrot.lane.b32.xlu1 %v330_v11, %s4714_s0  ;;  %v406_v11 = vrot.slane %v5088_v7, %v4797_v13 }
 0x126   :  { %1256 = vrot.lane.b32.xlu0 %v1136_v20, %s4714_s0  ;;  %v353_v20 = vcombine.high %v4973_v31, %v4973_v31  ;;  %v814_v31 = vcombine.high %v806_v56, %v806_v56  ;;  %v407_v36 = vcombine.high %v406_v11, %v406_v11 }
 0x128   :  { %445 = vrot.lane.b32.xlu1 %v376_v0, %s4714_s0  ;;  %v414_v0 = vrot.slane %v406_v11, %v4797_v13  ;;  %v421_v60 = vrot.slane %v407_v36, %v4797_v13 }
 0x12a   :  { %1268 = vrot.lane.b32.xlu0 %v1182_v26, %s4714_s0  ;;  %v768_v26 = vcombine.high %v760_v46, %v760_v46 }
 0x12c   :  { %1262 = vrot.lane.b32.xlu1 %v1159_v4, %s4714_s0  ;;  %v791_v4 = vcombine.high %v5008_v2, %v5008_v2  ;;  %v837_v2 = vcombine.high %v4833_v35, %v4833_v35 }
 0x12e   :  { %850 = vrot.lane.b32.xlu0 %v760_v46, %s4714_s0  ;;  %v422_v46 = vcombine.high %v414_v0, %v414_v0 }
 0x130   :  { %852 = vrot.lane.b32.xlu1 %v767_v10, %s4714_s0  ;;  %v1205_v10 = vcombine.high %v1197_v3, %v1197_v3 }
 0x132   :  { %862 = vrot.lane.b32.xlu0 %v806_v56, %s4714_s0 }
 0x134   :  { %864 = vrot.lane.b32.xlu1 %v813_v57, %s4714_s0 }
 0x136   :  { %1270 = vrot.lane.b32.xlu0 %v1197_v3, %s4714_s0 }
 0x138   :  { %1272 = vrot.lane.b32.xlu1 %v1204_v5, %s4714_s0 }
 0x13a   :  { %1276 = vrot.lane.b32.xlu0 %v1220_v8, %s4714_s0 }
 0x13c   :  { %1278 = vrot.lane.b32.xlu1 %v1227_v16, %s4714_s0 }
 0x13e   :  { %439 = vrot.lane.b32.xlu0 %v353_v20, %s4714_s0 }
 0x140   :  { %453 = vrot.lane.b32.xlu1 %v414_v0, %s4714_s0 }
 0x142   :  { %451 = vrot.lane.b32.xlu0 %v399_v22, %s4714_s0 }
 0x144   :  { %854 = vrot.lane.b32.xlu1 %v768_v26, %s4714_s0 }
 0x146   :  { %860 = vrot.lane.b32.xlu0 %v791_v4, %s4714_s0 }
 0x148   :  { %866 = vrot.lane.b32.xlu1 %v814_v31, %s4714_s0 }
 0x14a   :  { %1280 = vrot.lane.b32.xlu0 %v1228_v32, %s4714_s0 }
 0x14c   :  { %1274 = vrot.lane.b32.xlu1 %v1205_v10, %s4714_s0 }
 0x14e   :  { %455 = vrot.lane.b32.xlu0 %v421_v60, %s4714_s0 }
 0x150   :  { %457 = vrot.lane.b32.xlu1 %v422_v46, %s4714_s0 }
 0x152   :  { %872 = vrot.lane.b32.xlu0 %v837_v2, %s4714_s0 }
 0x154   :  { %1286 = vrot.lane.b32.xlu1 %v1251_v47, %s4714_s0 }
 0x15c   :  { %v5121_v50 = vpop.permute.xlu0 %868 }
 0x15e   :  { %v5123_v56 = vpop.permute.xlu1 %870 }
 0x160   :  { %v424_v57 = vpop.permute.xlu0 %423 }
 0x161   :  { %v477_v0 = vmul.f32 %v424_v57, %v4807_v27 }
 0x162   :  { %v5125_v61 = vpop.permute.xlu1 %1282 }
 0x164   :  { %v426_v62 = vpop.permute.xlu0 %425 }
 0x165   :  { %v478_v20 = vmul.f32 %v426_v62, %v4817_v30 }
 0x166   :  { %v430_v3 = vpop.permute.xlu1 %429 }
 0x167   :  { %v513_v4 = vcombine.low %v477_v0, %v478_v20 }
 0x168   :  { %v839_v5 = vpop.permute.xlu0 %838 }
 0x169   :  { %v892_v31 = vmul.f32 %v839_v5, %v4807_v27  ;;  %v520_v46 = vrot.slane %v513_v4, %v4797_v13 }
 0x16a   :  { %v841_v35 = vpop.permute.xlu1 %840 }
 0x16b   :  { %v893_v22 = vmul.f32 %v841_v35, %v4817_v30 }
 0x16c   :  { %v845_v6 = vpop.permute.xlu0 %844 }
 0x16d   :  { %v928_v36 = vcombine.low %v892_v31, %v893_v22 }
 0x16e   :  { %v847_v8 = vpop.permute.xlu1 %846 }
 0x16f   :  { %v935_v57 = vrot.slane %v928_v36, %v4797_v13 }
 0x170   :  { %v1253_v16 = vpop.permute.xlu0 %1252 }
 0x172   :  { %v1255_v11 = vpop.permute.xlu1 %1254 }
 0x174   :  { %v1265_v48 = vpop.permute.xlu0 %1264 }
 0x176   :  { %v1267_v26 = vpop.permute.xlu1 %1266 }
 0x177   :  { %v1313_v7 = vmul.f32 %v1267_v26, %v5019_v14 }
 0x178   :  { %v428_v32 = vpop.permute.xlu0 %427 }
 0x179   :  { %v479_v10 = vmul.f32 %v428_v32, %v4878_v52 }
 0x17a   :  { %v843_v60 = vpop.permute.xlu1 %842 }
 0x17b   :  { %v527_v2 = vrot.slane %v479_v10, %v4797_v13  ;;  %v894_v47 = vmul.f32 %v843_v60, %v4878_v52 }
 0x17c   :  { %v5135_v62 = vpop.permute.xlu0 %1284 }
 0x17d   :  { %v942_v35 = vrot.slane %v894_v47, %v4797_v13  ;;  %v528_v20 = vcombine.low %v520_v46, %v527_v2 }
 0x17e   :  { %v432_v0 = vpop.permute.xlu1 %431 }
 0x17f   :  { %v535_v5 = vrot.slane %v528_v20, %v4797_v13  ;;  %v943_v22 = vcombine.low %v935_v57, %v942_v35  ;;  %v896_v20 = vmul.f32 %v847_v8, %v4847_v41  ;;  %v481_v8 = vmul.f32 %v432_v0, %v4847_v41 }
 0x180   :  { %v5140_v31 = vpop.permute.xlu0 %435 }
 0x181   :  { %v658_v4 = vsel %vm657_vm1, %v535_v5, 0.0  ;;  %v950_v10 = vrot.slane %v943_v22, %v4797_v13  ;;  %v895_v22 = vmul.f32 %v845_v6, %v4843_v40  ;;  %v480_v6 = vmul.f32 %v430_v3, %v4843_v40 }
 0x182   :  { %v5143_v32 = vpop.permute.xlu1 %437  ;;  %659 = vadd.xlane.f32.xlu0 %v658_v4  ;;  %v1307_v4 = vmul.f32 %v1255_v11, %v4817_v30  ;;  %v1312_v11 = vmul.f32 %v1265_v48, %v4925_v9 }
 0x183   :  { %v1072_v36 = vsel %vm657_vm1, %v950_v10, 0.0  ;;  %v951_v10 = vcombine.low %v895_v22, %v896_v20 }
 0x184   :  { %v5146_v60 = vpop.permute.xlu0 %441 }
 0x185   :  { %v958_v29 = vrot.slane %v951_v10, %v4797_v13  ;;  %v536_v10 = vcombine.low %v480_v6, %v481_v8 }
 0x186   :  { %v444_v47 = vpop.permute.xlu1 %443  ;;  %1073 = vadd.xlane.f32.xlu0 %v1072_v36  ;;  %v1306_v36 = vmul.f32 %v1253_v16, %v4807_v27 }
 0x188   :  { %v5149_v46 = vpop.permute.xlu0 %447  ;;  %v1342_v34 = vcombine.low %v1306_v36, %v1307_v4  ;;  %v1388_v4 = vcombine.low %v1312_v11, %v1313_v7 }
 0x18a   :  { %v5151_v2 = vpop.permute.xlu1 %449  ;;  %v1349_v20 = vrot.slane %v1342_v34, %v4797_v13  ;;  %v543_v34 = vrot.slane %v536_v10, %v4797_v13 }
 0x18c   :  { %v5153_v57 = vpop.permute.xlu0 %856 }
 0x18e   :  { %v5155_v35 = vpop.permute.xlu1 %858 }
 0x190   :  { %v5158_v5 = vpop.permute.xlu0 %1258 }
 0x192   :  { %v1261_v21 = vpop.permute.xlu1 %1260 }
 0x194   :  { %v849_v53 = vpop.permute.xlu0 %848 }
 0x195   :  { %v897_v38 = vmul.f32 %v849_v53, %v4976_v42 }
 0x196   :  { %v434_v25 = vpop.permute.xlu1 %433 }
 0x197   :  { %v965_v63 = vrot.slane %v897_v38, %v4797_v13  ;;  %v482_v27 = vmul.f32 %v434_v25, %v4976_v42 }
 0x198   :  { %v1257_v30 = vpop.permute.xlu0 %1256 }
 0x199   :  { %v1308_v16 = vmul.f32 %v1257_v30, %v4878_v52  ;;  %v966_v53 = vcombine.low %v958_v29, %v965_v63  ;;  %v550_v3 = vrot.slane %v482_v27, %v4797_v13  ;;  %v1395_v29 = vrot.slane %v1388_v4, %v4797_v13 }
 0x19a   :  { %v446_v22 = vpop.permute.xlu1 %445 }
 0x19b   :  { %v1356_v26 = vrot.slane %v1308_v16, %v4797_v13  ;;  %v973_v0 = vrot.slane %v966_v53, %v4797_v13  ;;  %v551_v30 = vcombine.low %v543_v34, %v550_v3  ;;  %v484_v3 = vmul.f32 %v5143_v32, %v5019_v14 }
 0x19c   :  { %v1269_v38 = vpop.permute.xlu0 %1268  ;;  %v490_v34 = vmul.f32 %v5151_v2, %v5025_v17  ;;  %v489_v32 = vmul.f32 %v5149_v46, %v4946_v19 }
 0x19d   :  { %v1314_v36 = vmul.f32 %v1269_v38, %v4884_v54  ;;  %v1075_v48 = vsel %vm657_vm1, %v973_v0, 0.0  ;;  %v1357_v25 = vcombine.low %v1349_v20, %v1356_v26  ;;  %v558_v20 = vrot.slane %v551_v30, %v4797_v13 }
 0x19e   :  { %v1263_v15 = vpop.permute.xlu1 %1262  ;;  %1076 = vadd.xlane.f32.xlu1 %v1075_v48  ;;  %v487_v0 = vmul.f32 %v444_v47, %v4969_v39  ;;  %v488_v48 = vmul.f32 %v446_v22, %v5046_v55  ;;  %v1310_v47 = vmul.f32 %v1261_v21, %v4847_v41  ;;  %v902_v21 = vmul.f32 %v5155_v35, %v4969_v39 }
 0x19f   :  { %v1402_v52 = vrot.slane %v1314_v36, %v4797_v13  ;;  %v1364_v63 = vrot.slane %v1357_v25, %v4797_v13  ;;  %v661_v26 = vsel %vm657_vm1, %v558_v20, 0.0  ;;  %v486_v36 = vmul.f32 %v5146_v60, %v4933_v12 }
 0x1a0   :  { %v851_v7 = vpop.permute.xlu0 %850  ;;  %v1309_v60 = vmul.f32 %v5158_v5, %v4843_v40  ;;  %v596_v22 = vrot.slane %v488_v48, %v4797_v13  ;;  %v5219_v35 = vmul.f32 %v5121_v50, %v5080_v1 }
 0x1a1   :  { %v1486_v8 = vsel %vm657_vm1, %v1364_v63, 0.0  ;;  %v1403_v6 = vcombine.low %v1395_v29, %v1402_v52  ;;  %v483_v29 = vmul.f32 %v5140_v31, %v4925_v9  ;;  %v582_v52 = vcombine.low %v486_v36, %v487_v0 }
 0x1a2   :  { %1487 = vadd.xlane.f32.xlu1 %v1486_v8  ;;  %v853_v11 = vpop.permute.xlu1 %852  ;;  %v605_v31 = vcombine.low %v489_v32, %v490_v34  ;;  %v1365_v41 = vcombine.low %v1309_v60, %v1310_v47  ;;  %v898_v5 = vmul.f32 %v851_v7, %v4925_v9 }
 0x1a3   :  { %v1410_v27 = vrot.slane %v1403_v6, %v4797_v13  ;;  %v559_v8 = vcombine.low %v483_v29, %v484_v3  ;;  %v1311_v6 = vmul.f32 %v1263_v15, %v4976_v42  ;;  %v589_v2 = vrot.slane %v582_v52, %v4797_v13 }
 0x1a4   :  { %v863_v16 = vpop.permute.xlu0 %862  ;;  %v901_v15 = vmul.f32 %v5153_v57, %v4933_v12  ;;  %v1372_v48 = vrot.slane %v1365_v41, %v4797_v13 }
 0x1a5   :  { %v1492_v53 = vsel %vm657_vm1, %v1410_v27, 0.0  ;;  %v566_v20 = vrot.slane %v559_v8, %v4797_v13  ;;  %v1379_v42 = vrot.slane %v1311_v6, %v4797_v13  ;;  %v597_v0 = vcombine.low %v589_v2, %v596_v22 }
 0x1a6   :  { %1493 = vadd.xlane.f32.xlu1 %v1492_v53  ;;  %v865_v4 = vpop.permute.xlu1 %864  ;;  %v899_v53 = vmul.f32 %v853_v11, %v5019_v14  ;;  %v612_v14 = vrot.slane %v605_v31, %v4797_v13  ;;  %v997_v36 = vcombine.low %v901_v15, %v902_v21  ;;  %v904_v47 = vmul.f32 %v863_v16, %v4946_v19 }
 0x1a7   :  { %v905_v57 = vmul.f32 %v865_v4, %v5025_v17  ;;  %v604_v60 = vrot.slane %v597_v0, %v4797_v13  ;;  %v1380_v22 = vcombine.low %v1372_v48, %v1379_v42 }
 0x1a8   :  { %v5186_v10 = vpop.permute.xlu0 %1270  ;;  %v974_v29 = vcombine.low %v898_v5, %v899_v53 }
 0x1a9   :  { %v1020_v31 = vcombine.low %v904_v47, %v905_v57  ;;  %v1315_v41 = vmul.f32 %v5186_v10, %v4933_v12 }
 0x1aa   :  { %662 = vadd.xlane.f32.xlu1 %v661_v26  ;;  %v1273_v38 = vpop.permute.xlu1 %1272 }
 0x1ab   :  { %v1316_v16 = vmul.f32 %v1273_v38, %v4969_v39  ;;  %v1027_v0 = vrot.slane %v1020_v31, %v4797_v13 }
 0x1ac   :  { %v1277_v25 = vpop.permute.xlu0 %1276 }
 0x1ad   :  { %v1318_v8 = vmul.f32 %v1277_v25, %v4946_v19 }
 0x1ae   :  { %v1279_v63 = vpop.permute.xlu1 %1278 }
 0x1af   :  { %v1319_v9 = vmul.f32 %v1279_v63, %v5025_v17 }
 0x1b0   :  { %v440_v30 = vpop.permute.xlu0 %439 }
 0x1b1   :  { %v485_v27 = vmul.f32 %v440_v30, %v4884_v54  ;;  %v1004_v30 = vrot.slane %v997_v36, %v4797_v13  ;;  %v1434_v19 = vcombine.low %v1318_v8, %v1319_v9 }
 0x1b2   :  { %v454_v46 = vpop.permute.xlu1 %453 }
 0x1b3   :  { %v573_v40 = vrot.slane %v485_v27, %v4797_v13  ;;  %v1441_v10 = vrot.slane %v1434_v19, %v4797_v13  ;;  %v492_v36 = vmul.f32 %v454_v46, %v5080_v1  ;;  %v1322_v46 = vmul.f32 %v5135_v62, %v4804_v24 }
 0x1b4   :  { %v452_v26 = vpop.permute.xlu0 %451 }
 0x1b5   :  { %v491_v11 = vmul.f32 %v452_v26, %v5060_v45  ;;  %v574_v3 = vcombine.low %v566_v20, %v573_v40  ;;  %v667_v20 = vsel %vm657_vm1, %v604_v60, 0.0  ;;  %v1387_v40 = vrot.slane %v1380_v22, %v4797_v13 }
 0x1b6   :  { %v855_v34 = vpop.permute.xlu1 %854  ;;  %v908_v26 = vmul.f32 %v5123_v56, %v4804_v24  ;;  %v1321_v22 = vmul.f32 %v5125_v61, %v5080_v1 }
 0x1b7   :  { %v619_v7 = vrot.slane %v491_v11, %v4797_v13  ;;  %v900_v52 = vmul.f32 %v855_v34, %v4884_v54  ;;  %v581_v50 = vrot.slane %v574_v3, %v4797_v13  ;;  %v981_v54 = vrot.slane %v974_v29, %v4797_v13 }
 0x1b8   :  { %v861_v32 = vpop.permute.xlu0 %860  ;;  %v1489_v29 = vsel %vm657_vm1, %v1387_v40, 0.0  ;;  %v1457_v1 = vcombine.low %v1321_v22, %v1322_v46 }
 0x1b9   :  { %v988_v6 = vrot.slane %v900_v52, %v4797_v13  ;;  %v903_v4 = vmul.f32 %v861_v32, %v5046_v55  ;;  %v664_v17 = vsel %vm657_vm1, %v581_v50, 0.0  ;;  %v620_v63 = vcombine.low %v612_v14, %v619_v7 }
 0x1ba   :  { %v867_v27 = vpop.permute.xlu1 %866  ;;  %665 = vadd.xlane.f32.xlu0 %v664_v17  ;;  %v1411_v14 = vcombine.low %v1315_v41, %v1316_v16  ;;  %v1043_v50 = vcombine.low %v5219_v35, %v908_v26  ;;  %v1464_v41 = vrot.slane %v1457_v1, %v4797_v13 }
 0x1bb   :  { %v1011_v25 = vrot.slane %v903_v4, %v4797_v13  ;;  %v906_v2 = vmul.f32 %v867_v27, %v5060_v45  ;;  %v627_v21 = vrot.slane %v620_v63, %v4797_v13  ;;  %v989_v15 = vcombine.low %v981_v54, %v988_v6 }
 0x1bc   :  { %v1281_v53 = vpop.permute.xlu0 %1280  ;;  %v1050_v31 = vrot.slane %v1043_v50, %v4797_v13 }
 0x1bd   :  { %v1034_v39 = vrot.slane %v906_v2, %v4797_v13  ;;  %v1320_v38 = vmul.f32 %v1281_v53, %v5060_v45  ;;  %v670_v42 = vsel %vm657_vm1, %v627_v21, 0.0  ;;  %v1012_v5 = vcombine.low %v1004_v30, %v1011_v25 }
 0x1be   :  { %671 = vadd.xlane.f32.xlu1 %v670_v42  ;;  %v1275_v12 = vpop.permute.xlu1 %1274  ;;  %668 = vadd.xlane.f32.xlu0 %v667_v20  ;;  %v996_v56 = vrot.slane %v989_v15, %v4797_v13 }
 0x1bf   :  { %v1448_v11 = vrot.slane %v1320_v38, %v4797_v13  ;;  %v1317_v3 = vmul.f32 %v1275_v12, %v5046_v55  ;;  %v1019_v45 = vrot.slane %v1012_v5, %v4797_v13  ;;  %v1035_v57 = vcombine.low %v1027_v0, %v1034_v39 }
 0x1c0   :  { %v456_v48 = vpop.permute.xlu0 %455  ;;  %v1418_v55 = vrot.slane %v1411_v14, %v4797_v13  ;;  %v1078_v4 = vsel %vm657_vm1, %v996_v56, 0.0 }
 0x1c1   :  { %v1425_v34 = vrot.slane %v1317_v3, %v4797_v13  ;;  %v493_v9 = vmul.f32 %v456_v48, %v4804_v24  ;;  %v1081_v7 = vsel %vm657_vm1, %v1019_v45, 0.0  ;;  %v1449_v52 = vcombine.low %v1441_v10, %v1448_v11 }
 0x1c2   :  { %1082 = vadd.xlane.f32.xlu1 %v1081_v7  ;;  %v458_v47 = vpop.permute.xlu1 %457  ;;  %1490 = vadd.xlane.f32.xlu0 %v1489_v29  ;;  %v1042_v35 = vrot.slane %v1035_v57, %v4797_v13 }
 0x1c3   :  { %v628_v8 = vcombine.low %v492_v36, %v493_v9  ;;  %v494_v32 = vmul.f32 %v458_v47, %v4810_v28  ;;  %v1456_v60 = vrot.slane %v1449_v52, %v4797_v13  ;;  %v1426_v17 = vcombine.low %v1418_v55, %v1425_v34 }
 0x1c4   :  { %v873_v6 = vpop.permute.xlu0 %872  ;;  %v1084_v27 = vsel %vm657_vm1, %v1042_v35, 0.0 }
 0x1c5   :  { %v635_v63 = vrot.slane %v628_v8, %v4797_v13  ;;  %v642_v30 = vrot.slane %v494_v32, %v4797_v13  ;;  %v909_v24 = vmul.f32 %v873_v6, %v4810_v28  ;;  %v1498_v62 = vsel %vm657_vm1, %v1456_v60, 0.0 }
 0x1c6   :  { %1499 = vadd.xlane.f32.xlu1 %v1498_v62  ;;  %v1287_v54 = vpop.permute.xlu1 %1286  ;;  %1079 = vadd.xlane.f32.xlu0 %v1078_v4  ;;  %v1433_v2 = vrot.slane %v1426_v17, %v4797_v13 }
 0x1c7   :  { %v1057_v61 = vrot.slane %v909_v24, %v4797_v13  ;;  %v1323_v16 = vmul.f32 %v1287_v54, %v4810_v28  ;;  %v643_v21 = vcombine.low %v635_v63, %v642_v30 }
 0x1c8   :  { %v1495_v40 = vsel %vm657_vm1, %v1433_v2, 0.0 }
 0x1c9   :  { %v1471_v19 = vrot.slane %v1323_v16, %v4797_v13  ;;  %v1058_v25 = vcombine.low %v1050_v31, %v1057_v61  ;;  %v650_v15 = vrot.slane %v643_v21, %v4797_v13 }
 0x1ca   :  { %1085 = vadd.xlane.f32.xlu0 %v1084_v27 }
 0x1cb   :  { %v1065_v53 = vrot.slane %v1058_v25, %v4797_v13  ;;  %v1472_v28 = vcombine.low %v1464_v41, %v1471_v19  ;;  %v673_v39 = vsel %vm657_vm1, %v650_v15, 0.0  ;;  %v6063_v15 = vmov 2  }
 0x1cc   :  { %4599 = vset.pattern.permute.xlu0 %v6063_v15 }
 0x1cd   :  { %v1087_v20 = vsel %vm657_vm1, %v1065_v53, 0.0  ;;  %v1479_v38 = vrot.slane %v1472_v28, %v4797_v13  ;;  %v6061_v28 = vmov 0  }
 0x1ce   :  { %1088 = vadd.xlane.f32.xlu1 %v1087_v20  ;;  %1496 = vadd.xlane.f32.xlu0 %v1495_v40 }
 0x1cf   :  { %v1501_v42 = vsel %vm657_vm1, %v1479_v38, 0.0  ;;  %4597 = vset.pattern.permute.xlu1 %v6061_v28 }
 0x1d2   :  { %674 = vadd.xlane.f32.xlu0 %v673_v39 }
 0x1d6   :  { %1502 = vadd.xlane.f32.xlu0 %v1501_v42 }
 0x20f   :  { %v660_v5 = vpop.xlane.xlu0 %659 }
 0x213   :  { %v1074_v0 = vpop.xlane.xlu0 %1073 }
 0x214   :  { %v1505_v14 = vsel %vm1504_vm2, %v660_v5, %v1074_v0 }
 0x22b   :  { %v1077_v26 = vpop.xlane.xlu1 %1076 }
 0x22f   :  { %v1488_v12 = vpop.xlane.xlu1 %1487 }
 0x230   :  { %v1512_v10 = vsel %vm1511_vm3, %v1505_v14, %v1488_v12 }
 0x231   :  { %v1518_v11 = vmul.f32 0.35355338, %v1512_v10 }
 0x233   :  { %v1525_v3 = vsel %vm1524_vm4, %v1518_v11, -inf  ;;  %v1494_v45 = vpop.xlane.xlu1 %1493 }
 0x234   :  { %1526 = vmax.xlane.f32.xlu1 %v1525_v3 }
 0x237   :  { %v663_v48 = vpop.xlane.xlu1 %662 }
 0x238   :  { %v1506_v57 = vsel %vm1504_vm2, %v663_v48, %v1077_v26 }
 0x247   :  { %v666_v36 = vpop.xlane.xlu0 %665 }
 0x24b   :  { %v669_v29 = vpop.xlane.xlu0 %668  ;;  %v672_v56 = vpop.xlane.xlu1 %671 }
 0x24f   :  { %v1491_v34 = vpop.xlane.xlu0 %1490  ;;  %v1083_v52 = vpop.xlane.xlu1 %1082 }
 0x250   :  { %v1513_v9 = vsel %vm1511_vm3, %v1506_v57, %v1491_v34  ;;  %v1508_v17 = vsel %vm1504_vm2, %v669_v29, %v1083_v52 }
 0x251   :  { %v1519_v7 = vmul.f32 0.35355338, %v1513_v9 }
 0x253   :  { %v1080_v50 = vpop.xlane.xlu0 %1079  ;;  %v1528_v55 = vsel %vm1524_vm4, %v1519_v7, -inf  ;;  %v1500_v60 = vpop.xlane.xlu1 %1499 }
 0x254   :  { %v1507_v47 = vsel %vm1504_vm2, %v666_v36, %v1080_v50  ;;  %1529 = vmax.xlane.f32.xlu0 %v1528_v55 }
 0x255   :  { %v1514_v46 = vsel %vm1511_vm3, %v1507_v47, %v1494_v45 }
 0x256   :  { %v1520_v8 = vmul.f32 0.35355338, %v1514_v46 }
 0x257   :  { %v1086_v32 = vpop.xlane.xlu0 %1085 }
 0x258   :  { %v1509_v22 = vsel %vm1504_vm2, %v672_v56, %v1086_v32  ;;  %v1531_v6 = vsel %vm1524_vm4, %v1520_v8, -inf }
 0x259   :  { %1532 = vmax.xlane.f32.xlu1 %v1531_v6  ;;  %v1516_v4 = vsel %vm1511_vm3, %v1509_v22, %v1500_v60  ;;  %v6059_v60 = vmov 1  }
 0x25a   :  { %v1522_v35 = vmul.f32 0.35355338, %v1516_v4 }
 0x25b   :  { %v1497_v63 = vpop.xlane.xlu0 %1496  ;;  %v1089_v1 = vpop.xlane.xlu1 %1088 }
 0x25c   :  { %v1515_v30 = vsel %vm1511_vm3, %v1508_v17, %v1497_v63  ;;  %v1537_v24 = vsel %vm1524_vm4, %v1522_v35, -inf }
 0x25d   :  { %v1521_v62 = vmul.f32 0.35355338, %v1515_v30  ;;  %1538 = vmax.xlane.f32.xlu1 %v1537_v24 }
 0x25f   :  { %v675_v54 = vpop.xlane.xlu0 %674  ;;  %v1534_v31 = vsel %vm1524_vm4, %v1521_v62, -inf }
 0x260   :  { %1535 = vmax.xlane.f32.xlu0 %v1534_v31  ;;  %v1510_v61 = vsel %vm1504_vm2, %v675_v54, %v1089_v1 }
 0x263   :  { %v1503_v16 = vpop.xlane.xlu0 %1502 }
 0x264   :  { %v1517_v27 = vsel %vm1511_vm3, %v1510_v61, %v1503_v16 }
 0x265   :  { %v1523_v19 = vmul.f32 0.35355338, %v1517_v27 }
 0x267   :  { %v1540_v25 = vsel %vm1524_vm4, %v1523_v19, -inf }
 0x268   :  { %1541 = vmax.xlane.f32.xlu0 %v1540_v25 }
 0x2c1   :  { %v1527_v2 = vpop.xlane.xlu1 %1526 }
 0x2c2   :  { %v1543_v21 = vsub.f32 %v1518_v11, %v1527_v2 }
 0x2c4   :  { %v1549_v41 = vmul.f32 1.442695, %v1543_v21 }
 0x2c6   :  { %4639 = vpow2.f32 %v1549_v41 }
 0x2d0   :  { %v4640_v53 = vpop.eup %4639 }
 0x2d1   :  { %v1561_v20 = vsel %vm1524_vm4, %v4640_v53, 0.0 }
 0x2d2   :  { %1562 = vadd.xlane.f32.xlu1 %v1561_v20 }
 0x2e1   :  { %v1530_v40 = vpop.xlane.xlu0 %1529 }
 0x2e2   :  { %v1544_v39 = vsub.f32 %v1519_v7, %v1530_v40 }
 0x2e4   :  { %v1551_v38 = vmul.f32 1.442695, %v1544_v39 }
 0x2e6   :  { %4641 = vpow2.f32 %v1551_v38  ;;  %v1533_v42 = vpop.xlane.xlu1 %1532 }
 0x2e7   :  { %v1545_v5 = vsub.f32 %v1520_v8, %v1533_v42 }
 0x2e9   :  { %v1553_v26 = vmul.f32 1.442695, %v1545_v5 }
 0x2ea   :  { %v1539_v0 = vpop.xlane.xlu1 %1538 }
 0x2eb   :  { %4643 = vpow2.f32 %v1553_v26  ;;  %v1547_v14 = vsub.f32 %v1522_v35, %v1539_v0 }
 0x2ed   :  { %v1557_v12 = vmul.f32 1.442695, %v1547_v14  ;;  %v1536_v10 = vpop.xlane.xlu0 %1535 }
 0x2ee   :  { %v1546_v11 = vsub.f32 %v1521_v62, %v1536_v10 }
 0x2ef   :  { %4645 = vpow2.f32 %v1557_v12 }
 0x2f0   :  { %v4642_v3 = vpop.eup %4641  ;;  %v1555_v45 = vmul.f32 1.442695, %v1546_v11 }
 0x2f1   :  { %v1564_v36 = vsel %vm1524_vm4, %v4642_v3, 0.0 }
 0x2f2   :  { %4647 = vpow2.f32 %v1555_v45  ;;  %1565 = vadd.xlane.f32.xlu0 %v1564_v36 }
 0x2f5   :  { %v4644_v48 = vpop.eup %4643  ;;  %v1542_v29 = vpop.xlane.xlu0 %1541 }
 0x2f6   :  { %v1548_v56 = vsub.f32 %v1523_v19, %v1542_v29  ;;  %v1567_v57 = vsel %vm1524_vm4, %v4644_v48, 0.0 }
 0x2f7   :  { %1568 = vadd.xlane.f32.xlu1 %v1567_v57 }
 0x2f8   :  { %v1559_v34 = vmul.f32 1.442695, %v1548_v56 }
 0x2f9   :  { %v4646_v9 = vpop.eup %4645 }
 0x2fa   :  { %4649 = vpow2.f32 %v1559_v34  ;;  %v1573_v7 = vsel %vm1524_vm4, %v4646_v9, 0.0 }
 0x2fb   :  { %1574 = vadd.xlane.f32.xlu1 %v1573_v7 }
 0x2fc   :  { %v4648_v52 = vpop.eup %4647 }
 0x2fd   :  { %v1570_v50 = vsel %vm1524_vm4, %v4648_v52, 0.0 }
 0x2fe   :  { %1571 = vadd.xlane.f32.xlu0 %v1570_v50 }
 0x304   :  { %v4650_v55 = vpop.eup %4649 }
 0x305   :  { %v1576_v47 = vsel %vm1524_vm4, %v4650_v55, 0.0 }
 0x306   :  { %1577 = vadd.xlane.f32.xlu0 %v1576_v47 }
 0x35f   :  { %v1563_v46 = vpop.xlane.xlu1 %1562 }
 0x360   :  { %4651 = vrcp.f32 %v1563_v46 }
 0x36a   :  { %v4652_v8 = vpop.eup %4651 }
 0x36b   :  { %v1580_v32 = vmul.f32 %v4652_v8, %v4640_v53 }
 0x36d   :  { %1593 = vperm.xlu1 %4597, %v1580_v32   ;;  %1676 = vperm.xlu0 %4599, %v1580_v32  }
 0x371   :  { %4598 = vset.pattern.permute.xlu1 %v6059_v60  ;;  %4600 = vset.pattern.permute.xlu0 %v6061_v28 }
 0x372   :  { %1634 = vperm.xlu1 %4598, %v1580_v32   ;;  %v6084_v32 = vld [vmem:[#allocation13_spill] sm:$0xff] }
 0x37f   :  { %v1566_v22 = vpop.xlane.xlu0 %1565 }
 0x380   :  { %4653 = vrcp.f32 %v1566_v22 }
 0x384   :  { %v1569_v17 = vpop.xlane.xlu1 %1568 }
 0x388   :  { %v1575_v30 = vpop.xlane.xlu1 %1574 }
 0x38a   :  { %v4654_v6 = vpop.eup %4653 }
 0x38b   :  { %v1572_v4 = vpop.xlane.xlu0 %1571  ;;  %v1582_v35 = vmul.f32 %v4654_v6, %v4642_v3  ;;  %v6085_v6 = vld [vmem:[#allocation6_spill] sm:$0xff] }
 0x38c   :  { %4655 = vrcp.f32 %v1572_v4 }
 0x38d   :  { %1638 = vperm.xlu1 %4598, %v1582_v35   ;;  %1598 = vperm.xlu0 %4600, %v1582_v35   ;;  %4657 = vrcp.f32 %v1569_v17  ;;  %v6086_v17 = vld [vmem:[#allocation11_spill] sm:$0xff] }
 0x391   :  { %4601 = vset.pattern.permute.xlu1 %v6063_v15  ;;  %4604 = vset.pattern.permute.xlu0 %v6063_v15 }
 0x392   :  { %1680 = vperm.xlu1 %4601, %v1582_v35  }
 0x393   :  { %v1578_v63 = vpop.xlane.xlu0 %1577 }
 0x394   :  { %4659 = vrcp.f32 %v1578_v63 }
 0x395   :  { %4661 = vrcp.f32 %v1575_v30 }
 0x396   :  { %v4656_v24 = vpop.eup %4655  ;;  %4602 = vset.pattern.permute.xlu1 %v6061_v28 }
 0x397   :  { %v1586_v62 = vmul.f32 %v4656_v24, %v4648_v52  ;;  %v4658_v54 = vpop.eup %4657 }
 0x398   :  { %v1584_v61 = vmul.f32 %v4658_v54, %v4644_v48 }
 0x399   :  { %1688 = vperm.xlu0 %4604, %v1586_v62   ;;  %1608 = vperm.xlu1 %4602, %v1586_v62  }
 0x39d   :  { %4603 = vset.pattern.permute.xlu1 %v6059_v60  ;;  %4608 = vset.pattern.permute.xlu0 %v6061_v28 }
 0x39e   :  { %v4660_v31 = vpop.eup %4659  ;;  %1646 = vperm.xlu1 %4603, %v1586_v62  }
 0x39f   :  { %v1590_v1 = vmul.f32 %v4660_v31, %v4650_v55  ;;  %v4662_v16 = vpop.eup %4661  ;;  %v6087_v31 = vld [vmem:[#allocation7_spill] sm:$0xff] }
 0x3a0   :  { %v1588_v27 = vmul.f32 %v4662_v16, %v4646_v9 }
 0x3a1   :  { %1618 = vperm.xlu0 %4608, %v1590_v1  }
 0x3a2   :  { %4605 = vset.pattern.permute.xlu1 %v6061_v28 }
 0x3a3   :  { %1603 = vperm.xlu1 %4605, %v1584_v61  }
 0x3a5   :  { %4611 = vset.pattern.permute.xlu0 %v6063_v15 }
 0x3a6   :  { %1696 = vperm.xlu0 %4611, %v1590_v1  }
 0x3a7   :  { %1613 = vperm.xlu1 %4605, %v1588_v27  }
 0x3aa   :  { %4612 = vset.pattern.permute.xlu0 %v6061_v28 }
 0x3ab   :  { %4606 = vset.pattern.permute.xlu1 %v6059_v60 }
 0x3ac   :  { %1642 = vperm.xlu1 %4606, %v1584_v61  }
 0x3b0   :  { %1650 = vperm.xlu1 %4606, %v1588_v27  }
 0x3b4   :  { %4607 = vset.pattern.permute.xlu1 %v6063_v15 }
 0x3b5   :  { %1684 = vperm.xlu1 %4607, %v1584_v61  }
 0x3b9   :  { %4609 = vset.pattern.permute.xlu1 %v6059_v60 }
 0x3ba   :  { %1654 = vperm.xlu1 %4609, %v1590_v1  }
 0x3be   :  { %4610 = vset.pattern.permute.xlu1 %v6063_v15 }
 0x3bf   :  { %1692 = vperm.xlu1 %4610, %v1588_v27  }
 0x3c3   :  { %4613 = vset.pattern.permute.xlu1 %v6059_v60 }
 0x3ec   :  { %v1594_v19 = vpop.permute.xlu1 %1593  ;;  %v1677_v40 = vpop.permute.xlu0 %1676 }
 0x3ed   :  { %v1627_v12 = vmul.f32 %v1594_v19, %v4826_v33  ;;  %v6088_v19 = vld [vmem:[#allocation10_spill] sm:$0xff] }
 0x3f1   :  { %v1635_v25 = vpop.permute.xlu1 %1634 }
 0x3f2   :  { %v1663_v5 = vmul.f32 %v1635_v25, %v4854_v43  ;;  %v1705_v43 = vmul.f32 %v1677_v40, %v4894_v58 }
 0x3f4   :  { %v1669_v36 = vadd.f32 %v1663_v5, %v1627_v12  ;;  %v4630_v12 = vld [vmem:[%s6041_s3 + $0x8] sm:$0xff]  }
 0x3f6   :  { %v1711_v33 = vadd.f32 %v1705_v43, %v1669_v36 }
 0x3f8   :  { %v1729_v47 = vrot.slane %v1711_v33, %v4797_v13 }
 0x3fa   :  { %v1730_v62 = vcombine.high %v1729_v47, %v1729_v47  ;;  %v1737_v54 = vrot.slane %v1729_v47, %v4797_v13 }
 0x40c   :  { %v1639_v2 = vpop.permute.xlu1 %1638  ;;  %v1599_v38 = vpop.permute.xlu0 %1598 }
 0x40d   :  { %v1664_v26 = vmul.f32 %v1639_v2, %v4874_v51  ;;  %v1628_v0 = vmul.f32 %v1599_v38, %v4858_v44 }
 0x40f   :  { %v1670_v48 = vadd.f32 %v1664_v26, %v1628_v0  ;;  %v1744_v26 = vrot.slane %v1730_v62, %v4797_v13  ;;  %v1745_v0 = vcombine.high %v1737_v54, %v1737_v54 }
 0x411   :  { %v1681_v21 = vpop.permute.xlu1 %1680 }
 0x412   :  { %v1706_v10 = vmul.f32 %v1681_v21, %v4995_v59 }
 0x414   :  { %v1712_v51 = vadd.f32 %v1706_v10, %v1670_v48 }
 0x416   :  { %v1752_v50 = vrot.slane %v1712_v51, %v4797_v13 }
 0x418   :  { %v1609_v41 = vpop.permute.xlu1 %1608  ;;  %v1689_v3 = vpop.permute.xlu0 %1688  ;;  %v1753_v8 = vcombine.high %v1752_v50, %v1752_v50  ;;  %v1760_v35 = vrot.slane %v1752_v50, %v4797_v13 }
 0x419   :  { %v1630_v11 = vmul.f32 %v1609_v41, %v4953_v23  ;;  %v1708_v44 = vmul.f32 %v1689_v3, %v5056_v37  ;;  %v6083_v23 = vld [vmem:[#allocation8_spill] sm:$0xff] }
 0x41a   :  { %v1767_v21 = vrot.slane %v1753_v8, %v4797_v13  ;;  %v1862_v36 = vcombine.low %v1745_v0, %v1760_v35 }
 0x41d   :  { %v1647_v53 = vpop.permute.xlu1 %1646 }
 0x41e   :  { %v1666_v14 = vmul.f32 %v1647_v53, %v4985_v49  ;;  %v6082_v49 = vld [vmem:[#allocation9_spill] sm:$0xff] }
 0x420   :  { %v1672_v29 = vadd.f32 %v1666_v14, %v1630_v11  ;;  %v1619_v57 = vpop.permute.xlu0 %1618 }
 0x421   :  { %v1632_v22 = vmul.f32 %v1619_v57, %v6084_v32 }
 0x422   :  { %v1604_v20 = vpop.permute.xlu1 %1603  ;;  %v1714_v59 = vadd.f32 %v1708_v44, %v1672_v29  ;;  %v1861_v44 = vcombine.low %v1737_v54, %v1744_v26 }
 0x423   :  { %v1629_v34 = vmul.f32 %v1604_v20, %v6082_v49  ;;  %v1768_v20 = vcombine.high %v1760_v35, %v1760_v35 }
 0x425   :  { %v1697_v58 = vpop.permute.xlu0 %1696 }
 0x426   :  { %v1614_v39 = vpop.permute.xlu1 %1613  ;;  %v1710_v1 = vmul.f32 %v1697_v58, %v6087_v31 }
 0x427   :  { %v1631_v25 = vmul.f32 %v1614_v39, %v6088_v19  ;;  %v4629_v39 = vld [vmem:[%s6041_s3] sm:$0xff]  }
 0x428   :  { %4548 = vmatprep.subr.bf16.mxu1 %v4629_v39 }
 0x429   :  { %4549 = vmatpush3.bf16.msra.mxu1 %v4629_v39 }
 0x42a   :  { %4550 = vmatprep.subr.bf16.mxu1 %v4630_v12 }
 0x42b   :  { %v1643_v42 = vpop.permute.xlu1 %1642 }
 0x42c   :  { %v1665_v56 = vmul.f32 %v1643_v42, %v5032_v18  ;;  %v1798_v18 = vrot.slane %v1714_v59, %v4797_v13  ;;  %v6089_v42 = vld [vmem:[#allocation12_spill] sm:$0xff] }
 0x42d   :  { %4551 = vmatpush3.bf16.msra.mxu1 %v4630_v12 }
 0x42e   :  { %v1671_v7 = vadd.f32 %v1665_v56, %v1629_v34  ;;  %v1799_v16 = vcombine.high %v1798_v18, %v1798_v18  ;;  %v1806_v27 = vrot.slane %v1798_v18, %v4797_v13  ;;  %v1863_v56 = vcombine.low %v1767_v21, %v1768_v20 }
 0x42f   :  { %v1651_v45 = vpop.permute.xlu1 %1650  ;;  %v1871_v18 = vrot.slane %v1861_v44, %v4797_v13 }
 0x430   :  { %v1667_v63 = vmul.f32 %v1651_v45, %v6086_v17  ;;  %v1813_v10 = vrot.slane %v1799_v16, %v4797_v13  ;;  %v1814_v11 = vcombine.high %v1806_v27, %v1806_v27 }
 0x432   :  { %v1673_v40 = vadd.f32 %v1667_v63, %v1631_v25  ;;  %v1911_v34 = vcombine.low %v1813_v10, %v1814_v11  ;;  %v4631_v25 = vld [vmem:[%s6039_s1 + $0x10] sm:$0xff]  }
 0x433   :  { %4556 = vmatprep.subr.bf16.mxu0 %v4631_v25 }
 0x434   :  { %v1685_v9 = vpop.permute.xlu1 %1684  ;;  %v1927_v32 = vrot.slane %v1911_v34, %v4797_v13  ;;  %4557 = vmatpush3.bf16.msra.mxu0 %v4631_v25 }
 0x435   :  { %v1707_v52 = vmul.f32 %v1685_v9, %v6083_v23 }
 0x437   :  { %v1713_v55 = vadd.f32 %v1707_v52, %v1671_v7  ;;  %v1878_v7 = vrot.slane %v1862_v36, %v4797_v13  ;;  %v1885_v52 = vrot.slane %v1863_v56, %v4797_v13 }
 0x439   :  { %v1775_v46 = vrot.slane %v1713_v55, %v4797_v13  ;;  %v1655_v37 = vpop.permute.xlu1 %1654  ;;  %v1893_v35 = vcombine.low %v1871_v18, %v1878_v7 }
 0x43a   :  { %v1668_v4 = vmul.f32 %v1655_v37, %v6085_v6 }
 0x43b   :  { %v1776_v30 = vcombine.high %v1775_v46, %v1775_v46  ;;  %v1783_v24 = vrot.slane %v1775_v46, %v4797_v13  ;;  %v1901_v62 = vrot.slane %v1893_v35, %v4797_v13 }
 0x43c   :  { %v1674_v61 = vadd.f32 %v1668_v4, %v1632_v22 }
 0x43d   :  { %v1790_v2 = vrot.slane %v1776_v30, %v4797_v13  ;;  %v1791_v38 = vcombine.high %v1783_v24, %v1783_v24 }
 0x43e   :  { %v1716_v41 = vadd.f32 %v1710_v1, %v1674_v61  ;;  %v1693_v53 = vpop.permute.xlu1 %1692 }
 0x43f   :  { %v1709_v5 = vmul.f32 %v1693_v53, %v6089_v42  ;;  %v1864_v3 = vcombine.low %v1783_v24, %v1790_v2  ;;  %v1910_v43 = vcombine.low %v1791_v38, %v1806_v27  ;;  %v4632_v2 = vld [vmem:[%s6039_s1 + $0x18] sm:$0xff]  }
 0x440   :  { %v1844_v14 = vrot.slane %v1716_v41, %v4797_v13  ;;  %4558 = vmatprep.subr.bf16.mxu0 %v4632_v2  ;;  %v4485_v41 = vld [vmem:[%s6042_s4] ss:$0 sm:$0xff] }
 0x441   :  { %v1715_v45 = vadd.f32 %v1709_v5, %v1673_v40  ;;  %v1892_v33 = vrot.slane %v1864_v3, %v4797_v13  ;;  %v1920_v50 = vrot.slane %v1910_v43, %v4797_v13  ;;  %4559 = vmatpush3.bf16.msra.mxu0 %v4632_v2 }
 0x442   :  { %v1845_v48 = vcombine.high %v1844_v14, %v1844_v14  ;;  %v1852_v29 = vrot.slane %v1844_v14, %v4797_v13  ;;  %v4495_v14 = vld [vmem:[%s6040_s2 + $0x1] ss:$0 sm:$0xff] }
 0x443   :  { %v1821_v51 = vrot.slane %v1715_v45, %v4797_v13  ;;  %v1894_v8 = vcombine.low %v1885_v52, %v1892_v33  ;;  %v1942_v17 = vcombine.low %v1920_v50, %v1927_v32 }
 0x444   :  { %v1859_v57 = vrot.slane %v1845_v48, %v4797_v13  ;;  %v1860_v49 = vcombine.high %v1852_v29, %v1852_v29 }
 0x445   :  { %v1822_v9 = vcombine.high %v1821_v51, %v1821_v51  ;;  %v1829_v59 = vrot.slane %v1821_v51, %v4797_v13  ;;  %v1908_v30 = vrot.slane %v1894_v8, %v4797_v13  ;;  %v1950_v54 = vrot.slane %v1942_v17, %v4797_v13 }
 0x446   :  { %v1959_v23 = vcombine.low %v1859_v57, %v1860_v49  ;;  %v6090_v49 = vld [vmem:[#allocation5_spill] sm:$0xff] }
 0x447   :  { %v1836_v55 = vrot.slane %v1822_v9, %v4797_v13  ;;  %v1837_v47 = vcombine.high %v1829_v59, %v1829_v59  ;;  %v1909_v1 = vcombine.low %v1901_v62, %v1908_v30 }
 0x448   :  { %v1966_v58 = vrot.slane %v1959_v23, %v4797_v13 }
 0x449   :  { %v1912_v46 = vcombine.low %v1829_v59, %v1836_v55  ;;  %v1913_v37 = vcombine.low %v1837_v47, %v1852_v29 }
 0x44a   :  { %v1973_v22 = vrot.slane %v1966_v58, %v4797_v13 }
 0x44b   :  { %v1934_v6 = vrot.slane %v1912_v46, %v4797_v13  ;;  %v1941_v4 = vrot.slane %v1913_v37, %v4797_v13 }
 0x44c   :  { %v1978_v63 = vpack.c.bf16 %v1973_v22, %v1973_v22 }
 0x44d   :  { %v1943_v24 = vcombine.low %v1934_v6, %v1941_v4 }
 0x44e   :  { %1994 = vrot.lane.b32.xlu0 %v1978_v63, %s4718_s29 }
 0x44f   :  { %v1957_v31 = vrot.slane %v1943_v24, %v4797_v13 }
 0x451   :  { %v1958_v61 = vcombine.low %v1950_v54, %v1957_v31 }
 0x453   :  { %v1977_v16 = vpack.c.bf16 %v1958_v61, %v1909_v1 }
 0x455   :  { %1992 = vrot.lane.b32.xlu1 %v1977_v16, %s4718_s29 }
 0x4c0   :  { %v1995_v19 = vpop.permute.xlu0 %1994 }
 0x4c7   :  { %v1993_v27 = vpop.permute.xlu1 %1992 }
 0x4c8   :  { %4552 = vmatprep.mubr.msk.bf16.mxu1 %vm65_vm0, %v1993_v27 }
 0x4c9   :  { %4553 = vmatmul.mubr.msk.bf16.vlgmr.msra.gmra.mrb[0].mxu1 %vm65_vm0, %v1995_v19 }
 0x59c   :  { %v4554_v21 = vpop.f32.mrb[0].mxu1 }
 0x59d   :  { %v2048_v53 = vpop.f32.mrb[1].mxu1  ;;  %v2057_v40 = vadd.f32 %v4554_v21, %v4485_v41 }
 0x59e   :  { %v4555_v20 = vpop.f32.mrb[2].mxu1  ;;  %v2049_v42 = vadd.f32 %v4485_v41, %v2048_v53 }
 0x59f   :  { %v2051_v38 = vpop.f32.mrb[3].mxu1  ;;  %v2063_v0 = vpack.c.bf16 %v2057_v40, %v2057_v40 }
 0x5a0   :  { %v2052_v5 = vadd.f32 %v4485_v41, %v2051_v38 }
 0x5a2   :  { %v2062_v26 = vpack.c.bf16 %v2052_v5, %v2049_v42 }
 0x5a4   :  { %4560 = vmatprep.mubr.msk.bf16.mxu0 %vm65_vm0, %v2062_v26 }
 0x5a5   :  { %4561 = vmatmul.mubr.msk.bf16.vlgmr.msra.gmra.mrb[4].mxu0 %vm65_vm0, %v2063_v0 }
 0x678   :  { %v4562_v39 = vpop.f32.mrb[4].mxu0 }
 0x679   :  { %v2138_v12 = vadd.f32 %v4562_v39, %v4495_v14  ;;  %v2129_v10 = vpop.f32.mrb[5].mxu0 }
 0x67a   :  { %v2130_v11 = vadd.f32 %v4495_v14, %v2129_v10  ;;  %v4563_v3 = vpop.f32.mrb[6].mxu0 }
 0x67b   :  { %v2250_v45 = vrot.slane %v2138_v12, %v4797_v13  ;;  %v2132_v36 = vpop.f32.mrb[7].mxu0 }
 0x67c   :  { %v2146_v48 = vcombine.high %v2130_v11, %v2130_v11  ;;  %v2153_v29 = vrot.slane %v2130_v11, %v4797_v13  ;;  %v2133_v52 = vadd.f32 %v4495_v14, %v2132_v36 }
 0x67d   :  { %v2251_v56 = vcombine.high %v2250_v45, %v2250_v45  ;;  %v5407_v43 = vrot.slane %v2250_v45, %v4797_v13 }
 0x67e   :  { %v2161_v51 = vcombine.high %v2153_v29, %v2153_v29  ;;  %v5410_v44 = vrot.slane %v2153_v29, %v4797_v13  ;;  %v5413_v57 = vrot.slane %v2146_v48, %v4797_v13  ;;  %v2202_v8 = vrot.slane %v2133_v52, %v4797_v13 }
 0x67f   :  { %v5417_v34 = vrot.slane %v5407_v43, %v6090_v49  ;;  %v5420_v33 = vrot.slane %v2251_v56, %v4797_v13  ;;  %v2195_v40 = vcombine.high %v2133_v52, %v2133_v52 }
 0x680   :  { %v5423_v9 = vrot.slane %v2161_v51, %v4797_v13  ;;  %v5429_v7 = vrot.slane %v5410_v44, %v6090_v49  ;;  %v5433_v23 = vrot.slane %v5413_v57, %v4797_v13  ;;  %v5456_v32 = vcombine.high %v5410_v44, %v5410_v44 }
 0x681   :  { %6091 = vst [vmem:[#allocation9_spill] sm:$0xff] %v5417_v34  ;;  %v2843_v59 = vrot.slane %v5417_v34, %v4797_v13  ;;  %v5442_v18 = vrot.slane %v5420_v33, %v6090_v49  ;;  %v5471_v63 = vrot.slane %v2202_v8, %v4797_v13  ;;  %v2210_v38 = vcombine.high %v2202_v8, %v2202_v8 }
 0x682   :  { %v2314_v47 = vrot.slane %v5429_v7, %v4797_v13  ;;  %v5446_v58 = vrot.slane %v5423_v9, %v6090_v49  ;;  %v5464_v4 = vrot.slane %v5433_v23, %v6090_v49  ;;  %v5480_v62 = vrot.slane %v5456_v32, %v6090_v49 }
 0x683   :  { %v5436_v50 = vrot.slane %v2843_v59, %v4797_v13  ;;  %v2844_v55 = vcombine.high %v2843_v59, %v2843_v59  ;;  %6092 = vst [vmem:[#allocation8_spill] sm:$0xff] %v5442_v18  ;;  %v3257_v37 = vrot.slane %v5442_v18, %v4797_v13  ;;  %v5492_v16 = vrot.slane %v5471_v63, %v6090_v49 }
 0x684   :  { %v2322_v22 = vrot.slane %v2314_v47, %v4797_v13  ;;  %v2728_v6 = vrot.slane %v5446_v58, %v4797_v13  ;;  %v2315_v17 = vcombine.high %v2314_v47, %v2314_v47  ;;  %v2751_v24 = vrot.slane %v5464_v4, %v4797_v13 }
 0x685   :  { %2890 = vrot.lane.b32.xlu1 %v5436_v50, %s4714_s0  ;;  %v2858_v46 = vrot.slane %v2844_v55, %v4797_v13  ;;  %v5468_v35 = vrot.slane %v3257_v37, %v4797_v13  ;;  %v3142_v61 = vrot.slane %v5480_v62, %v4797_v13  ;;  %6093 = vst [vmem:[#allocation13_spill] sm:$0xff] %v5492_v16 }
 0x686   :  { %v2736_v30 = vrot.slane %v2728_v6, %v4797_v13  ;;  %v2329_v54 = vrot.slane %v2315_v17, %v4797_v13  ;;  %v2729_v31 = vcombine.high %v2728_v6, %v2728_v6  ;;  %v5486_v1 = vrot.slane %v2751_v24, %v4797_v13 }
 0x687   :  { %2892 = vrot.lane.b32.xlu0 %v2858_v46, %s4714_s0  ;;  %v2752_v19 = vcombine.high %v2751_v24, %v2751_v24  ;;  %v5499_v25 = vrot.slane %v3142_v61, %v4797_v13  ;;  %v3188_v2 = vrot.slane %v5492_v16, %v4797_v13  ;;  %v5505_v21 = vcombine.high %v5423_v9, %v5423_v9 }
 0x688   :  { %v2743_v27 = vrot.slane %v2729_v31, %v4797_v13  ;;  %v3143_v53 = vcombine.high %v3142_v61, %v3142_v61  ;;  %v5516_v42 = vcombine.high %v5433_v23, %v5433_v23  ;;  %v2330_v14 = vcombine.high %v2322_v22, %v2322_v22 }
 0x689   :  { %2446 = vrot.lane.b32.xlu1 %v2322_v22, %s4714_s0  ;;  %v2766_v41 = vrot.slane %v2752_v19, %v4797_v13  ;;  %v5512_v20 = vrot.slane %v3188_v2, %v4797_v13  ;;  %v3189_v26 = vcombine.high %v3188_v2, %v3188_v2  ;;  %v5523_v0 = vrot.slane %v5505_v21, %v6090_v49 }
 0x68a   :  { %v3157_v5 = vrot.slane %v3143_v53, %v4797_v13  ;;  %v3258_v39 = vcombine.high %v3257_v37, %v3257_v37  ;;  %v2209_v12 = vrot.slane %v2195_v40, %v4797_v13  ;;  %v5528_v10 = vrot.slane %v2210_v38, %v4797_v13 }
 0x68b   :  { %3304 = vrot.lane.b32.xlu0 %v5468_v35, %s4714_s0  ;;  %v3203_v11 = vrot.slane %v3189_v26, %v4797_v13  ;;  %v2337_v3 = vrot.slane %v5523_v0, %v4797_v13  ;;  %v5536_v45 = vrot.slane %v5516_v42, %v6090_v49  ;;  %v2744_v29 = vcombine.high %v2736_v30, %v2736_v30 }
 0x68c   :  { %v3272_v36 = vrot.slane %v3258_v39, %v4797_v13  ;;  %v5541_v48 = vrot.slane %v2209_v12, %v4797_v13  ;;  %v5548_v59 = vrot.slane %v5528_v10, %v6090_v49  ;;  %v2162_v55 = vcombine.high %v5413_v57, %v5413_v57 }
 0x68d   :  { %2860 = vrot.lane.b32.xlu1 %v2736_v30, %s4714_s0  ;;  %6094 = vst [vmem:[#allocation6_spill] sm:$0xff] %v5536_v45  ;;  %v2338_v56 = vcombine.high %v2337_v3, %v2337_v3  ;;  %v2360_v51 = vrot.slane %v5536_v45, %v4797_v13  ;;  %v2345_v52 = vrot.slane %v2337_v3, %v4797_v13 }
 0x68e   :  { %v5556_v47 = vcombine.high %v5471_v63, %v5471_v63  ;;  %v2383_v8 = vrot.slane %v5548_v59, %v4797_v13  ;;  %v5564_v22 = vrot.slane %v5541_v48, %v6090_v49  ;;  %v5571_v6 = vrot.slane %v2162_v55, %v4797_v13 }
 0x68f   :  { %2448 = vrot.lane.b32.xlu0 %v2329_v54, %s4714_s0  ;;  %v2352_v46 = vrot.slane %v2338_v56, %v4797_v13  ;;  %v2361_v37 = vcombine.high %v2360_v51, %v2360_v51  ;;  %v5568_v57 = vrot.slane %v2360_v51, %v4797_v13  ;;  %v2353_v51 = vcombine.high %v2345_v52, %v2345_v52 }
 0x690   :  { %v2384_v30 = vcombine.high %v2383_v8, %v2383_v8  ;;  %v2406_v24 = vrot.slane %v5564_v22, %v4797_v13  ;;  %v5580_v54 = vrot.slane %v5556_v47, %v6090_v49  ;;  %v2391_v31 = vrot.slane %v2383_v8, %v4797_v13 }
 0x691   :  { %2866 = vrot.lane.b32.xlu1 %v5486_v1, %s4714_s0  ;;  %v2375_v17 = vrot.slane %v2361_v37, %v4797_v13  ;;  %v5590_v2 = vrot.slane %v5571_v6, %v6090_v49  ;;  %v3158_v55 = vcombine.high %v5499_v25, %v5499_v25  ;;  %v3204_v8 = vcombine.high %v5512_v20, %v5512_v20 }
 0x692   :  { %v2398_v61 = vrot.slane %v2384_v30, %v4797_v13  ;;  %v2797_v19 = vrot.slane %v5580_v54, %v4797_v13 }
 0x693   :  { %2862 = vrot.lane.b32.xlu0 %v2743_v27, %s4714_s0  ;;  %v2407_v27 = vcombine.high %v2406_v24, %v2406_v24  ;;  %v3165_v38 = vrot.slane %v5590_v2, %v4797_v13 }
 0x694   :  { %v2798_v40 = vcombine.high %v2797_v19, %v2797_v19 }
 0x695   :  { %3274 = vrot.lane.b32.xlu1 %v5499_v25, %s4714_s0  ;;  %v2421_v53 = vrot.slane %v2407_v27, %v4797_v13  ;;  %v3173_v39 = vrot.slane %v3165_v38, %v4797_v13  ;;  %v5646_v25 = vcombine.high %v5541_v48, %v5541_v48 }
 0x696   :  { %v2812_v26 = vrot.slane %v2798_v40, %v4797_v13 }
 0x697   :  { %2868 = vrot.lane.b32.xlu0 %v2766_v41, %s4714_s0  ;;  %v5594_v41 = vrot.slane %v2406_v24, %v4797_v13 }
 0x699   :  { %3286 = vrot.lane.b32.xlu1 %v5512_v20, %s4714_s0 }
 0x69b   :  { %3276 = vrot.lane.b32.xlu0 %v3157_v5, %s4714_s0  ;;  %v5603_v5 = vrot.slane %v2797_v19, %v4797_v13 }
 0x69d   :  { %2450 = vrot.lane.b32.xlu1 %v2330_v14, %s4714_s0  ;;  %v3166_v14 = vcombine.high %v3165_v38, %v3165_v38 }
 0x69f   :  { %3288 = vrot.lane.b32.xlu0 %v3203_v11, %s4714_s0  ;;  %v2211_v11 = vcombine.high %v2209_v12, %v2209_v12  ;;  %v3180_v3 = vrot.slane %v3166_v14, %v4797_v13 }
 0x6a1   :  { %3306 = vrot.lane.b32.xlu1 %v3272_v36, %s4714_s0  ;;  %v5614_v36 = vcombine.high %v5571_v6, %v5571_v6  ;;  %v5620_v56 = vrot.slane %v2211_v11, %v4797_v13 }
 0x6a3   :  { %2864 = vrot.lane.b32.xlu0 %v2744_v29, %s4714_s0  ;;  %v2767_v29 = vcombine.high %v5486_v1, %v5486_v1  ;;  %v5625_v12 = vrot.slane %v5614_v36, %v6090_v49  ;;  %v2399_v1 = vcombine.high %v2391_v31, %v2391_v31 }
 0x6a5   :  { %2452 = vrot.lane.b32.xlu1 %v2345_v52, %s4714_s0  ;;  %6095 = vst [vmem:[#allocation11_spill] sm:$0xff] %v5625_v12  ;;  %v2774_v37 = vrot.slane %v5625_v12, %v4797_v13  ;;  %v5639_v52 = vrot.slane %v5620_v56, %v6090_v49 }
 0x6a7   :  { %2454 = vrot.lane.b32.xlu0 %v2352_v46, %s4714_s0  ;;  %v5632_v46 = vcombine.high %v5528_v10, %v5528_v10  ;;  %6096 = vst [vmem:[#allocation7_spill] sm:$0xff] %v5639_v52  ;;  %v2775_v30 = vcombine.high %v2774_v37, %v2774_v37  ;;  %v2820_v24 = vrot.slane %v5639_v52, %v4797_v13 }
 0x6a9   :  { %2458 = vrot.lane.b32.xlu1 %v5568_v57, %s4714_s0  ;;  %v2789_v20 = vrot.slane %v2775_v30, %v4797_v13  ;;  %v2821_v27 = vcombine.high %v2820_v24, %v2820_v24  ;;  %v2828_v40 = vrot.slane %v2820_v24, %v4797_v13  ;;  %v2813_v24 = vcombine.high %v5603_v5, %v5603_v5 }
 0x6ab   :  { %2460 = vrot.lane.b32.xlu0 %v2375_v17, %s4714_s0  ;;  %v3181_v17 = vcombine.high %v3173_v39, %v3173_v39  ;;  %v2835_v38 = vrot.slane %v2821_v27, %v4797_v13 }
 0x6ad   :  { %2464 = vrot.lane.b32.xlu1 %v2391_v31, %s4714_s0  ;;  %v5653_v31 = vrot.slane %v5632_v46, %v6090_v49 }
 0x6af   :  { %2466 = vrot.lane.b32.xlu0 %v2398_v61, %s4714_s0  ;;  %v2782_v61 = vrot.slane %v2774_v37, %v4797_v13  ;;  %v3211_v19 = vrot.slane %v5653_v31, %v4797_v13 }
 0x6b1   :  { %2470 = vrot.lane.b32.xlu1 %v5594_v41, %s4714_s0  ;;  %v3219_v11 = vrot.slane %v3211_v19, %v4797_v13  ;;  %v2790_v30 = vcombine.high %v2782_v61, %v2782_v61 }
 0x6b3   :  { %2472 = vrot.lane.b32.xlu0 %v2421_v53, %s4714_s0  ;;  %v5663_v53 = vrot.slane %v5646_v25, %v6090_v49 }
 0x6b5   :  { %2878 = vrot.lane.b32.xlu1 %v5603_v5, %s4714_s0  ;;  %6097 = vst [vmem:[#allocation10_spill] sm:$0xff] %v5663_v53  ;;  %v3234_v14 = vrot.slane %v5663_v53, %v4797_v13  ;;  %v2859_v5 = vcombine.high %v5436_v50, %v5436_v50 }
 0x6b7   :  { %2880 = vrot.lane.b32.xlu0 %v2812_v26, %s4714_s0  ;;  %v3212_v26 = vcombine.high %v3211_v19, %v3211_v19  ;;  %v3227_v19 = vcombine.high %v3219_v11, %v3219_v11 }
 0x6b9   :  { %3280 = vrot.lane.b32.xlu1 %v3173_v39, %s4714_s0  ;;  %v5673_v39 = vcombine.high %v5620_v56, %v5620_v56 }
 0x6bb   :  { %3282 = vrot.lane.b32.xlu0 %v3180_v3, %s4714_s0  ;;  %v3226_v3 = vrot.slane %v3212_v26, %v4797_v13 }
 0x6bd   :  { %2870 = vrot.lane.b32.xlu1 %v2767_v29, %s4714_s0  ;;  %v3235_v29 = vcombine.high %v3234_v14, %v3234_v14 }
 0x6bf   :  { %2456 = vrot.lane.b32.xlu0 %v2353_v51, %s4714_s0  ;;  %v5681_v51 = vrot.slane %v5673_v39, %v6090_v49 }
 0x6c1   :  { %3278 = vrot.lane.b32.xlu1 %v3158_v55, %s4714_s0  ;;  %6098 = vst [vmem:[#allocation12_spill] sm:$0xff] %v5681_v51  ;;  %v3242_v55 = vrot.slane %v3234_v14, %v4797_v13  ;;  %v2429_v37 = vrot.slane %v5681_v51, %v4797_v13 }
 0x6c3   :  { %2468 = vrot.lane.b32.xlu0 %v2399_v1, %s4714_s0  ;;  %v3249_v1 = vrot.slane %v3235_v29, %v4797_v13  ;;  %v2437_v49 = vrot.slane %v2429_v37, %v4797_v13  ;;  %v2430_v27 = vcombine.high %v2429_v37, %v2429_v37 }
 0x6c5   :  { %3290 = vrot.lane.b32.xlu1 %v3204_v8, %s4714_s0  ;;  %v2376_v8 = vcombine.high %v5568_v57, %v5568_v57  ;;  %v2836_v57 = vcombine.high %v2828_v40, %v2828_v40 }
 0x6c7   :  { %3284 = vrot.lane.b32.xlu0 %v3181_v17, %s4714_s0  ;;  %v2422_v17 = vcombine.high %v5594_v41, %v5594_v41  ;;  %v2444_v41 = vrot.slane %v2430_v27, %v4797_v13 }
 0x6c9   :  { %2872 = vrot.lane.b32.xlu1 %v2782_v61, %s4714_s0  ;;  %v2445_v61 = vcombine.high %v2437_v49, %v2437_v49 }
 0x6cb   :  { %2874 = vrot.lane.b32.xlu0 %v2789_v20, %s4714_s0  ;;  %v3250_v20 = vcombine.high %v3242_v55, %v3242_v55 }
 0x6cd   :  { %2884 = vrot.lane.b32.xlu1 %v2828_v40, %s4714_s0  ;;  %v3273_v40 = vcombine.high %v5468_v35, %v5468_v35 }
 0x6cf   :  { %2886 = vrot.lane.b32.xlu0 %v2835_v38, %s4714_s0 }
 0x6d1   :  { %3292 = vrot.lane.b32.xlu1 %v3219_v11, %s4714_s0 }
 0x6d3   :  { %3294 = vrot.lane.b32.xlu0 %v3226_v3, %s4714_s0 }
 0x6d5   :  { %3298 = vrot.lane.b32.xlu1 %v3242_v55, %s4714_s0 }
 0x6d7   :  { %3300 = vrot.lane.b32.xlu0 %v3249_v1, %s4714_s0 }
 0x6d9   :  { %2462 = vrot.lane.b32.xlu1 %v2376_v8, %s4714_s0 }
 0x6db   :  { %2476 = vrot.lane.b32.xlu0 %v2437_v49, %s4714_s0 }
 0x6dd   :  { %2474 = vrot.lane.b32.xlu1 %v2422_v17, %s4714_s0 }
 0x6df   :  { %2876 = vrot.lane.b32.xlu0 %v2790_v30, %s4714_s0 }
 0x6e1   :  { %2882 = vrot.lane.b32.xlu1 %v2813_v24, %s4714_s0 }
 0x6e3   :  { %2888 = vrot.lane.b32.xlu0 %v2836_v57, %s4714_s0 }
 0x6e5   :  { %3302 = vrot.lane.b32.xlu1 %v3250_v20, %s4714_s0 }
 0x6e7   :  { %3296 = vrot.lane.b32.xlu0 %v3227_v19, %s4714_s0 }
 0x6e9   :  { %2478 = vrot.lane.b32.xlu1 %v2444_v41, %s4714_s0 }
 0x6eb   :  { %2480 = vrot.lane.b32.xlu0 %v2445_v61, %s4714_s0 }
 0x6ed   :  { %2894 = vrot.lane.b32.xlu1 %v2859_v5, %s4714_s0 }
 0x6ef   :  { %3308 = vrot.lane.b32.xlu0 %v3273_v40, %s4714_s0 }
 0x6f7   :  { %v5714_v38 = vpop.permute.xlu1 %2890 }
 0x6f9   :  { %v5716_v26 = vpop.permute.xlu0 %2892 }
 0x6fb   :  { %v2447_v14 = vpop.permute.xlu1 %2446 }
 0x6fc   :  { %v2500_v17 = vmul.f32 %v2447_v14, %v5410_v44 }
 0x6fd   :  { %v3305_v11 = vpop.permute.xlu0 %3304 }
 0x6fe   :  { %v5726_v40 = vmul.f32 %v3305_v11, %v5673_v39 }
 0x6ff   :  { %v2861_v3 = vpop.permute.xlu1 %2860 }
 0x700   :  { %v2914_v19 = vmul.f32 %v2861_v3, %v5410_v44 }
 0x701   :  { %v2449_v29 = vpop.permute.xlu0 %2448 }
 0x702   :  { %v2501_v50 = vmul.f32 %v2449_v29, %v5423_v9 }
 0x703   :  { %v2867_v55 = vpop.permute.xlu1 %2866 }
 0x704   :  { %v2536_v30 = vcombine.low %v2500_v17, %v2501_v50 }
 0x705   :  { %v2863_v1 = vpop.permute.xlu0 %2862 }
 0x706   :  { %v2915_v57 = vmul.f32 %v2863_v1, %v5423_v9  ;;  %v2543_v41 = vrot.slane %v2536_v30, %v4797_v13 }
 0x707   :  { %v3275_v37 = vpop.permute.xlu1 %3274 }
 0x708   :  { %v2950_v29 = vcombine.low %v2914_v19, %v2915_v57  ;;  %v3328_v34 = vmul.f32 %v3275_v37, %v5410_v44 }
 0x709   :  { %v2869_v8 = vpop.permute.xlu0 %2868 }
 0x70b   :  { %v3287_v49 = vpop.permute.xlu1 %3286 }
 0x70d   :  { %v3277_v35 = vpop.permute.xlu0 %3276 }
 0x70f   :  { %v2451_v24 = vpop.permute.xlu1 %2450 }
 0x710   :  { %v2502_v20 = vmul.f32 %v2451_v24, %v5456_v32 }
 0x711   :  { %v3289_v27 = vpop.permute.xlu0 %3288 }
 0x712   :  { %v2550_v61 = vrot.slane %v2502_v20, %v4797_v13  ;;  %v2957_v20 = vrot.slane %v2950_v29, %v4797_v13  ;;  %v3335_v16 = vmul.f32 %v3289_v27, %v5614_v36 }
 0x713   :  { %v3307_v5 = vpop.permute.xlu1 %3306 }
 0x714   :  { %v5729_v14 = vmul.f32 %v3307_v5, %v5407_v43  ;;  %v2551_v50 = vcombine.low %v2543_v41, %v2550_v61 }
 0x715   :  { %v2865_v17 = vpop.permute.xlu0 %2864 }
 0x716   :  { %v2916_v24 = vmul.f32 %v2865_v17, %v5456_v32  ;;  %v2558_v3 = vrot.slane %v2551_v50, %v4797_v13 }
 0x717   :  { %v2453_v30 = vpop.permute.xlu1 %2452 }
 0x718   :  { %v2964_v60 = vrot.slane %v2916_v24, %v4797_v13  ;;  %v2680_v11 = vsel %vm657_vm1, %v2558_v3, 0.0 }
 0x719   :  { %v2455_v57 = vpop.permute.xlu0 %2454  ;;  %2681 = vadd.xlane.f32.xlu1 %v2680_v11  ;;  %v2917_v11 = vmul.f32 %v2867_v55, %v5505_v21 }
 0x71a   :  { %v2965_v19 = vcombine.low %v2957_v20, %v2964_v60  ;;  %v2918_v60 = vmul.f32 %v2869_v8, %v5433_v23  ;;  %v2504_v53 = vmul.f32 %v2455_v57, %v5433_v23 }
 0x71b   :  { %v5738_v5 = vpop.permute.xlu1 %2458 }
 0x71c   :  { %v2972_v41 = vrot.slane %v2965_v19, %v4797_v13  ;;  %v2973_v1 = vcombine.low %v2917_v11, %v2918_v60  ;;  %v3334_v60 = vmul.f32 %v3287_v49, %v5516_v42 }
 0x71d   :  { %v5741_v61 = vpop.permute.xlu0 %2460 }
 0x71e   :  { %v3094_v17 = vsel %vm657_vm1, %v2972_v41, 0.0  ;;  %v3329_v41 = vmul.f32 %v3277_v35, %v5423_v9  ;;  %v2980_v55 = vrot.slane %v2973_v1, %v4797_v13  ;;  %v2503_v35 = vmul.f32 %v2453_v30, %v5505_v21 }
 0x71f   :  { %v2465_v28 = vpop.permute.xlu1 %2464  ;;  %3095 = vadd.xlane.f32.xlu1 %v3094_v17 }
 0x720   :  { %v2509_v8 = vmul.f32 %v2465_v28, %v5528_v10  ;;  %v3364_v11 = vcombine.low %v3328_v34, %v3329_v41  ;;  %v3410_v28 = vcombine.low %v3334_v60, %v3335_v16  ;;  %v2559_v12 = vcombine.low %v2503_v35, %v2504_v53 }
 0x721   :  { %v2467_v50 = vpop.permute.xlu0 %2466 }
 0x722   :  { %v2510_v17 = vmul.f32 %v2467_v50, %v5556_v47  ;;  %v3371_v34 = vrot.slane %v3364_v11, %v4797_v13 }
 0x723   :  { %v5744_v15 = vpop.permute.xlu1 %2470 }
 0x724   :  { %v2605_v50 = vcombine.low %v2509_v8, %v2510_v17  ;;  %v2566_v17 = vrot.slane %v2559_v12, %v4797_v13 }
 0x725   :  { %v5746_v29 = vpop.permute.xlu0 %2472 }
 0x727   :  { %v5748_v24 = vpop.permute.xlu1 %2878 }
 0x729   :  { %v5750_v3 = vpop.permute.xlu0 %2880 }
 0x72b   :  { %v3281_v20 = vpop.permute.xlu1 %3280 }
 0x72c   :  { %v3331_v1 = vmul.f32 %v3281_v20, %v5505_v21  ;;  %v3417_v20 = vrot.slane %v3410_v28, %v4797_v13 }
 0x72d   :  { %v3283_v19 = vpop.permute.xlu0 %3282 }
 0x72e   :  { %v3332_v44 = vmul.f32 %v3283_v19, %v5433_v23  ;;  %v2612_v23 = vrot.slane %v2605_v50, %v4797_v13 }
 0x72f   :  { %v2871_v18 = vpop.permute.xlu1 %2870 }
 0x730   :  { %v2919_v51 = vmul.f32 %v2871_v18, %v5571_v6 }
 0x731   :  { %v2457_v45 = vpop.permute.xlu0 %2456 }
 0x732   :  { %v2987_v9 = vrot.slane %v2919_v51, %v4797_v13  ;;  %v2505_v18 = vmul.f32 %v2457_v45, %v5571_v6  ;;  %v3387_v45 = vcombine.low %v3331_v1, %v3332_v44 }
 0x733   :  { %v3279_v37 = vpop.permute.xlu1 %3278 }
 0x734   :  { %v2988_v27 = vcombine.low %v2980_v55, %v2987_v9  ;;  %v3330_v57 = vmul.f32 %v3279_v37, %v5456_v32  ;;  %v2573_v19 = vrot.slane %v2505_v18, %v4797_v13  ;;  %v3394_v9 = vrot.slane %v3387_v45, %v4797_v13 }
 0x735   :  { %v2469_v52 = vpop.permute.xlu0 %2468 }
 0x736   :  { %v3378_v51 = vrot.slane %v3330_v57, %v4797_v13  ;;  %v2511_v49 = vmul.f32 %v2469_v52, %v5632_v46  ;;  %v2995_v30 = vrot.slane %v2988_v27, %v4797_v13  ;;  %v2574_v50 = vcombine.low %v2566_v17, %v2573_v19 }
 0x737   :  { %v3291_v41 = vpop.permute.xlu1 %3290  ;;  %v2513_v17 = vmul.f32 %v5746_v29, %v5620_v56 }
 0x738   :  { %v3379_v32 = vcombine.low %v3371_v34, %v3378_v51  ;;  %v2619_v16 = vrot.slane %v2511_v49, %v4797_v13  ;;  %v3336_v21 = vmul.f32 %v3291_v41, %v5471_v63  ;;  %v3097_v53 = vsel %vm657_vm1, %v2995_v30, 0.0 }
 0x739   :  { %v3285_v52 = vpop.permute.xlu0 %3284  ;;  %3098 = vadd.xlane.f32.xlu0 %v3097_v53  ;;  %v2581_v49 = vrot.slane %v2574_v50, %v4797_v13 }
 0x73a   :  { %v2620_v8 = vcombine.low %v2612_v23, %v2619_v16  ;;  %v3424_v55 = vrot.slane %v3336_v21, %v4797_v13  ;;  %v3333_v60 = vmul.f32 %v3285_v52, %v5571_v6  ;;  %v3386_v11 = vrot.slane %v3379_v32, %v4797_v13 }
 0x73b   :  { %v2873_v35 = vpop.permute.xlu1 %2872  ;;  %v2683_v19 = vsel %vm657_vm1, %v2581_v49, 0.0  ;;  %v2507_v32 = vmul.f32 %v5741_v61, %v5614_v36  ;;  %v2506_v21 = vmul.f32 %v5738_v5, %v5516_v42  ;;  %v2924_v61 = vmul.f32 %v5750_v3, %v5556_v47 }
 0x73c   :  { %v3425_v44 = vcombine.low %v3417_v20, %v3424_v55  ;;  %v3401_v18 = vrot.slane %v3333_v60, %v4797_v13  ;;  %v3508_v37 = vsel %vm657_vm1, %v3386_v11, 0.0  ;;  %v2627_v27 = vrot.slane %v2620_v8, %v4797_v13 }
 0x73d   :  { %3509 = vadd.xlane.f32.xlu0 %v3508_v37  ;;  %v2875_v12 = vpop.permute.xlu0 %2874  ;;  %v2582_v20 = vcombine.low %v2506_v21, %v2507_v32  ;;  %v2512_v55 = vmul.f32 %v5744_v15, %v5541_v48  ;;  %v2920_v11 = vmul.f32 %v2873_v35, %v5516_v42 }
 0x73e   :  { %v3402_v57 = vcombine.low %v3394_v9, %v3401_v18  ;;  %v3432_v28 = vrot.slane %v3425_v44, %v4797_v13  ;;  %v2689_v6 = vsel %vm657_vm1, %v2627_v27, 0.0  ;;  %v2921_v52 = vmul.f32 %v2875_v12, %v5614_v36 }
 0x73f   :  { %v2885_v1 = vpop.permute.xlu1 %2884  ;;  %2690 = vadd.xlane.f32.xlu1 %v2689_v6  ;;  %v2589_v5 = vrot.slane %v2582_v20, %v4797_v13  ;;  %v2628_v50 = vcombine.low %v2512_v55, %v2513_v17  ;;  %v2923_v36 = vmul.f32 %v5748_v24, %v5528_v10 }
 0x740   :  { %v3514_v34 = vsel %vm657_vm1, %v3432_v28, 0.0  ;;  %v3409_v51 = vrot.slane %v3402_v57, %v4797_v13  ;;  %v2996_v29 = vcombine.low %v2920_v11, %v2921_v52  ;;  %v2926_v3 = vmul.f32 %v2885_v1, %v5541_v48 }
 0x741   :  { %3515 = vadd.xlane.f32.xlu0 %v3514_v34  ;;  %v2887_v30 = vpop.permute.xlu0 %2886  ;;  %v3019_v27 = vcombine.low %v2923_v36, %v2924_v61  ;;  %v2635_v57 = vrot.slane %v2628_v50, %v4797_v13 }
 0x742   :  { %v3511_v23 = vsel %vm657_vm1, %v3409_v51, 0.0  ;;  %v2927_v18 = vmul.f32 %v2887_v30, %v5620_v56  ;;  %v3003_v34 = vrot.slane %v2996_v29, %v4797_v13 }
 0x743   :  { %v3293_v45 = vpop.permute.xlu1 %3292  ;;  %3512 = vadd.xlane.f32.xlu1 %v3511_v23  ;;  %v3026_v21 = vrot.slane %v3019_v27, %v4797_v13 }
 0x744   :  { %v3042_v51 = vcombine.low %v2926_v3, %v2927_v18 }
 0x745   :  { %2684 = vadd.xlane.f32.xlu0 %v2683_v19  ;;  %v3295_v41 = vpop.permute.xlu0 %3294 }
 0x746   :  { %v3338_v49 = vmul.f32 %v3295_v41, %v5556_v47 }
 0x747   :  { %v3299_v16 = vpop.permute.xlu1 %3298 }
 0x748   :  { %v3340_v30 = vmul.f32 %v3299_v16, %v5541_v48  ;;  %v3049_v16 = vrot.slane %v3042_v51, %v4797_v13 }
 0x749   :  { %v3301_v53 = vpop.permute.xlu0 %3300 }
 0x74a   :  { %v3341_v42 = vmul.f32 %v3301_v53, %v5620_v56 }
 0x74b   :  { %v2463_v8 = vpop.permute.xlu1 %2462 }
 0x74c   :  { %v2508_v60 = vmul.f32 %v2463_v8, %v5471_v63  ;;  %v3456_v53 = vcombine.low %v3340_v30, %v3341_v42 }
 0x74d   :  { %v2477_v9 = vpop.permute.xlu0 %2476 }
 0x74e   :  { %v2596_v44 = vrot.slane %v2508_v60, %v4797_v13  ;;  %v3463_v11 = vrot.slane %v3456_v53, %v4797_v13  ;;  %v6099_v53 = vcombine.low %v5726_v40, %v5729_v14 }
 0x74f   :  { %v2475_v15 = vpop.permute.xlu1 %2474 }
 0x750   :  { %v2597_v37 = vcombine.low %v2589_v5, %v2596_v44  ;;  %v2514_v12 = vmul.f32 %v2475_v15, %v5646_v25 }
 0x751   :  { %v2877_v35 = vpop.permute.xlu0 %2876 }
 0x752   :  { %v2642_v28 = vrot.slane %v2514_v12, %v4797_v13  ;;  %v2922_v6 = vmul.f32 %v2877_v35, %v5471_v63  ;;  %v2604_v24 = vrot.slane %v2597_v37, %v4797_v13  ;;  %v3337_v63 = vmul.f32 %v3293_v45, %v5528_v10 }
 0x753   :  { %v2883_v23 = vpop.permute.xlu1 %2882  ;;  %v2930_v45 = vmul.f32 %v5716_v26, %v5407_v43  ;;  %v2515_v26 = vmul.f32 %v2477_v9, %v5673_v39 }
 0x754   :  { %v2643_v1 = vcombine.low %v2635_v57, %v2642_v28  ;;  %v3010_v56 = vrot.slane %v2922_v6, %v4797_v13  ;;  %v2925_v19 = vmul.f32 %v2883_v23, %v5632_v46  ;;  %v2686_v32 = vsel %vm657_vm1, %v2604_v24, 0.0 }
 0x755   :  { %v2889_v20 = vpop.permute.xlu0 %2888  ;;  %2687 = vadd.xlane.f32.xlu0 %v2686_v32  ;;  %v3433_v52 = vcombine.low %v3337_v63, %v3338_v49 }
 0x756   :  { %v3011_v17 = vcombine.low %v3003_v34, %v3010_v56  ;;  %v3033_v47 = vrot.slane %v2925_v19, %v4797_v13  ;;  %v2928_v48 = vmul.f32 %v2889_v20, %v5646_v25  ;;  %v2650_v41 = vrot.slane %v2643_v1, %v4797_v13 }
 0x757   :  { %v3303_v8 = vpop.permute.xlu1 %3302  ;;  %v3440_v15 = vrot.slane %v3433_v52, %v4797_v13  ;;  %v3486_v20 = vrot.slane %v6099_v53, %v4797_v13 }
 0x758   :  { %v3034_v55 = vcombine.low %v3026_v21, %v3033_v47  ;;  %v3056_v60 = vrot.slane %v2928_v48, %v4797_v13  ;;  %v3342_v61 = vmul.f32 %v3303_v8, %v5646_v25  ;;  %v2692_v10 = vsel %vm657_vm1, %v2650_v41, 0.0 }
 0x759   :  { %v3297_v5 = vpop.permute.xlu0 %3296  ;;  %2693 = vadd.xlane.f32.xlu0 %v2692_v10  ;;  %v3018_v50 = vrot.slane %v3011_v17, %v4797_v13  ;;  %v2929_v25 = vmul.f32 %v5714_v38, %v5673_v39 }
 0x75a   :  { %v3057_v44 = vcombine.low %v3049_v16, %v3056_v60  ;;  %v3470_v36 = vrot.slane %v3342_v61, %v4797_v13  ;;  %v3339_v29 = vmul.f32 %v3297_v5, %v5632_v46  ;;  %v3041_v18 = vrot.slane %v3034_v55, %v4797_v13 }
 0x75b   :  { %v2479_v37 = vpop.permute.xlu1 %2478  ;;  %v3100_v12 = vsel %vm657_vm1, %v3018_v50, 0.0  ;;  %v3065_v35 = vcombine.low %v2929_v25, %v2930_v45 }
 0x75c   :  { %v3471_v27 = vcombine.low %v3463_v11, %v3470_v36  ;;  %v3447_v3 = vrot.slane %v3339_v29, %v4797_v13  ;;  %v2516_v42 = vmul.f32 %v2479_v37, %v5407_v43  ;;  %3101 = vadd.xlane.f32.xlu1 %v3100_v12  ;;  %v3103_v46 = vsel %vm657_vm1, %v3041_v18, 0.0 }
 0x75d   :  { %v2481_v57 = vpop.permute.xlu0 %2480  ;;  %3104 = vadd.xlane.f32.xlu0 %v3103_v46  ;;  %v3064_v38 = vrot.slane %v3057_v44, %v4797_v13  ;;  %v3072_v56 = vrot.slane %v3065_v35, %v4797_v13 }
 0x75e   :  { %v3448_v28 = vcombine.low %v3440_v15, %v3447_v3  ;;  %v2651_v6 = vcombine.low %v2515_v26, %v2516_v42  ;;  %v2517_v39 = vmul.f32 %v2481_v57, %v5420_v33  ;;  %v3478_v9 = vrot.slane %v3471_v27, %v4797_v13 }
 0x75f   :  { %v2895_v24 = vpop.permute.xlu1 %2894  ;;  %v3106_v34 = vsel %vm657_vm1, %v3064_v38, 0.0 }
 0x760   :  { %v2658_v51 = vrot.slane %v2651_v6, %v4797_v13  ;;  %v2665_v43 = vrot.slane %v2517_v39, %v4797_v13  ;;  %v2931_v49 = vmul.f32 %v2895_v24, %v5420_v33  ;;  %3107 = vadd.xlane.f32.xlu1 %v3106_v34  ;;  %v3520_v30 = vsel %vm657_vm1, %v3478_v9, 0.0 }
 0x761   :  { %v3309_v23 = vpop.permute.xlu0 %3308  ;;  %3521 = vadd.xlane.f32.xlu0 %v3520_v30  ;;  %v3455_v1 = vrot.slane %v3448_v28, %v4797_v13 }
 0x762   :  { %v2666_v19 = vcombine.low %v2658_v51, %v2665_v43  ;;  %v3079_v32 = vrot.slane %v2931_v49, %v4797_v13  ;;  %v3345_v21 = vmul.f32 %v3309_v23, %v5420_v33 }
 0x763   :  { %v3517_v63 = vsel %vm657_vm1, %v3455_v1, 0.0 }
 0x764   :  { %v3080_v17 = vcombine.low %v3072_v56, %v3079_v32  ;;  %v3493_v47 = vrot.slane %v3345_v21, %v4797_v13  ;;  %3518 = vadd.xlane.f32.xlu1 %v3517_v63  ;;  %v2673_v48 = vrot.slane %v2666_v19, %v4797_v13 }
 0x766   :  { %v3494_v41 = vcombine.low %v3486_v20, %v3493_v47  ;;  %v2695_v16 = vsel %vm657_vm1, %v2673_v48, 0.0  ;;  %v3087_v52 = vrot.slane %v3080_v17, %v4797_v13 }
 0x768   :  { %2696 = vadd.xlane.f32.xlu1 %v2695_v16  ;;  %v3109_v33 = vsel %vm657_vm1, %v3087_v52, 0.0  ;;  %v3501_v8 = vrot.slane %v3494_v41, %v4797_v13 }
 0x769   :  { %3110 = vadd.xlane.f32.xlu0 %v3109_v33 }
 0x76a   :  { %v3523_v40 = vsel %vm657_vm1, %v3501_v8, 0.0 }
 0x76c   :  { %3524 = vadd.xlane.f32.xlu1 %v3523_v40 }
 0x7a6   :  { %v2682_v14 = vpop.xlane.xlu1 %2681 }
 0x7ac   :  { %v3096_v60 = vpop.xlane.xlu1 %3095 }
 0x7ad   :  { %v3526_v61 = vsel %vm1504_vm2, %v2682_v14, %v3096_v60 }
 0x7c6   :  { %v3099_v55 = vpop.xlane.xlu0 %3098 }
 0x7ca   :  { %v3510_v10 = vpop.xlane.xlu0 %3509 }
 0x7cb   :  { %v3532_v45 = vsel %vm1511_vm3, %v3526_v61, %v3510_v10 }
 0x7cc   :  { %v3538_v11 = vmul.f32 0.35355338, %v3532_v45  ;;  %v2691_v5 = vpop.xlane.xlu1 %2690 }
 0x7ce   :  { %v3516_v50 = vpop.xlane.xlu0 %3515  ;;  %v3544_v44 = vsel %vm1524_vm4, %v3538_v11, -inf }
 0x7cf   :  { %3545 = vmax.xlane.f32.xlu0 %v3544_v44 }
 0x7d0   :  { %v3513_v29 = vpop.xlane.xlu1 %3512 }
 0x7d2   :  { %v2685_v36 = vpop.xlane.xlu0 %2684 }
 0x7d3   :  { %v3527_v18 = vsel %vm1504_vm2, %v2685_v36, %v3099_v55 }
 0x7d4   :  { %v3533_v25 = vsel %vm1511_vm3, %v3527_v18, %v3513_v29 }
 0x7d5   :  { %v3539_v15 = vmul.f32 0.35355338, %v3533_v25 }
 0x7d7   :  { %v3547_v26 = vsel %vm1524_vm4, %v3539_v15, -inf }
 0x7d8   :  { %3548 = vmax.xlane.f32.xlu1 %v3547_v26 }
 0x7e2   :  { %v2688_v37 = vpop.xlane.xlu0 %2687 }
 0x7e6   :  { %v2694_v12 = vpop.xlane.xlu0 %2693 }
 0x7e9   :  { %v3102_v27 = vpop.xlane.xlu1 %3101 }
 0x7ea   :  { %v3528_v3 = vsel %vm1504_vm2, %v2688_v37, %v3102_v27  ;;  %v3105_v42 = vpop.xlane.xlu0 %3104 }
 0x7eb   :  { %v3534_v46 = vsel %vm1511_vm3, %v3528_v3, %v3516_v50  ;;  %v3529_v24 = vsel %vm1504_vm2, %v2691_v5, %v3105_v42 }
 0x7ec   :  { %v3540_v35 = vmul.f32 0.35355338, %v3534_v46 }
 0x7ed   :  { %v3108_v57 = vpop.xlane.xlu1 %3107 }
 0x7ee   :  { %v3530_v38 = vsel %vm1504_vm2, %v2694_v12, %v3108_v57  ;;  %v3550_v28 = vsel %vm1524_vm4, %v3540_v35, -inf  ;;  %v3522_v6 = vpop.xlane.xlu0 %3521  ;;  %v6100_v57 = vmov 2  }
 0x7ef   :  { %3551 = vmax.xlane.f32.xlu0 %v3550_v28  ;;  %v3536_v39 = vsel %vm1511_vm3, %v3530_v38, %v3522_v6  ;;  %v6101_v6 = vmov 0  }
 0x7f0   :  { %v3542_v9 = vmul.f32 0.35355338, %v3536_v39  ;;  %v6102_v39 = vmov 1  }
 0x7f1   :  { %v3519_v34 = vpop.xlane.xlu1 %3518 }
 0x7f2   :  { %v3535_v51 = vsel %vm1511_vm3, %v3529_v24, %v3519_v34  ;;  %v3556_v43 = vsel %vm1524_vm4, %v3542_v9, -inf }
 0x7f3   :  { %v3541_v49 = vmul.f32 0.35355338, %v3535_v51  ;;  %3557 = vmax.xlane.f32.xlu0 %v3556_v43 }
 0x7f5   :  { %v2697_v30 = vpop.xlane.xlu1 %2696  ;;  %v3553_v23 = vsel %vm1524_vm4, %v3541_v49, -inf }
 0x7f6   :  { %3554 = vmax.xlane.f32.xlu1 %v3553_v23  ;;  %v3111_v1 = vpop.xlane.xlu0 %3110 }
 0x7f7   :  { %v3531_v56 = vsel %vm1504_vm2, %v2697_v30, %v3111_v1 }
 0x7f9   :  { %v3525_v19 = vpop.xlane.xlu1 %3524 }
 0x7fa   :  { %v3537_v32 = vsel %vm1511_vm3, %v3531_v56, %v3525_v19 }
 0x7fb   :  { %v3543_v21 = vmul.f32 0.35355338, %v3537_v32 }
 0x7fd   :  { %v3559_v63 = vsel %vm1524_vm4, %v3543_v21, -inf }
 0x7fe   :  { %3560 = vmax.xlane.f32.xlu1 %v3559_v63  ;;  %v4634_v63 = vld [vmem:[%s6041_s3 + $0x18] sm:$0xff]  }
 0x85c   :  { %v3546_v53 = vpop.xlane.xlu0 %3545 }
 0x85d   :  { %v3562_v20 = vsub.f32 %v3538_v11, %v3546_v53 }
 0x85f   :  { %v3568_v17 = vmul.f32 1.442695, %v3562_v20 }
 0x861   :  { %4663 = vpow2.f32 %v3568_v17 }
 0x865   :  { %v3549_v47 = vpop.xlane.xlu1 %3548 }
 0x866   :  { %v3563_v48 = vsub.f32 %v3539_v15, %v3549_v47 }
 0x868   :  { %v3570_v41 = vmul.f32 1.442695, %v3563_v48 }
 0x86a   :  { %4665 = vpow2.f32 %v3570_v41 }
 0x86b   :  { %v4664_v16 = vpop.eup %4663 }
 0x86c   :  { %v3580_v52 = vsel %vm1524_vm4, %v4664_v16, 0.0 }
 0x86d   :  { %3581 = vadd.xlane.f32.xlu0 %v3580_v52 }
 0x874   :  { %v4666_v33 = vpop.eup %4665 }
 0x875   :  { %v3583_v8 = vsel %vm1524_vm4, %v4666_v33, 0.0 }
 0x876   :  { %3584 = vadd.xlane.f32.xlu1 %v3583_v8 }
 0x87c   :  { %v3552_v40 = vpop.xlane.xlu0 %3551 }
 0x87d   :  { %v3564_v14 = vsub.f32 %v3540_v35, %v3552_v40 }
 0x87f   :  { %v3572_v55 = vmul.f32 1.442695, %v3564_v14 }
 0x880   :  { %v3558_v60 = vpop.xlane.xlu0 %3557 }
 0x881   :  { %4667 = vpow2.f32 %v3572_v55  ;;  %v3566_v61 = vsub.f32 %v3542_v9, %v3558_v60 }
 0x883   :  { %v3576_v10 = vmul.f32 1.442695, %v3566_v61  ;;  %v3555_v45 = vpop.xlane.xlu1 %3554 }
 0x884   :  { %v3565_v11 = vsub.f32 %v3541_v49, %v3555_v45 }
 0x885   :  { %4669 = vpow2.f32 %v3576_v10 }
 0x886   :  { %v3574_v5 = vmul.f32 1.442695, %v3565_v11 }
 0x888   :  { %4671 = vpow2.f32 %v3574_v5 }
 0x88b   :  { %v4668_v50 = vpop.eup %4667  ;;  %v3561_v44 = vpop.xlane.xlu1 %3560 }
 0x88c   :  { %v3567_v36 = vsub.f32 %v3543_v21, %v3561_v44  ;;  %v3586_v29 = vsel %vm1524_vm4, %v4668_v50, 0.0  ;;  %v4633_v21 = vld [vmem:[%s6041_s3 + $0x10] sm:$0xff]  }
 0x88d   :  { %3587 = vadd.xlane.f32.xlu0 %v3586_v29  ;;  %4564 = vmatprep.subr.bf16.mxu1 %v4633_v21 }
 0x88e   :  { %v3578_v18 = vmul.f32 1.442695, %v3567_v36  ;;  %4565 = vmatpush3.bf16.msra.mxu1 %v4633_v21 }
 0x88f   :  { %v4670_v25 = vpop.eup %4669  ;;  %4566 = vmatprep.subr.bf16.mxu1 %v4634_v63 }
 0x890   :  { %4673 = vpow2.f32 %v3578_v18  ;;  %v3592_v15 = vsel %vm1524_vm4, %v4670_v25, 0.0 }
 0x891   :  { %3593 = vadd.xlane.f32.xlu0 %v3592_v15 }
 0x892   :  { %v4672_v26 = vpop.eup %4671  ;;  %4567 = vmatpush3.bf16.msra.mxu1 %v4634_v63 }
 0x893   :  { %v3589_v37 = vsel %vm1524_vm4, %v4672_v26, 0.0 }
 0x894   :  { %3590 = vadd.xlane.f32.xlu1 %v3589_v37  ;;  %v6104_v37 = vld [vmem:[#allocation11_spill] sm:$0xff] }
 0x89a   :  { %v4674_v12 = vpop.eup %4673 }
 0x89b   :  { %v3595_v27 = vsel %vm1524_vm4, %v4674_v12, 0.0 }
 0x89c   :  { %3596 = vadd.xlane.f32.xlu1 %v3595_v27 }
 0x8fa   :  { %v3582_v3 = vpop.xlane.xlu0 %3581 }
 0x8fb   :  { %4675 = vrcp.f32 %v3582_v3  ;;  %v6105_v3 = vld [vmem:[#allocation6_spill] sm:$0xff] }
 0x903   :  { %v3585_v42 = vpop.xlane.xlu1 %3584 }
 0x904   :  { %4677 = vrcp.f32 %v3585_v42  ;;  %v6106_v42 = vld [vmem:[#allocation10_spill] sm:$0xff] }
 0x905   :  { %v4676_v46 = vpop.eup %4675 }
 0x906   :  { %v3599_v35 = vmul.f32 %v4676_v46, %v4664_v16 }
 0x908   :  { %3653 = vperm.xlu1 %4613, %v3599_v35   ;;  %3612 = vperm.xlu0 %4612, %v3599_v35  }
 0x90c   :  { %4614 = vset.pattern.permute.xlu1 %v6100_v57  ;;  %4617 = vset.pattern.permute.xlu0 %v6100_v57 }
 0x90d   :  { %3695 = vperm.xlu1 %4614, %v3599_v35  }
 0x90e   :  { %v4678_v38 = vpop.eup %4677 }
 0x90f   :  { %v3601_v28 = vmul.f32 %v4678_v38, %v4666_v33  ;;  %v6107_v38 = vld [vmem:[#allocation13_spill] sm:$0xff] }
 0x911   :  { %4615 = vset.pattern.permute.xlu1 %v6101_v6  ;;  %3699 = vperm.xlu0 %4617, %v3601_v28  }
 0x912   :  { %3617 = vperm.xlu1 %4615, %v3601_v28  }
 0x915   :  { %4619 = vset.pattern.permute.xlu0 %v6102_v39 }
 0x916   :  { %4616 = vset.pattern.permute.xlu1 %v6102_v39 }
 0x917   :  { %3657 = vperm.xlu1 %4616, %v3601_v28  }
 0x91a   :  { %v3588_v24 = vpop.xlane.xlu0 %3587 }
 0x91b   :  { %4618 = vset.pattern.permute.xlu1 %v6101_v6 }
 0x91e   :  { %v3594_v51 = vpop.xlane.xlu0 %3593 }
 0x921   :  { %v3591_v9 = vpop.xlane.xlu1 %3590 }
 0x922   :  { %4679 = vrcp.f32 %v3591_v9 }
 0x923   :  { %4681 = vrcp.f32 %v3588_v24 }
 0x929   :  { %v3597_v34 = vpop.xlane.xlu1 %3596 }
 0x92a   :  { %4683 = vrcp.f32 %v3597_v34 }
 0x92b   :  { %4685 = vrcp.f32 %v3594_v51 }
 0x92c   :  { %v4680_v43 = vpop.eup %4679 }
 0x92d   :  { %v3605_v49 = vmul.f32 %v4680_v43, %v4672_v26  ;;  %v4682_v30 = vpop.eup %4681 }
 0x92e   :  { %v3603_v19 = vmul.f32 %v4682_v30, %v4668_v50 }
 0x92f   :  { %3627 = vperm.xlu1 %4618, %v3605_v49   ;;  %3665 = vperm.xlu0 %4619, %v3605_v49  }
 0x933   :  { %4620 = vset.pattern.permute.xlu1 %v6100_v57 }
 0x934   :  { %v4684_v23 = vpop.eup %4683  ;;  %3707 = vperm.xlu1 %4620, %v3605_v49  }
 0x935   :  { %v3609_v1 = vmul.f32 %v4684_v23, %v4674_v12  ;;  %v4686_v56 = vpop.eup %4685 }
 0x936   :  { %v3607_v32 = vmul.f32 %v4686_v56, %v4670_v25 }
 0x937   :  { %3673 = vperm.xlu0 %4619, %v3609_v1  }
 0x938   :  { %4621 = vset.pattern.permute.xlu1 %v6101_v6 }
 0x939   :  { %3622 = vperm.xlu1 %4621, %v3603_v19  }
 0x93b   :  { %4625 = vset.pattern.permute.xlu0 %v6100_v57 }
 0x93c   :  { %3711 = vperm.xlu0 %4625, %v3607_v32  }
 0x93d   :  { %3632 = vperm.xlu1 %4621, %v3607_v32  }
 0x941   :  { %4622 = vset.pattern.permute.xlu1 %v6102_v39 }
 0x942   :  { %3661 = vperm.xlu1 %4622, %v3603_v19  }
 0x946   :  { %3669 = vperm.xlu1 %4622, %v3607_v32   ;;  %v6108_v32 = vld [vmem:[#allocation12_spill] sm:$0xff] }
 0x94a   :  { %4623 = vset.pattern.permute.xlu1 %v6100_v57 }
 0x94b   :  { %3703 = vperm.xlu1 %4623, %v3603_v19  }
 0x94f   :  { %4624 = vset.pattern.permute.xlu1 %v6101_v6 }
 0x950   :  { %3637 = vperm.xlu1 %4624, %v3609_v1  }
 0x954   :  { %4626 = vset.pattern.permute.xlu1 %v6100_v57 }
 0x955   :  { %3715 = vperm.xlu1 %4626, %v3609_v1  }
 0x987   :  { %v3654_v53 = vpop.permute.xlu1 %3653  ;;  %v3613_v16 = vpop.permute.xlu0 %3612 }
 0x988   :  { %v3682_v61 = vmul.f32 %v3654_v53, %v5446_v58  ;;  %v3646_v10 = vmul.f32 %v3613_v16, %v5429_v7  ;;  %v6103_v7 = vld [vmem:[#allocation7_spill] sm:$0xff] }
 0x98c   :  { %v3696_v20 = vpop.permute.xlu1 %3695 }
 0x98d   :  { %v3724_v44 = vmul.f32 %v3696_v20, %v5480_v62  ;;  %v6109_v20 = vld [vmem:[#allocation9_spill] sm:$0xff] }
 0x990   :  { %v3700_v52 = vpop.permute.xlu0 %3699 }
 0x991   :  { %v3618_v17 = vpop.permute.xlu1 %3617  ;;  %v3725_v36 = vmul.f32 %v3700_v52, %v5590_v2 }
 0x992   :  { %v3647_v55 = vmul.f32 %v3618_v17, %v5523_v0 }
 0x996   :  { %v3658_v47 = vpop.permute.xlu1 %3657 }
 0x997   :  { %v3683_v14 = vmul.f32 %v3658_v47, %v5464_v4  ;;  %v3688_v4 = vadd.f32 %v3682_v61, %v3646_v10  ;;  %v6110_v61 = vld [vmem:[#allocation8_spill] sm:$0xff] }
 0x999   :  { %v3689_v11 = vadd.f32 %v3683_v14, %v3647_v55 }
 0x99b   :  { %v3731_v0 = vadd.f32 %v3725_v36, %v3689_v11 }
 0x9ae   :  { %v3628_v48 = vpop.permute.xlu1 %3627  ;;  %v3666_v8 = vpop.permute.xlu0 %3665 }
 0x9af   :  { %v3649_v5 = vmul.f32 %v3628_v48, %v5548_v59  ;;  %v3685_v50 = vmul.f32 %v3666_v8, %v5580_v54  ;;  %v3730_v59 = vadd.f32 %v3724_v44, %v3688_v4 }
 0x9b1   :  { %v3691_v25 = vadd.f32 %v3685_v50, %v3649_v5 }
 0x9b3   :  { %v3708_v41 = vpop.permute.xlu1 %3707 }
 0x9b4   :  { %v3727_v29 = vmul.f32 %v3708_v41, %v5653_v31  ;;  %v3771_v31 = vrot.slane %v3731_v0, %v4797_v13 }
 0x9b6   :  { %v3674_v60 = vpop.permute.xlu0 %3673  ;;  %v3733_v27 = vadd.f32 %v3727_v29, %v3691_v25  ;;  %v3772_v9 = vcombine.high %v3771_v31, %v3771_v31  ;;  %v3779_v24 = vrot.slane %v3771_v31, %v4797_v13 }
 0x9b7   :  { %v3687_v17 = vmul.f32 %v3674_v60, %v6109_v20 }
 0x9b8   :  { %v3623_v33 = vpop.permute.xlu1 %3622  ;;  %v3817_v6 = vrot.slane %v3733_v27, %v4797_v13  ;;  %v3786_v63 = vrot.slane %v3772_v9, %v4797_v13  ;;  %v3787_v53 = vcombine.high %v3779_v24, %v3779_v24 }
 0x9b9   :  { %v3648_v62 = vmul.f32 %v3623_v33, %v6105_v3 }
 0x9ba   :  { %v3818_v23 = vcombine.high %v3817_v6, %v3817_v6  ;;  %v3825_v1 = vrot.slane %v3817_v6, %v4797_v13  ;;  %v3882_v11 = vcombine.low %v3786_v63, %v3787_v53 }
 0x9bb   :  { %v3712_v15 = vpop.permute.xlu0 %3711 }
 0x9bc   :  { %v3633_v40 = vpop.permute.xlu1 %3632  ;;  %v3728_v2 = vmul.f32 %v3712_v15, %v6106_v42  ;;  %v3832_v33 = vrot.slane %v3818_v23, %v4797_v13  ;;  %v3833_v8 = vcombine.high %v3825_v1, %v3825_v1  ;;  %v3904_v25 = vrot.slane %v3882_v11, %v4797_v13  ;;  %v4635_v23 = vld [vmem:[%s6043_s5] sm:$0xff]  }
 0x9bd   :  { %v3650_v58 = vmul.f32 %v3633_v40, %v5564_v22  ;;  %v3748_v22 = vrot.slane %v3730_v59, %v4797_v13 }
 0x9be   :  { %v3930_v29 = vcombine.low %v3832_v33, %v3833_v8 }
 0x9bf   :  { %v3749_v49 = vcombine.high %v3748_v22, %v3748_v22  ;;  %v3756_v30 = vrot.slane %v3748_v22, %v4797_v13 }
 0x9c0   :  { %v3946_v59 = vrot.slane %v3930_v29, %v4797_v13 }
 0x9c1   :  { %v3662_v45 = vpop.permute.xlu1 %3661  ;;  %v3763_v16 = vrot.slane %v3749_v49, %v4797_v13  ;;  %v3764_v52 = vcombine.high %v3756_v30, %v3756_v30 }
 0x9c2   :  { %v3684_v12 = vmul.f32 %v3662_v45, %v6104_v37 }
 0x9c3   :  { %v3881_v45 = vcombine.low %v3764_v52, %v3779_v24  ;;  %v3880_v36 = vcombine.low %v3756_v30, %v3763_v16 }
 0x9c4   :  { %v3690_v35 = vadd.f32 %v3684_v12, %v3648_v62 }
 0x9c5   :  { %v3670_v18 = vpop.permute.xlu1 %3669  ;;  %v3897_v0 = vrot.slane %v3881_v45, %v4797_v13  ;;  %v3890_v12 = vrot.slane %v3880_v36, %v4797_v13 }
 0x9c6   :  { %v3686_v26 = vmul.f32 %v3670_v18, %v6103_v7 }
 0x9c7   :  { %v3912_v42 = vcombine.low %v3890_v12, %v3897_v0 }
 0x9c8   :  { %v3692_v54 = vadd.f32 %v3686_v26, %v3650_v58 }
 0x9c9   :  { %v3920_v6 = vrot.slane %v3912_v42, %v4797_v13 }
 0x9ca   :  { %v3704_v46 = vpop.permute.xlu1 %3703  ;;  %v3734_v57 = vadd.f32 %v3728_v2, %v3692_v54 }
 0x9cb   :  { %v3726_v28 = vmul.f32 %v3704_v46, %v6107_v38 }
 0x9cc   :  { %v3840_v34 = vrot.slane %v3734_v57, %v4797_v13 }
 0x9cd   :  { %v3732_v39 = vadd.f32 %v3726_v28, %v3690_v35 }
 0x9ce   :  { %v3841_v47 = vcombine.high %v3840_v34, %v3840_v34  ;;  %v3848_v5 = vrot.slane %v3840_v34, %v4797_v13 }
 0x9cf   :  { %v3794_v51 = vrot.slane %v3732_v39, %v4797_v13  ;;  %v3638_v43 = vpop.permute.xlu1 %3637 }
 0x9d0   :  { %v3651_v21 = vmul.f32 %v3638_v43, %v6108_v32  ;;  %v3855_v60 = vrot.slane %v3841_v47, %v4797_v13  ;;  %v3856_v15 = vcombine.high %v3848_v5, %v3848_v5 }
 0x9d1   :  { %v3795_v56 = vcombine.high %v3794_v51, %v3794_v51  ;;  %v3802_v19 = vrot.slane %v3794_v51, %v4797_v13 }
 0x9d2   :  { %v3693_v55 = vadd.f32 %v3687_v17, %v3651_v21  ;;  %v3931_v58 = vcombine.low %v3848_v5, %v3855_v60 }
 0x9d3   :  { %v3809_v48 = vrot.slane %v3795_v56, %v4797_v13  ;;  %v3810_v41 = vcombine.high %v3802_v19, %v3802_v19  ;;  %v4636_v56 = vld [vmem:[%s6043_s5 + $0x8] sm:$0xff]  }
 0x9d4   :  { %v3716_v40 = vpop.permute.xlu1 %3715  ;;  %v3953_v2 = vrot.slane %v3931_v58, %v4797_v13 }
 0x9d5   :  { %v3883_v14 = vcombine.low %v3802_v19, %v3809_v48  ;;  %v3729_v10 = vmul.f32 %v3716_v40, %v6110_v61  ;;  %v3929_v50 = vcombine.low %v3810_v41, %v3825_v1  ;;  %v4719_v1 = vmov 0.0   ;;  %v4505_v19 = vld [vmem:[%s6042_s4 + $0x1] ss:$0 sm:$0xff] }
 0x9d6   :  { %4572 = vmatprep.subr.bf16.mxu0 %v4719_v1  ;;  %4576 = vmatprep.mubr.msk.bf16.mxu0 %vm4720_vm5, %v4719_v1 }
 0x9d7   :  { %v3735_v44 = vadd.f32 %v3729_v10, %v3693_v55  ;;  %v3911_v4 = vrot.slane %v3883_v14, %v4797_v13  ;;  %v3939_v7 = vrot.slane %v3929_v50, %v4797_v13  ;;  %4573 = vmatpush3.bf16.msra.mxu0 %v4635_v23  ;;  %4580 = vmatprep.subr.bf16.mxu1 %v4719_v1 }
 0x9d8   :  { %4574 = vmatprep.subr.bf16.mxu0 %v4719_v1 }
 0x9d9   :  { %v3863_v18 = vrot.slane %v3735_v44, %v4797_v13  ;;  %v3913_v27 = vcombine.low %v3904_v25, %v3911_v4  ;;  %v3961_v35 = vcombine.low %v3939_v7, %v3946_v59 }
 0x9db   :  { %v3864_v26 = vcombine.high %v3863_v18, %v3863_v18  ;;  %v3871_v37 = vrot.slane %v3863_v18, %v4797_v13  ;;  %v3927_v28 = vrot.slane %v3913_v27, %v4797_v13  ;;  %v3969_v39 = vrot.slane %v3961_v35, %v4797_v13  ;;  %4575 = vmatpush3.bf16.msra.mxu0 %v4636_v56 }
 0x9dd   :  { %v3878_v54 = vrot.slane %v3864_v26, %v4797_v13  ;;  %v3879_v3 = vcombine.high %v3871_v37, %v3871_v37  ;;  %v3932_v62 = vcombine.low %v3856_v15, %v3871_v37  ;;  %v3928_v34 = vcombine.low %v3920_v6, %v3927_v28  ;;  %v4638_v28 = vld [vmem:[%s6045_s7 + $0x8] sm:$0xff]  }
 0x9df   :  { %v3960_v31 = vrot.slane %v3932_v62, %v4797_v13  ;;  %v3978_v46 = vcombine.low %v3878_v54, %v3879_v3 }
 0x9e1   :  { %v3962_v57 = vcombine.low %v3953_v2, %v3960_v31  ;;  %v3985_v38 = vrot.slane %v3978_v46, %v4797_v13 }
 0x9e3   :  { %v3992_v22 = vrot.slane %v3985_v38, %v4797_v13  ;;  %v3976_v9 = vrot.slane %v3962_v57, %v4797_v13  ;;  %v4637_v38 = vld [vmem:[%s6045_s7] sm:$0xff]  }
 0x9e5   :  { %v3997_v24 = vpack.c.bf16 %v3992_v22, %v3992_v22  ;;  %v3977_v51 = vcombine.low %v3969_v39, %v3976_v9  ;;  %v4510_v22 = vld [vmem:[%s6044_s6] ss:$0 sm:$0xff] }
 0x9e7   :  { %4015 = vrot.lane.b32.xlu1 %v3997_v24, %s4718_s29  ;;  %v3996_v43 = vpack.c.bf16 %v3977_v51, %v3928_v34 }
 0x9e9   :  { %4013 = vrot.lane.b32.xlu0 %v3996_v43, %s4718_s29 }
 0xa59   :  { %v4016_v30 = vpop.permute.xlu1 %4015 }
 0xa5b   :  { %v4014_v49 = vpop.permute.xlu0 %4013 }
 0xa5c   :  { %4568 = vmatprep.mubr.msk.bf16.mxu1 %vm65_vm0, %v4014_v49  ;;  %v4514_v49 = vld [vmem:[%s6046_s8] ss:$0 sm:$0xff]  ;;  %s4721_s8 = smov [#allocation2]  }
 0xa5d   :  { %4569 = vmatmul.mubr.msk.bf16.vlgmr.msra.gmra.mrb[4].mxu1 %vm65_vm0, %v4016_v30  ;;  %s4472_s30 = sshll.u32 %s4721_s8, 4  ;;  %s4473_s30 = int_to_ptr.vmem [resolvable:$true] %s4472_s30 }
 0xa5e   :  { %4584 = vmatprep.mubr.msk.bf16.mxu1 %vm4720_vm5, %v4719_v1  ;;  %4581 = vmatpush3.bf16.msra.mxu1 %v4637_v38  ;;  %p4694_p1 = scmp.lt.s32.totalorder %s4473_s30, %s4473_s30 }
 0xa5f   :  { %4582 = vmatprep.subr.bf16.mxu1 %v4719_v1 }
 0xa62   :  { %4583 = vmatpush3.bf16.msra.mxu1 %v4638_v28 }
 0xb30   :  { %v4570_v32 = vpop.f32.mrb[4].mxu1 }
 0xb31   :  { %v4069_v21 = vpop.f32.mrb[5].mxu1 }
 0xb32   :  { %v4070_v63 = vadd.f32 %v4505_v19, %v4069_v21  ;;  %v4571_v53 = vpop.f32.mrb[6].mxu1 }
 0xb33   :  { %v4072_v20 = vpop.f32.mrb[7].mxu1 }
 0xb34   :  { %v4084_v17 = vcombine.high %v4070_v63, %v4070_v63  ;;  %v4091_v47 = vrot.slane %v4070_v63, %v4797_v13  ;;  %v4073_v48 = vadd.f32 %v4505_v19, %v4072_v20 }
 0xb36   :  { %v4098_v41 = vrot.slane %v4084_v17, %v4797_v13  ;;  %v4099_v16 = vcombine.high %v4091_v47, %v4091_v47  ;;  %v4123_v52 = vcombine.high %v4073_v48, %v4073_v48  ;;  %v4130_v33 = vrot.slane %v4073_v48, %v4797_v13 }
 0xb37   :  { %v4106_v8 = vrot.slane %v4091_v47, %v4797_v13 }
 0xb38   :  { %v4113_v40 = vrot.slane %v4098_v41, %v4797_v13  ;;  %v4120_v14 = vrot.slane %v4099_v16, %v4797_v13  ;;  %v4137_v55 = vrot.slane %v4123_v52, %v4797_v13  ;;  %v4138_v61 = vcombine.high %v4130_v33, %v4130_v33 }
 0xb39   :  { %v4168_v50 = vpack.c.bf16 %v4106_v8, %v4106_v8 }
 0xb3a   :  { %v4121_v10 = vcombine.high %v4113_v40, %v4113_v40  ;;  %v4122_v45 = vcombine.high %v4120_v14, %v4120_v14  ;;  %v4139_v11 = vcombine.high %v4137_v55, %v4137_v55  ;;  %v4146_v5 = vrot.slane %v4137_v55, %v4797_v13 }
 0xb3b   :  { %v4153_v60 = vrot.slane %v4138_v61, %v4797_v13  ;;  %v4191_v26 = vunpack.c.l.b16 %v4168_v50 }
 0xb3c   :  { %v4169_v44 = vpack.c.bf16 %v4122_v45, %v4122_v45  ;;  %v4170_v36 = vpack.c.bf16 %v4121_v10, %v4121_v10  ;;  %v4160_v29 = vrot.slane %v4139_v11, %v4797_v13  ;;  %v4172_v18 = vpack.c.bf16 %v4146_v5, %v4146_v5 }
 0xb3d   :  { %v4171_v4 = vpack.c.bf16 %v4153_v60, %v4153_v60 }
 0xb3e   :  { %v4192_v0 = vunpack.c.l.b16 %v4169_v44  ;;  %v4193_v25 = vunpack.c.l.b16 %v4170_v36  ;;  %v4161_v15 = vcombine.high %v4160_v29, %v4160_v29  ;;  %v4195_v7 = vunpack.c.l.b16 %v4172_v18 }
 0xb3f   :  { %v4194_v58 = vunpack.c.l.b16 %v4171_v4 }
 0xb40   :  { %v4197_v37 = vrot.slane %v4192_v0, 7  ;;  %v4200_v12 = vrot.slane %v4193_v25, 6  ;;  %v4173_v59 = vpack.c.bf16 %v4161_v15, %v4161_v15  ;;  %v4206_v42 = vrot.slane %v4195_v7, 4  ;;  %v4452_v15 = vld [vmem:[%s6047_s9] sm:$0x3]  ;;  %s4689_s9 = scalar_lea.vmem %s4473_s30, 32 }
 0xb41   :  { %v4203_v3 = vrot.slane %v4194_v58, 5  ;;  %p4690_p0 = scmp.ne.s32.totalorder %s4473_s30, %s4689_s9  ;;  %p4695_p2 = scmp.lt.s32.totalorder %s4689_s9, %s4689_s9 }
 0xb42   :  { %v4199_v27 = vsel %vm4198_vm6, %v4197_v37, %v4191_v26  ;;  %v4196_v54 = vunpack.c.l.b16 %v4173_v59 }
 0xb43   :  { %v4202_v62 = vsel %vm4201_vm7, %v4200_v12, %v4199_v27  ;;  %v4453_v12 = vmul.f32 0.5, %v4452_v15  ;;  %p4696_p3 = por %p4695_p2, %p4694_p1 }
 0xb44   :  { %v4205_v2 = vsel %vm4204_vm8, %v4203_v3, %v4202_v62  ;;  %v4209_v31 = vrot.slane %v4196_v54, 3 }
 0xb45   :  { %v4208_v46 = vsel %vm4207_vm9, %v4206_v42, %v4205_v2  ;;  %v4455_v54 = vrot.slane %v4453_v12, 1  ;;  %p4697_p4 = pnand %p4696_p3, %p4690_p0 }
 0xb46   :  { %v4211_v35 = vsel %vm4210_vm10, %v4209_v31, %v4208_v46 }
 0xb47   :  { %v4212_v57 = vpack.c.b16 %v4211_v35, %v4211_v35 }
 0xb49   :  { %4577 = vmatmul.mubr.msk.bf16.vlgmr.msra.gmra.mrb[8].mxu0 %vm65_vm0, %v4212_v57 }
 0xc1c   :  { %v4262_v6 = vpop.f32.mrb[8].mxu0 }
 0xc1d   :  { %v4263_v39 = vadd.f32 %v4510_v22, %v4262_v6  ;;  %v4578_v9 = vpop.f32.mrb[9].mxu0 }
 0xc1e   :  { %v4265_v24 = vpop.f32.mrb[10].mxu0 }
 0xc1f   :  { %4687 = vtanh.f32 %v4263_v39  ;;  %v4579_v34 = vpop.f32.mrb[11].mxu0 }
 0xc29   :  { %v4688_v51 = vpop.eup %4687 }
 0xc2a   :  { %v4269_v43 = vpack.c.bf16 %v4688_v51, %v4688_v51 }
 0xc2c   :  { %4585 = vmatmul.mubr.msk.bf16.vlgmr.msra.gmra.mrb[8].mxu1 %vm65_vm0, %v4269_v43 }
 0xcff   :  { %v4330_v30 = vpop.f32.mrb[8].mxu1 }
 0xd00   :  { %v4331_v23 = vadd.f32 %v4514_v49, %v4330_v30  ;;  %v4586_v1 = vpop.f32.mrb[9].mxu1 }
 0xd01   :  { %v4333_v56 = vpop.f32.mrb[10].mxu1 }
 0xd02   :  { %v4337_v19 = vcombine.high %v4331_v23, %v4331_v23  ;;  %v4344_v32 = vrot.slane %v4331_v23, %v4797_v13  ;;  %v4587_v21 = vpop.f32.mrb[11].mxu1 }
 0xd04   :  { %v4351_v63 = vrot.slane %v4337_v19, %v4797_v13  ;;  %v4352_v53 = vcombine.high %v4344_v32, %v4344_v32  ;;  %v4360_v20 = vrot.slane %v4344_v32, %v4797_v13 }
 0xd06   :  { %v4353_v17 = vcombine.high %v4351_v63, %v4351_v63  ;;  %v4374_v47 = vrot.slane %v4352_v53, %v4797_v13  ;;  %v4382_v48 = vcombine.high %v4360_v20, %v4360_v20  ;;  %v4367_v41 = vrot.slane %v4351_v63, %v4797_v13 }
 0xd08   :  { %v4381_v16 = vrot.slane %v4353_v17, %v4797_v13  ;;  %v4383_v52 = vcombine.high %v4374_v47, %v4374_v47  ;;  %v4384_v33 = vcombine.low %v4360_v20, %v4374_v47  ;;  %v4398_v40 = vrot.slane %v4382_v48, %v4797_v13 }
 0xd0a   :  { %v4391_v8 = vrot.slane %v4384_v33, %v4797_v13  ;;  %v4407_v14 = vcombine.low %v4383_v52, %v4367_v41  ;;  %v4421_v10 = vrot.slane %v4381_v16, %v4797_v13 }
 0xd0c   :  { %v4399_v55 = vcombine.low %v4391_v8, %v4398_v40  ;;  %v4414_v61 = vrot.slane %v4407_v14, %v4797_v13 }
 0xd0e   :  { %v4406_v45 = vrot.slane %v4399_v55, %v4797_v13  ;;  %v4422_v11 = vcombine.low %v4414_v61, %v4421_v10 }
 0xd10   :  { %v4429_v5 = vrot.slane %v4422_v11, %v4797_v13  ;;  %v4433_v60 = vsel %vm4432_vm11, %v4406_v45, 0.0 }
 0xd11   :  { %v4434_v50 = vrot.slane %v4433_v60, 4 }
 0xd12   :  { %v4440_v44 = vsel %vm4432_vm11, %v4429_v5, 0.0 }
 0xd13   :  { %v4435_v36 = vadd.f32 %v4434_v50, %v4433_v60  ;;  %v4441_v29 = vrot.slane %v4440_v44, 4 }
 0xd15   :  { %v4436_v4 = vrot.slane %v4435_v36, 2  ;;  %v4442_v18 = vadd.f32 %v4441_v29, %v4440_v44 }
 0xd17   :  { %v4437_v0 = vadd.f32 %v4436_v4, %v4435_v36  ;;  %v4443_v25 = vrot.slane %v4442_v18, 2 }
 0xd19   :  { %v4438_v58 = vrot.slane %v4437_v0, 1  ;;  %v4444_v7 = vadd.f32 %v4443_v25, %v4442_v18 }
 0xd1b   :  { %v4439_v26 = vadd.f32 %v4438_v58, %v4437_v0  ;;  %v4445_v37 = vrot.slane %v4444_v7, 1 }
 0xd1d   :  { %v4446_v59 = vadd.f32 %v4445_v37, %v4444_v7  ;;  %v4448_v13 = vmul.f32 0.33333334, %v4439_v26 }
 0xd1f   :  { %v4449_v27 = vmul.f32 0.33333334, %v4446_v59  ;;  %v4450_v3 = vmul.f32 0.5, %v4448_v13 }
 0xd21   :  { %v4451_v62 = vmul.f32 0.5, %v4449_v27  ;;  %v4458_v2 = vadd.f32 %v4453_v12, %v4450_v3 }
 0xd23   :  { %v4459_v42 = vadd.f32 %v4455_v54, %v4451_v62 }
 0xd25   :  { %v4462_v31 = vrot.slane %v4459_v42, 7 }
 0xd27   :  { %v4463_v46 = vsel %vm4198_vm6, %v4462_v31, %v4458_v2 }
 0xd28   :  { %4465 = vst [vmem:[#allocation2] sm:$0x3] %v4463_v46 }
 0xd29   :  { %4700 = shalt.err (!%p4697_p4)
}
 0xd2a   :  { %s4701_s13 = scalar_lea.hbm %s6048_s10, 32 }
 0xd2b   :  { %p4702_p5 = scmp.ne.s32.totalorder %s6048_s10, %s4701_s13  ;;  %p4705_p6 = scmp.lt.u32.totalorder %s4701_s13, %s6048_s10 }
 0xd2d   :  { %p4707_p7 = pnand %p4705_p6, %p4702_p5 }
 0xd2f   :  { %4710 = shalt.err (!%p4707_p7)
}
 0xd30   :  { %4475 = dma.vmem_to_hbm [thread:$0]  %s4473_s30, 32, %s6048_s10, [#allocation3]  }
 0xd31   :  { %4711 = dma.done.wait [#allocation3], 32  }
 0xd32   :  { %4712 = vsyncadd [#allocation3], 4294967264 }
 0xd33   :  { %4479 = vsyncpa [#allocation3], 1 }

</bundles_post_ra>
